<compile_context>
chip_gen: v5e
topology: v5e:2x2
jax: 0.10.0
libtpu: 0.0.40
codegen_flags: <defaults>
</compile_context>

<pallas_src>
import numpy as np

import jax
import jax.numpy as jnp
from jax.experimental import pallas as pl
from jax.experimental.pallas import tpu as pltpu


# ----------------------------- static config -------------------------------
IN_CHANNELS = 1
IN_HW = 16                       # input_shape = (1, 16, 16)
NUM_CHANNELS_LIST = (8, 16, 32)
KERNEL_SIZE = 3
K0 = 7                           # first conv kernel size
EPS = 1e-5

H0 = IN_HW                       # conv0 output spatial (stride 1)
H1 = H0 // 2                     # block1 output spatial
H2 = H1 // 2                     # block2 output spatial
C0, C1, C2 = NUM_CHANNELS_LIST
LANES = 128                      # every layer's packed (W * C) == 128
assert H0 * C0 == LANES and H1 * C1 == LANES and H2 * C2 == LANES

TB_DEFAULT = 8                   # samples per grid step (M = TB*H0 = 128)


# --------------------------- weight preparation ----------------------------

def _round_bf16(w):
    """Round weights through bf16 (what the MXU sees); return f32 numpy."""
    return np.asarray(jnp.asarray(w).astype(jnp.bfloat16).astype(jnp.float32))


def _band_matrix(wk, stride, pad, w_in, w_out):
    """wk: (Cout, Cin, k).  Returns the (w_in*Cin, w_out*Cout) Toeplitz band."""
    c_out, c_in, k = wk.shape
    t = np.zeros((w_in * c_in, w_out * c_out), np.float32)
    for wo in range(w_out):
        for dx in range(k):
            wi = stride * wo + dx - pad
            if 0 <= wi < w_in:
                t[wi * c_in:(wi + 1) * c_in,
                  wo * c_out:(wo + 1) * c_out] = wk[:, :, dx].T
    return t


def _row_select(dy, stride, pad, h_in, h_out):
    """(h_out, h_in) 0/1 gather: output row ho reads input row stride*ho+dy-pad."""
    s = np.zeros((h_out, h_in), np.float32)
    for ho in range(h_out):
        h = stride * ho + dy - pad
        if 0 <= h < h_in:
            s[ho, h] = 1.0
    return s


def _pack_rows(pieces):
    """Pack named 2-D matrices into one (R, 128) slab (rows 8-aligned).

    Returns (slab_f32, layout) with layout[name] = (row_offset, rows, cols);
    in-kernel access is a free static ref slice.
    """
    layout = {}
    blocks = []
    off = 0
    for name, arr in pieces:
        arr = np.asarray(arr, np.float32)
        r, c = arr.shape
        assert c <= LANES, (name, arr.shape)
        r_pad = -(-r // 8) * 8
        blk = np.zeros((r_pad, LANES), np.float32)
        blk[:r, :c] = arr
        layout[name] = (off, r, c)
        blocks.append(blk)
        off += r_pad
    return np.concatenate(blocks, axis=0), layout


def init_encoder_params(key):
    """Deterministic kaiming-normal-ish init for all conv weights."""
    def kaiming(k, shape):
        fan_in = shape[1] * shape[2] * shape[3]
        return jax.random.normal(k, shape, jnp.float32) * jnp.sqrt(2.0 / fan_in)

    params = {}
    n_blocks = len(NUM_CHANNELS_LIST)
    keys = jax.random.split(key, 1 + 2 * (n_blocks - 1))
    params["conv0_w"] = kaiming(keys[0], (NUM_CHANNELS_LIST[0], IN_CHANNELS, K0, K0))
    params["conv0_b"] = jnp.zeros((NUM_CHANNELS_LIST[0],), jnp.float32)
    last = NUM_CHANNELS_LIST[0]
    ki = 1
    for i in range(1, n_blocks):
        cout = NUM_CHANNELS_LIST[i]
        params[f"block{i}_conv_w"] = kaiming(keys[ki], (cout, last, KERNEL_SIZE, KERNEL_SIZE))
        params[f"block{i}_conv_b"] = jnp.zeros((cout,), jnp.float32)
        params[f"block{i}_sc_w"] = kaiming(keys[ki + 1], (cout, last, 1, 1))
        params[f"block{i}_sc_b"] = jnp.zeros((cout,), jnp.float32)
        ki += 2
        last = cout
    return params


def prepare_encoder_constants(params, tb):
    """One-time weight prep (hoisted out of the forward pass)."""
    w0 = _round_bf16(params["conv0_w"])                  # (8, 1, 7, 7)
    b0 = np.asarray(params["conv0_b"], np.float32)
    w1 = _round_bf16(params["block1_conv_w"])            # (16, 8, 3, 3)
    b1 = np.asarray(params["block1_conv_b"], np.float32)
    w1s = _round_bf16(params["block1_sc_w"])             # (16, 8, 1, 1)
    b1s = np.asarray(params["block1_sc_b"], np.float32)
    w2 = _round_bf16(params["block2_conv_w"])            # (32, 16, 3, 3)
    b2 = np.asarray(params["block2_conv_b"], np.float32)
    w2s = _round_bf16(params["block2_sc_w"])             # (32, 16, 1, 1)
    b2s = np.asarray(params["block2_sc_b"], np.float32)

    eye_tb = np.eye(tb, dtype=np.float32)
    pieces = []

    # conv0 (7x7 / s1 / p3):  per-tap width+channel band (16, 128).
    for dy in range(K0):
        pieces.append((f"wband0_{dy}", _band_matrix(w0[:, :, dy, :], 1, 3, H0, H0)))
    # conv0 row-gather-and-sum over all 7 taps, block-diagonal across the TB
    # batch block: (tb*16, 7*tb*16).  Kept as its own (wide) operand.
    sel0cat = np.concatenate(
        [np.kron(eye_tb, _row_select(dy, 1, 3, H0, H0)) for dy in range(K0)], axis=1)

    # tiny block 1: 3x3/s2/p1 main conv + 1x1/s2 shortcut, fused band (512,128).
    for dy in range(KERNEL_SIZE):
        pieces.append((f"sel1_{dy}", np.kron(eye_tb, _row_select(dy, 2, 1, H0, H1))))
    pieces.append(("sels1", np.kron(eye_tb, _row_select(0, 2, 0, H0, H1))))
    band1 = np.concatenate(
        [_band_matrix(w1[:, :, dy, :], 2, 1, H0, H1) for dy in range(KERNEL_SIZE)]
        + [_band_matrix(w1s[:, :, 0, :], 2, 0, H0, H1)], axis=0)
    pieces.append(("band1", band1))

    # tiny block 2.
    for dy in range(KERNEL_SIZE):
        pieces.append((f"sel2_{dy}", np.kron(eye_tb, _row_select(dy, 2, 1, H1, H2))))
    pieces.append(("sels2", np.kron(eye_tb, _row_select(0, 2, 0, H1, H2))))
    band2 = np.concatenate(
        [_band_matrix(w2[:, :, dy, :], 2, 1, H1, H2) for dy in range(KERNEL_SIZE)]
        + [_band_matrix(w2s[:, :, 0, :], 2, 0, H1, H2)], axis=0)
    pieces.append(("band2", band2))

    # InstanceNorm helpers per IN layer: per-sample row sum (rsum), row
    # broadcast (rb), per-channel lane grouping (g) and its transpose (gt).
    for tag, (h, c) in (("1", (H0, C0)), ("2", (H1, C1)), ("3", (H2, C2))):
        rsum = np.kron(eye_tb, np.ones((1, h), np.float32))      # (tb, tb*h)
        g = np.tile(np.eye(c, dtype=np.float32), (h, 1))         # (w*c, c)
        pieces.append((f"rsum{tag}", rsum))
        pieces.append((f"rb{tag}", np.ascontiguousarray(rsum.T)))
        pieces.append((f"g{tag}", g))
        pieces.append((f"gt{tag}", np.ascontiguousarray(g.T)))

    wslab, layout = _pack_rows(pieces)

    biases = np.zeros((8, LANES), np.float32)                    # 8-row padded
    biases[0] = np.tile(b0, H0)
    biases[1] = np.tile(b1 + b1s, H1)
    biases[2] = np.tile(b2 + b2s, H2)

    return (jnp.asarray(wslab, jnp.bfloat16),
            jnp.asarray(sel0cat, jnp.bfloat16),
            jnp.asarray(biases, jnp.float32),
            layout)


# ----------------------------- Pallas kernel -------------------------------

def _make_kernel(layout, tb):
    bf16, f32 = jnp.bfloat16, jnp.float32

    def w(ref, name):
        off, r, c = layout[name]
        return ref[off:off + r, :c]          # static slice -> free view + load

    def inst_norm_relu(a, w_ref, tag, inv_count):
        """InstanceNorm2d(affine=False, eps=1e-5) + ReLU on a (tb*H, W*C) slab."""
        rsum = w(w_ref, "rsum" + tag)                    # (tb, tb*H)  bf16 0/1
        rb = w(w_ref, "rb" + tag).astype(f32)            # (tb*H, tb)
        g = w(w_ref, "g" + tag).astype(f32)              # (W*C, C)
        gt = w(w_ref, "gt" + tag).astype(f32)            # (C, W*C)
        a_bf = a.astype(bf16)
        # Independent per-sample row sums of a and a*a (single-pass bf16 MXU).
        s1 = jnp.dot(rsum, a_bf, preferred_element_type=f32)                # (tb, W*C)
        s2 = jnp.dot(rsum, (a * a).astype(bf16), preferred_element_type=f32)
        # Tiny per-channel reductions/broadcasts stay f32 (negligible MACs,
        # protects the E[x^2] - mean^2 cancellation).
        mean = jnp.dot(s1, g, preferred_element_type=f32) * inv_count       # (tb, C)
        ex2 = jnp.dot(s2, g, preferred_element_type=f32) * inv_count
        var = jnp.maximum(ex2 - mean * mean, 0.0)
        inv = jax.lax.rsqrt(var + EPS)                                       # EUP
        scale = jnp.dot(rb, jnp.dot(inv, gt, preferred_element_type=f32),
                        preferred_element_type=f32)                          # (tb*H, W*C)
        shift = jnp.dot(rb, jnp.dot(-mean * inv, gt, preferred_element_type=f32),
                        preferred_element_type=f32)
        return jnp.maximum(a * scale + shift, 0.0)

    def tiny_block(a_prev, h, w_ref, b_row, tag):
        """IN+ReLU'd `h` -> 3x3/s2 conv, plus 1x1/s2 shortcut on `a_prev`.

        3 kernel-row taps and the shortcut are gathered, lane-concatenated at
        128-aligned offsets, and applied with ONE fused K=512 band matmul.
        """
        h_bf = h.astype(bf16)
        ap_bf = a_prev.astype(bf16)
        parts = [jnp.dot(w(w_ref, f"sel{tag}_{dy}"), h_bf, preferred_element_type=f32)
                 for dy in range(KERNEL_SIZE)]
        parts.append(jnp.dot(w(w_ref, "sels" + tag), ap_bf, preferred_element_type=f32))
        rows = jnp.concatenate(parts, axis=-1).astype(bf16)   # (tb*Hout, 4*128)
        return jnp.dot(rows, w(w_ref, "band" + tag),
                       preferred_element_type=f32) + b_row

    def kernel(x_ref, w_ref, sel0_ref, b_ref, out_ref, skip0_ref, skip1_ref):
        x_bf = x_ref[...].astype(bf16)                        # (tb*16, 16)

        # --- block 0: 7x7/s1/p3 conv.  7 independent K=16 width matmuls,
        #     then one fat K=7*tb*16 row-gather-and-sum matmul. -------------
        ys = [jnp.dot(x_bf, w(w_ref, f"wband0_{dy}"),
                      preferred_element_type=f32).astype(bf16)
              for dy in range(K0)]
        ycat = jnp.concatenate(ys, axis=0)                    # (7*tb*16, 128) bf16
        a0 = jnp.dot(sel0_ref[...], ycat,
                     preferred_element_type=f32) + b_ref[0:1, :]
        skip0_ref[...] = a0                                   # skip #0 == block-1 input

        # --- tiny block 1 ---------------------------------------------------
        h1 = inst_norm_relu(a0, w_ref, "1", 1.0 / (H0 * H0))
        a1 = tiny_block(a0, h1, w_ref, b_ref[1:2, :], "1")
        skip1_ref[...] = a1                                   # skip #1 == block-2 input

        # --- tiny block 2 ---------------------------------------------------
        h2 = inst_norm_relu(a1, w_ref, "2", 1.0 / (H1 * H1))
        a2 = tiny_block(a1, h2, w_ref, b_ref[2:3, :], "2")

        # --- final InstanceNorm + ReLU --------------------------------------
        # TODO(synk): dropout=0.0 in this config, so the nn.Dropout layers are identity.
        out_ref[...] = inst_norm_relu(a2, w_ref, "3", 1.0 / (H2 * H2))

    return kernel


# ------------------------------ forward pass --------------------------------

def build_encoder(params, tb=TB_DEFAULT):
    """Returns a jitted forward(x) mirroring encoder.forward -> (out, skips)."""
    assert (tb * H2) % 8 == 0, "tb must keep all row blocks 8-aligned"
    wslab, sel0cat, biases, layout = prepare_encoder_constants(params, tb)
    kernel = _make_kernel(layout, tb)

    @jax.jit
    def forward(x):
        b = x.shape[0]
        nblk = -(-b // tb)
        bp = nblk * tb
        x2 = x.reshape(b, IN_HW, IN_HW).reshape(b * IN_HW, IN_HW)
        if bp != b:                                   # pad batch to a TB multiple
            x2 = jnp.pad(x2, ((0, (bp - b) * IN_HW), (0, 0)))

        def full(a):
            return pl.BlockSpec(a.shape, lambda i: (0,) * a.ndim)

        out, skip0, skip1 = pl.pallas_call(
            kernel,
            out_shape=(
                jax.ShapeDtypeStruct((bp * H2, LANES), jnp.float32),   # final out
                jax.ShapeDtypeStruct((bp * H0, LANES), jnp.float32),   # skip 0
                jax.ShapeDtypeStruct((bp * H1, LANES), jnp.float32),   # skip 1
            ),
            grid=(nblk,),
            in_specs=[pl.BlockSpec((tb * IN_HW, IN_HW), lambda i: (i, 0)),
                      full(wslab), full(sel0cat), full(biases)],
            out_specs=(pl.BlockSpec((tb * H2, LANES), lambda i: (i, 0)),
                       pl.BlockSpec((tb * H0, LANES), lambda i: (i, 0)),
                       pl.BlockSpec((tb * H1, LANES), lambda i: (i, 0))),
            # On v7x use (pltpu.CORE_PARALLEL,) with >=2 batch blocks to split
            # across both TensorCores; "parallel" kept for v5e/v6e portability.
            compiler_params=pltpu.CompilerParams(
                dimension_semantics=("parallel",)),
        )(x2, wslab, sel0cat, biases)

        # Lane-dense (H, W*C) kernel layout -> PyTorch NCHW (wrapper plumbing).
        # TODO(synk): elide these transposes if the decoder accepts NHWC/packed skips.
        def to_nchw(t, h, c):
            return t.reshape(bp, h, h, c)[:b].transpose(0, 3, 1, 2)

        return (to_nchw(out, H2, C2),
                [to_nchw(skip0, H0, C0), to_nchw(skip1, H1, C1)])

    return forward


# --------------------------- pure-JAX reference -----------------------------

def _reference_forward(params, x):
    """XLA reference (same bf16-rounded weights) used only for validation."""
    def conv(v, wgt, b, stride, pad):
        wgt = jnp.asarray(_round_bf16(wgt))
        y = jax.lax.conv_general_dilated(
            v, wgt, window_strides=(stride, stride),
            padding=((pad, pad), (pad, pad)),
            dimension_numbers=("NCHW", "OIHW", "NCHW"))
        return y + jnp.asarray(b).reshape(1, -1, 1, 1)

    def inr(v):
        mean = jnp.mean(v, axis=(2, 3), keepdims=True)
        var = jnp.mean(jnp.square(v - mean), axis=(2, 3), keepdims=True)
        return jnp.maximum((v - mean) * jax.lax.rsqrt(var + EPS), 0.0)

    a0 = conv(x, params["conv0_w"], params["conv0_b"], 1, 3)
    h1 = inr(a0)
    a1 = (conv(h1, params["block1_conv_w"], params["block1_conv_b"], 2, 1)
          + conv(a0, params["block1_sc_w"], params["block1_sc_b"], 2, 0))
    h2 = inr(a1)
    a2 = (conv(h2, params["block2_conv_w"], params["block2_conv_b"], 2, 1)
          + conv(a1, params["block2_sc_w"], params["block2_sc_b"], 2, 0))
    return inr(a2), [a0, a1]


# ---------------------------------- main -------------------------------------

if __name__ == "__main__":
    key = jax.random.PRNGKey(0)
    k_param, k_x = jax.random.split(key)
    params = init_encoder_params(k_param)
    fwd = build_encoder(params, tb=TB_DEFAULT)

    # batch=16 (2 batch blocks of TB=8), NCHW input per input_shape=(1,16,16).
    batch = 16
    x = jax.random.normal(k_x, (batch, IN_CHANNELS, IN_HW, IN_HW), jnp.float32)

    out, skips = fwd(x)
    out = jax.block_until_ready(out)
    skips = [jax.block_until_ready(s) for s in skips]

    assert out.shape == (batch, C2, H2, H2), out.shape
    assert len(skips) == len(NUM_CHANNELS_LIST) - 1
    assert skips[0].shape == (batch, C0, H0, H0)
    assert skips[1].shape == (batch, C1, H1, H1)

    # Validate against the pure-JAX reference (loose tolerance covers bf16
    # operand rounding on the MXU inside the fused kernel).
    ref_out, ref_skips = _reference_forward(params, x)
    np.testing.assert_allclose(np.asarray(out), np.asarray(ref_out),
                               atol=5e-2, rtol=5e-2)
    np.testing.assert_allclose(np.asarray(skips[0]), np.asarray(ref_skips[0]),
                               atol=5e-2, rtol=5e-2)
    np.testing.assert_allclose(np.asarray(skips[1]), np.asarray(ref_skips[1]),
                               atol=5e-2, rtol=5e-2)

    print("KERNEL_OK")
</pallas_src>

<mosaic_0001>
module attributes {stable_mosaic.version = 11 : i64} {
  func.func @kernel(%arg0: i32, %arg1: memref<128x16xf32, #tpu.memory_space<vmem>>, %arg2: memref<2208x128xbf16, #tpu.memory_space<vmem>>, %arg3: memref<128x896xbf16, #tpu.memory_space<vmem>>, %arg4: memref<8x128xf32, #tpu.memory_space<vmem>>, %arg5: memref<32x128xf32, #tpu.memory_space<vmem>>, %arg6: memref<128x128xf32, #tpu.memory_space<vmem>>, %arg7: memref<64x128xf32, #tpu.memory_space<vmem>>) attributes {dimension_semantics = [#tpu.dimension_semantics<parallel>], iteration_bounds = array<i64: 2>, scalar_prefetch = 0 : i64, scratch_operands = 0 : i64, tpu.core_type = #tpu.core_type<tc>, window_params = [{transform_indices = @transform_0, window_bounds = array<i64: 128, 16>}, {pipeline_mode = #tpu.pipeline_mode<synchronous>, transform_indices = @transform_1, window_bounds = array<i64: 2208, 128>}, {pipeline_mode = #tpu.pipeline_mode<synchronous>, transform_indices = @transform_2, window_bounds = array<i64: 128, 896>}, {pipeline_mode = #tpu.pipeline_mode<synchronous>, transform_indices = @transform_3, window_bounds = array<i64: 8, 128>}, {transform_indices = @transform_4, window_bounds = array<i64: 32, 128>}, {transform_indices = @transform_5, window_bounds = array<i64: 128, 128>}, {transform_indices = @transform_6, window_bounds = array<i64: 64, 128>}]} {
    %c0 = arith.constant 0 : index
    %c0_0 = arith.constant 0 : index
    %0 = vector.load %arg1[%c0, %c0_0] : memref<128x16xf32, #tpu.memory_space<vmem>>, vector<128x16xf32>
    %1 = arith.truncf %0 : vector<128x16xf32> to vector<128x16xbf16>
    %c0_1 = arith.constant 0 : index
    %c0_2 = arith.constant 0 : index
    %2 = vector.load %arg2[%c0_1, %c0_2] : memref<2208x128xbf16, #tpu.memory_space<vmem>>, vector<16x128xbf16>
    %cst = arith.constant dense<0.000000e+00> : vector<128x128xf32>
    %3 = tpu.matmul %1, %2, %cst {dimension_numbers = #tpu.dot_dimension_numbers<[1], [0], [0], [1], [0, 0, 1, 1], [], []>} : vector<128x16xbf16>, vector<16x128xbf16>, vector<128x128xf32> -> vector<128x128xf32>
    %4 = arith.truncf %3 : vector<128x128xf32> to vector<128x128xbf16>
    %c16 = arith.constant 16 : index
    %c0_3 = arith.constant 0 : index
    %5 = vector.load %arg2[%c16, %c0_3] : memref<2208x128xbf16, #tpu.memory_space<vmem>>, vector<16x128xbf16>
    %cst_4 = arith.constant dense<0.000000e+00> : vector<128x128xf32>
    %6 = tpu.matmul %1, %5, %cst_4 {dimension_numbers = #tpu.dot_dimension_numbers<[1], [0], [0], [1], [0, 0, 1, 1], [], []>} : vector<128x16xbf16>, vector<16x128xbf16>, vector<128x128xf32> -> vector<128x128xf32>
    %7 = arith.truncf %6 : vector<128x128xf32> to vector<128x128xbf16>
    %c32 = arith.constant 32 : index
    %c0_5 = arith.constant 0 : index
    %8 = vector.load %arg2[%c32, %c0_5] : memref<2208x128xbf16, #tpu.memory_space<vmem>>, vector<16x128xbf16>
    %cst_6 = arith.constant dense<0.000000e+00> : vector<128x128xf32>
    %9 = tpu.matmul %1, %8, %cst_6 {dimension_numbers = #tpu.dot_dimension_numbers<[1], [0], [0], [1], [0, 0, 1, 1], [], []>} : vector<128x16xbf16>, vector<16x128xbf16>, vector<128x128xf32> -> vector<128x128xf32>
    %10 = arith.truncf %9 : vector<128x128xf32> to vector<128x128xbf16>
    %c48 = arith.constant 48 : index
    %c0_7 = arith.constant 0 : index
    %11 = vector.load %arg2[%c48, %c0_7] : memref<2208x128xbf16, #tpu.memory_space<vmem>>, vector<16x128xbf16>
    %cst_8 = arith.constant dense<0.000000e+00> : vector<128x128xf32>
    %12 = tpu.matmul %1, %11, %cst_8 {dimension_numbers = #tpu.dot_dimension_numbers<[1], [0], [0], [1], [0, 0, 1, 1], [], []>} : vector<128x16xbf16>, vector<16x128xbf16>, vector<128x128xf32> -> vector<128x128xf32>
    %13 = arith.truncf %12 : vector<128x128xf32> to vector<128x128xbf16>
    %c64 = arith.constant 64 : index
    %c0_9 = arith.constant 0 : index
    %14 = vector.load %arg2[%c64, %c0_9] : memref<2208x128xbf16, #tpu.memory_space<vmem>>, vector<16x128xbf16>
    %cst_10 = arith.constant dense<0.000000e+00> : vector<128x128xf32>
    %15 = tpu.matmul %1, %14, %cst_10 {dimension_numbers = #tpu.dot_dimension_numbers<[1], [0], [0], [1], [0, 0, 1, 1], [], []>} : vector<128x16xbf16>, vector<16x128xbf16>, vector<128x128xf32> -> vector<128x128xf32>
    %16 = arith.truncf %15 : vector<128x128xf32> to vector<128x128xbf16>
    %c80 = arith.constant 80 : index
    %c0_11 = arith.constant 0 : index
    %17 = vector.load %arg2[%c80, %c0_11] : memref<2208x128xbf16, #tpu.memory_space<vmem>>, vector<16x128xbf16>
    %cst_12 = arith.constant dense<0.000000e+00> : vector<128x128xf32>
    %18 = tpu.matmul %1, %17, %cst_12 {dimension_numbers = #tpu.dot_dimension_numbers<[1], [0], [0], [1], [0, 0, 1, 1], [], []>} : vector<128x16xbf16>, vector<16x128xbf16>, vector<128x128xf32> -> vector<128x128xf32>
    %19 = arith.truncf %18 : vector<128x128xf32> to vector<128x128xbf16>
    %c96 = arith.constant 96 : index
    %c0_13 = arith.constant 0 : index
    %20 = vector.load %arg2[%c96, %c0_13] : memref<2208x128xbf16, #tpu.memory_space<vmem>>, vector<16x128xbf16>
    %cst_14 = arith.constant dense<0.000000e+00> : vector<128x128xf32>
    %21 = tpu.matmul %1, %20, %cst_14 {dimension_numbers = #tpu.dot_dimension_numbers<[1], [0], [0], [1], [0, 0, 1, 1], [], []>} : vector<128x16xbf16>, vector<16x128xbf16>, vector<128x128xf32> -> vector<128x128xf32>
    %22 = arith.truncf %21 : vector<128x128xf32> to vector<128x128xbf16>
    %23 = tpu.concatenate %4, %7, %10, %13, %16, %19, %22 in 0 : vector<128x128xbf16>, vector<128x128xbf16>, vector<128x128xbf16>, vector<128x128xbf16>, vector<128x128xbf16>, vector<128x128xbf16>, vector<128x128xbf16> -> vector<896x128xbf16>
    %c0_15 = arith.constant 0 : index
    %c0_16 = arith.constant 0 : index
    %24 = vector.load %arg3[%c0_15, %c0_16] : memref<128x896xbf16, #tpu.memory_space<vmem>>, vector<128x896xbf16>
    %cst_17 = arith.constant dense<0.000000e+00> : vector<128x128xf32>
    %25 = tpu.matmul %24, %23, %cst_17 {dimension_numbers = #tpu.dot_dimension_numbers<[1], [0], [0], [1], [0, 0, 1, 1], [], []>} : vector<128x896xbf16>, vector<896x128xbf16>, vector<128x128xf32> -> vector<128x128xf32>
    %c0_18 = arith.constant 0 : index
    %c0_19 = arith.constant 0 : index
    %26 = vector.load %arg4[%c0_18, %c0_19] : memref<8x128xf32, #tpu.memory_space<vmem>>, vector<1x128xf32>
    %27 = vector.broadcast %26 : vector<1x128xf32> to vector<128x128xf32>
    %28 = arith.addf %25, %27 : vector<128x128xf32>
    %c0_20 = arith.constant 0 : index
    %c0_21 = arith.constant 0 : index
    %29 = vector.load %arg6[%c0_20, %c0_21] : memref<128x128xf32, #tpu.memory_space<vmem>>, vector<128x128xf32>
    tpu.vector_store %arg6[%c0_20, %c0_21], %28 {strides = array<i32>} : memref<128x128xf32, #tpu.memory_space<vmem>>, vector<128x128xf32>,
    %c1520 = arith.constant 1520 : index
    %c0_22 = arith.constant 0 : index
    %30 = vector.load %arg2[%c1520, %c0_22] : memref<2208x128xbf16, #tpu.memory_space<vmem>>, vector<8x128xbf16>
    %c1528 = arith.constant 1528 : index
    %c0_23 = arith.constant 0 : index
    %31 = vector.load %arg2[%c1528, %c0_23] : memref<2208x128xbf16, #tpu.memory_space<vmem>>, vector<128x8xbf16>
    %32 = arith.extf %31 : vector<128x8xbf16> to vector<128x8xf32>
    %c1656 = arith.constant 1656 : index
    %c0_24 = arith.constant 0 : index
    %33 = vector.load %arg2[%c1656, %c0_24] : memref<2208x128xbf16, #tpu.memory_space<vmem>>, vector<128x8xbf16>
    %34 = arith.extf %33 : vector<128x8xbf16> to vector<128x8xf32>
    %c1784 = arith.constant 1784 : index
    %c0_25 = arith.constant 0 : index
    %35 = vector.load %arg2[%c1784, %c0_25] : memref<2208x128xbf16, #tpu.memory_space<vmem>>, vector<8x128xbf16>
    %36 = arith.extf %35 : vector<8x128xbf16> to vector<8x128xf32>
    %37 = arith.truncf %28 : vector<128x128xf32> to vector<128x128xbf16>
    %cst_26 = arith.constant dense<0.000000e+00> : vector<8x128xf32>
    %38 = tpu.matmul %30, %37, %cst_26 {dimension_numbers = #tpu.dot_dimension_numbers<[1], [0], [0], [1], [0, 0, 1, 1], [], []>} : vector<8x128xbf16>, vector<128x128xbf16>, vector<8x128xf32> -> vector<8x128xf32>
    %39 = arith.mulf %28, %28 : vector<128x128xf32>
    %40 = arith.truncf %39 : vector<128x128xf32> to vector<128x128xbf16>
    %cst_27 = arith.constant dense<0.000000e+00> : vector<8x128xf32>
    %41 = tpu.matmul %30, %40, %cst_27 {dimension_numbers = #tpu.dot_dimension_numbers<[1], [0], [0], [1], [0, 0, 1, 1], [], []>} : vector<8x128xbf16>, vector<128x128xbf16>, vector<8x128xf32> -> vector<8x128xf32>
    %cst_28 = arith.constant dense<0.000000e+00> : vector<8x8xf32>
    %42 = tpu.matmul %38, %34, %cst_28 {dimension_numbers = #tpu.dot_dimension_numbers<[1], [0], [0], [1], [0, 0, 1, 1], [], []>} : vector<8x128xf32>, vector<128x8xf32>, vector<8x8xf32> -> vector<8x8xf32>
    %cst_29 = arith.constant 3.906250e-03 : f32
    %43 = vector.broadcast %cst_29 : f32 to vector<8x8xf32>
    %44 = arith.mulf %42, %43 : vector<8x8xf32>
    %cst_30 = arith.constant dense<0.000000e+00> : vector<8x8xf32>
    %45 = tpu.matmul %41, %34, %cst_30 {dimension_numbers = #tpu.dot_dimension_numbers<[1], [0], [0], [1], [0, 0, 1, 1], [], []>} : vector<8x128xf32>, vector<128x8xf32>, vector<8x8xf32> -> vector<8x8xf32>
    %cst_31 = arith.constant 3.906250e-03 : f32
    %46 = vector.broadcast %cst_31 : f32 to vector<8x8xf32>
    %47 = arith.mulf %45, %46 : vector<8x8xf32>
    %48 = arith.mulf %44, %44 : vector<8x8xf32>
    %49 = arith.subf %47, %48 : vector<8x8xf32>
    %cst_32 = arith.constant 0.000000e+00 : f32
    %50 = vector.broadcast %cst_32 : f32 to vector<8x8xf32>
    %51 = arith.maximumf %49, %50 : vector<8x8xf32>
    %cst_33 = arith.constant 9.99999974E-6 : f32
    %52 = vector.broadcast %cst_33 : f32 to vector<8x8xf32>
    %53 = arith.addf %51, %52 : vector<8x8xf32>
    %54 = math.rsqrt %53 : vector<8x8xf32>
    %cst_34 = arith.constant dense<0.000000e+00> : vector<8x128xf32>
    %55 = tpu.matmul %54, %36, %cst_34 {dimension_numbers = #tpu.dot_dimension_numbers<[1], [0], [0], [1], [0, 0, 1, 1], [], []>} : vector<8x8xf32>, vector<8x128xf32>, vector<8x128xf32> -> vector<8x128xf32>
    %cst_35 = arith.constant dense<0.000000e+00> : vector<128x128xf32>
    %56 = tpu.matmul %32, %55, %cst_35 {dimension_numbers = #tpu.dot_dimension_numbers<[1], [0], [0], [1], [0, 0, 1, 1], [], []>} : vector<128x8xf32>, vector<8x128xf32>, vector<128x128xf32> -> vector<128x128xf32>
    %cst_36 = arith.constant 0.000000e+00 : f32
    %57 = vector.broadcast %cst_36 : f32 to vector<8x8xf32>
    %58 = arith.subf %57, %44 : vector<8x8xf32>
    %59 = arith.mulf %58, %54 : vector<8x8xf32>
    %cst_37 = arith.constant dense<0.000000e+00> : vector<8x128xf32>
    %60 = tpu.matmul %59, %36, %cst_37 {dimension_numbers = #tpu.dot_dimension_numbers<[1], [0], [0], [1], [0, 0, 1, 1], [], []>} : vector<8x8xf32>, vector<8x128xf32>, vector<8x128xf32> -> vector<8x128xf32>
    %cst_38 = arith.constant dense<0.000000e+00> : vector<128x128xf32>
    %61 = tpu.matmul %32, %60, %cst_38 {dimension_numbers = #tpu.dot_dimension_numbers<[1], [0], [0], [1], [0, 0, 1, 1], [], []>} : vector<128x8xf32>, vector<8x128xf32>, vector<128x128xf32> -> vector<128x128xf32>
    %62 = arith.mulf %28, %56 : vector<128x128xf32>
    %63 = arith.addf %62, %61 : vector<128x128xf32>
    %cst_39 = arith.constant 0.000000e+00 : f32
    %64 = vector.broadcast %cst_39 : f32 to vector<128x128xf32>
    %65 = arith.maximumf %63, %64 : vector<128x128xf32>
    %c1 = arith.constant 1 : index
    %c0_40 = arith.constant 0 : index
    %66 = vector.load %arg4[%c1, %c0_40] : memref<8x128xf32, #tpu.memory_space<vmem>>, vector<1x128xf32>
    %67 = arith.truncf %65 : vector<128x128xf32> to vector<128x128xbf16>
    %68 = arith.truncf %28 : vector<128x128xf32> to vector<128x128xbf16>
    %c112 = arith.constant 112 : index
    %c0_41 = arith.constant 0 : index
    %69 = vector.load %arg2[%c112, %c0_41] : memref<2208x128xbf16, #tpu.memory_space<vmem>>, vector<64x128xbf16>
    %cst_42 = arith.constant dense<0.000000e+00> : vector<64x128xf32>
    %70 = tpu.matmul %69, %67, %cst_42 {dimension_numbers = #tpu.dot_dimension_numbers<[1], [0], [0], [1], [0, 0, 1, 1], [], []>} : vector<64x128xbf16>, vector<128x128xbf16>, vector<64x128xf32> -> vector<64x128xf32>
    %c176 = arith.constant 176 : index
    %c0_43 = arith.constant 0 : index
    %71 = vector.load %arg2[%c176, %c0_43] : memref<2208x128xbf16, #tpu.memory_space<vmem>>, vector<64x128xbf16>
    %cst_44 = arith.constant dense<0.000000e+00> : vector<64x128xf32>
    %72 = tpu.matmul %71, %67, %cst_44 {dimension_numbers = #tpu.dot_dimension_numbers<[1], [0], [0], [1], [0, 0, 1, 1], [], []>} : vector<64x128xbf16>, vector<128x128xbf16>, vector<64x128xf32> -> vector<64x128xf32>
    %c240 = arith.constant 240 : index
    %c0_45 = arith.constant 0 : index
    %73 = vector.load %arg2[%c240, %c0_45] : memref<2208x128xbf16, #tpu.memory_space<vmem>>, vector<64x128xbf16>
    %cst_46 = arith.constant dense<0.000000e+00> : vector<64x128xf32>
    %74 = tpu.matmul %73, %67, %cst_46 {dimension_numbers = #tpu.dot_dimension_numbers<[1], [0], [0], [1], [0, 0, 1, 1], [], []>} : vector<64x128xbf16>, vector<128x128xbf16>, vector<64x128xf32> -> vector<64x128xf32>
    %c304 = arith.constant 304 : index
    %c0_47 = arith.constant 0 : index
    %75 = vector.load %arg2[%c304, %c0_47] : memref<2208x128xbf16, #tpu.memory_space<vmem>>, vector<64x128xbf16>
    %cst_48 = arith.constant dense<0.000000e+00> : vector<64x128xf32>
    %76 = tpu.matmul %75, %68, %cst_48 {dimension_numbers = #tpu.dot_dimension_numbers<[1], [0], [0], [1], [0, 0, 1, 1], [], []>} : vector<64x128xbf16>, vector<128x128xbf16>, vector<64x128xf32> -> vector<64x128xf32>
    %77 = tpu.concatenate %70, %72, %74, %76 in 1 : vector<64x128xf32>, vector<64x128xf32>, vector<64x128xf32>, vector<64x128xf32> -> vector<64x512xf32>
    %78 = arith.truncf %77 : vector<64x512xf32> to vector<64x512xbf16>
    %c368 = arith.constant 368 : index
    %c0_49 = arith.constant 0 : index
    %79 = vector.load %arg2[%c368, %c0_49] : memref<2208x128xbf16, #tpu.memory_space<vmem>>, vector<512x128xbf16>
    %cst_50 = arith.constant dense<0.000000e+00> : vector<64x128xf32>
    %80 = tpu.matmul %78, %79, %cst_50 {dimension_numbers = #tpu.dot_dimension_numbers<[1], [0], [0], [1], [0, 0, 1, 1], [], []>} : vector<64x512xbf16>, vector<512x128xbf16>, vector<64x128xf32> -> vector<64x128xf32>
    %81 = vector.broadcast %66 : vector<1x128xf32> to vector<64x128xf32>
    %82 = arith.addf %80, %81 : vector<64x128xf32>
    %c0_51 = arith.constant 0 : index
    %c0_52 = arith.constant 0 : index
    %83 = vector.load %arg7[%c0_51, %c0_52] : memref<64x128xf32, #tpu.memory_space<vmem>>, vector<64x128xf32>
    tpu.vector_store %arg7[%c0_51, %c0_52], %82 {strides = array<i32>} : memref<64x128xf32, #tpu.memory_space<vmem>>, vector<64x128xf32>,
    %c1792 = arith.constant 1792 : index
    %c0_53 = arith.constant 0 : index
    %84 = vector.load %arg2[%c1792, %c0_53] : memref<2208x128xbf16, #tpu.memory_space<vmem>>, vector<8x64xbf16>
    %c1800 = arith.constant 1800 : index
    %c0_54 = arith.constant 0 : index
    %85 = vector.load %arg2[%c1800, %c0_54] : memref<2208x128xbf16, #tpu.memory_space<vmem>>, vector<64x8xbf16>
    %86 = arith.extf %85 : vector<64x8xbf16> to vector<64x8xf32>
    %c1864 = arith.constant 1864 : index
    %c0_55 = arith.constant 0 : index
    %87 = vector.load %arg2[%c1864, %c0_55] : memref<2208x128xbf16, #tpu.memory_space<vmem>>, vector<128x16xbf16>
    %88 = arith.extf %87 : vector<128x16xbf16> to vector<128x16xf32>
    %c1992 = arith.constant 1992 : index
    %c0_56 = arith.constant 0 : index
    %89 = vector.load %arg2[%c1992, %c0_56] : memref<2208x128xbf16, #tpu.memory_space<vmem>>, vector<16x128xbf16>
    %90 = arith.extf %89 : vector<16x128xbf16> to vector<16x128xf32>
    %91 = arith.truncf %82 : vector<64x128xf32> to vector<64x128xbf16>
    %cst_57 = arith.constant dense<0.000000e+00> : vector<8x128xf32>
    %92 = tpu.matmul %84, %91, %cst_57 {dimension_numbers = #tpu.dot_dimension_numbers<[1], [0], [0], [1], [0, 0, 1, 1], [], []>} : vector<8x64xbf16>, vector<64x128xbf16>, vector<8x128xf32> -> vector<8x128xf32>
    %93 = arith.mulf %82, %82 : vector<64x128xf32>
    %94 = arith.truncf %93 : vector<64x128xf32> to vector<64x128xbf16>
    %cst_58 = arith.constant dense<0.000000e+00> : vector<8x128xf32>
    %95 = tpu.matmul %84, %94, %cst_58 {dimension_numbers = #tpu.dot_dimension_numbers<[1], [0], [0], [1], [0, 0, 1, 1], [], []>} : vector<8x64xbf16>, vector<64x128xbf16>, vector<8x128xf32> -> vector<8x128xf32>
    %cst_59 = arith.constant dense<0.000000e+00> : vector<8x16xf32>
    %96 = tpu.matmul %92, %88, %cst_59 {dimension_numbers = #tpu.dot_dimension_numbers<[1], [0], [0], [1], [0, 0, 1, 1], [], []>} : vector<8x128xf32>, vector<128x16xf32>, vector<8x16xf32> -> vector<8x16xf32>
    %cst_60 = arith.constant 1.562500e-02 : f32
    %97 = vector.broadcast %cst_60 : f32 to vector<8x16xf32>
    %98 = arith.mulf %96, %97 : vector<8x16xf32>
    %cst_61 = arith.constant dense<0.000000e+00> : vector<8x16xf32>
    %99 = tpu.matmul %95, %88, %cst_61 {dimension_numbers = #tpu.dot_dimension_numbers<[1], [0], [0], [1], [0, 0, 1, 1], [], []>} : vector<8x128xf32>, vector<128x16xf32>, vector<8x16xf32> -> vector<8x16xf32>
    %cst_62 = arith.constant 1.562500e-02 : f32
    %100 = vector.broadcast %cst_62 : f32 to vector<8x16xf32>
    %101 = arith.mulf %99, %100 : vector<8x16xf32>
    %102 = arith.mulf %98, %98 : vector<8x16xf32>
    %103 = arith.subf %101, %102 : vector<8x16xf32>
    %cst_63 = arith.constant 0.000000e+00 : f32
    %104 = vector.broadcast %cst_63 : f32 to vector<8x16xf32>
    %105 = arith.maximumf %103, %104 : vector<8x16xf32>
    %cst_64 = arith.constant 9.99999974E-6 : f32
    %106 = vector.broadcast %cst_64 : f32 to vector<8x16xf32>
    %107 = arith.addf %105, %106 : vector<8x16xf32>
    %108 = math.rsqrt %107 : vector<8x16xf32>
    %cst_65 = arith.constant dense<0.000000e+00> : vector<8x128xf32>
    %109 = tpu.matmul %108, %90, %cst_65 {dimension_numbers = #tpu.dot_dimension_numbers<[1], [0], [0], [1], [0, 0, 1, 1], [], []>} : vector<8x16xf32>, vector<16x128xf32>, vector<8x128xf32> -> vector<8x128xf32>
    %cst_66 = arith.constant dense<0.000000e+00> : vector<64x128xf32>
    %110 = tpu.matmul %86, %109, %cst_66 {dimension_numbers = #tpu.dot_dimension_numbers<[1], [0], [0], [1], [0, 0, 1, 1], [], []>} : vector<64x8xf32>, vector<8x128xf32>, vector<64x128xf32> -> vector<64x128xf32>
    %cst_67 = arith.constant 0.000000e+00 : f32
    %111 = vector.broadcast %cst_67 : f32 to vector<8x16xf32>
    %112 = arith.subf %111, %98 : vector<8x16xf32>
    %113 = arith.mulf %112, %108 : vector<8x16xf32>
    %cst_68 = arith.constant dense<0.000000e+00> : vector<8x128xf32>
    %114 = tpu.matmul %113, %90, %cst_68 {dimension_numbers = #tpu.dot_dimension_numbers<[1], [0], [0], [1], [0, 0, 1, 1], [], []>} : vector<8x16xf32>, vector<16x128xf32>, vector<8x128xf32> -> vector<8x128xf32>
    %cst_69 = arith.constant dense<0.000000e+00> : vector<64x128xf32>
    %115 = tpu.matmul %86, %114, %cst_69 {dimension_numbers = #tpu.dot_dimension_numbers<[1], [0], [0], [1], [0, 0, 1, 1], [], []>} : vector<64x8xf32>, vector<8x128xf32>, vector<64x128xf32> -> vector<64x128xf32>
    %116 = arith.mulf %82, %110 : vector<64x128xf32>
    %117 = arith.addf %116, %115 : vector<64x128xf32>
    %cst_70 = arith.constant 0.000000e+00 : f32
    %118 = vector.broadcast %cst_70 : f32 to vector<64x128xf32>
    %119 = arith.maximumf %117, %118 : vector<64x128xf32>
    %c2 = arith.constant 2 : index
    %c0_71 = arith.constant 0 : index
    %120 = vector.load %arg4[%c2, %c0_71] : memref<8x128xf32, #tpu.memory_space<vmem>>, vector<1x128xf32>
    %121 = arith.truncf %119 : vector<64x128xf32> to vector<64x128xbf16>
    %122 = arith.truncf %82 : vector<64x128xf32> to vector<64x128xbf16>
    %c880 = arith.constant 880 : index
    %c0_72 = arith.constant 0 : index
    %123 = vector.load %arg2[%c880, %c0_72] : memref<2208x128xbf16, #tpu.memory_space<vmem>>, vector<32x64xbf16>
    %cst_73 = arith.constant dense<0.000000e+00> : vector<32x128xf32>
    %124 = tpu.matmul %123, %121, %cst_73 {dimension_numbers = #tpu.dot_dimension_numbers<[1], [0], [0], [1], [0, 0, 1, 1], [], []>} : vector<32x64xbf16>, vector<64x128xbf16>, vector<32x128xf32> -> vector<32x128xf32>
    %c912 = arith.constant 912 : index
    %c0_74 = arith.constant 0 : index
    %125 = vector.load %arg2[%c912, %c0_74] : memref<2208x128xbf16, #tpu.memory_space<vmem>>, vector<32x64xbf16>
    %cst_75 = arith.constant dense<0.000000e+00> : vector<32x128xf32>
    %126 = tpu.matmul %125, %121, %cst_75 {dimension_numbers = #tpu.dot_dimension_numbers<[1], [0], [0], [1], [0, 0, 1, 1], [], []>} : vector<32x64xbf16>, vector<64x128xbf16>, vector<32x128xf32> -> vector<32x128xf32>
    %c944 = arith.constant 944 : index
    %c0_76 = arith.constant 0 : index
    %127 = vector.load %arg2[%c944, %c0_76] : memref<2208x128xbf16, #tpu.memory_space<vmem>>, vector<32x64xbf16>
    %cst_77 = arith.constant dense<0.000000e+00> : vector<32x128xf32>
    %128 = tpu.matmul %127, %121, %cst_77 {dimension_numbers = #tpu.dot_dimension_numbers<[1], [0], [0], [1], [0, 0, 1, 1], [], []>} : vector<32x64xbf16>, vector<64x128xbf16>, vector<32x128xf32> -> vector<32x128xf32>
    %c976 = arith.constant 976 : index
    %c0_78 = arith.constant 0 : index
    %129 = vector.load %arg2[%c976, %c0_78] : memref<2208x128xbf16, #tpu.memory_space<vmem>>, vector<32x64xbf16>
    %cst_79 = arith.constant dense<0.000000e+00> : vector<32x128xf32>
    %130 = tpu.matmul %129, %122, %cst_79 {dimension_numbers = #tpu.dot_dimension_numbers<[1], [0], [0], [1], [0, 0, 1, 1], [], []>} : vector<32x64xbf16>, vector<64x128xbf16>, vector<32x128xf32> -> vector<32x128xf32>
    %131 = tpu.concatenate %124, %126, %128, %130 in 1 : vector<32x128xf32>, vector<32x128xf32>, vector<32x128xf32>, vector<32x128xf32> -> vector<32x512xf32>
    %132 = arith.truncf %131 : vector<32x512xf32> to vector<32x512xbf16>
    %c1008 = arith.constant 1008 : index
    %c0_80 = arith.constant 0 : index
    %133 = vector.load %arg2[%c1008, %c0_80] : memref<2208x128xbf16, #tpu.memory_space<vmem>>, vector<512x128xbf16>
    %cst_81 = arith.constant dense<0.000000e+00> : vector<32x128xf32>
    %134 = tpu.matmul %132, %133, %cst_81 {dimension_numbers = #tpu.dot_dimension_numbers<[1], [0], [0], [1], [0, 0, 1, 1], [], []>} : vector<32x512xbf16>, vector<512x128xbf16>, vector<32x128xf32> -> vector<32x128xf32>
    %135 = vector.broadcast %120 : vector<1x128xf32> to vector<32x128xf32>
    %136 = arith.addf %134, %135 : vector<32x128xf32>
    %c2008 = arith.constant 2008 : index
    %c0_82 = arith.constant 0 : index
    %137 = vector.load %arg2[%c2008, %c0_82] : memref<2208x128xbf16, #tpu.memory_space<vmem>>, vector<8x32xbf16>
    %c2016 = arith.constant 2016 : index
    %c0_83 = arith.constant 0 : index
    %138 = vector.load %arg2[%c2016, %c0_83] : memref<2208x128xbf16, #tpu.memory_space<vmem>>, vector<32x8xbf16>
    %139 = arith.extf %138 : vector<32x8xbf16> to vector<32x8xf32>
    %c2048 = arith.constant 2048 : index
    %c0_84 = arith.constant 0 : index
    %140 = vector.load %arg2[%c2048, %c0_84] : memref<2208x128xbf16, #tpu.memory_space<vmem>>, vector<128x32xbf16>
    %141 = arith.extf %140 : vector<128x32xbf16> to vector<128x32xf32>
    %c2176 = arith.constant 2176 : index
    %c0_85 = arith.constant 0 : index
    %142 = vector.load %arg2[%c2176, %c0_85] : memref<2208x128xbf16, #tpu.memory_space<vmem>>, vector<32x128xbf16>
    %143 = arith.extf %142 : vector<32x128xbf16> to vector<32x128xf32>
    %144 = arith.truncf %136 : vector<32x128xf32> to vector<32x128xbf16>
    %cst_86 = arith.constant dense<0.000000e+00> : vector<8x128xf32>
    %145 = tpu.matmul %137, %144, %cst_86 {dimension_numbers = #tpu.dot_dimension_numbers<[1], [0], [0], [1], [0, 0, 1, 1], [], []>} : vector<8x32xbf16>, vector<32x128xbf16>, vector<8x128xf32> -> vector<8x128xf32>
    %146 = arith.mulf %136, %136 : vector<32x128xf32>
    %147 = arith.truncf %146 : vector<32x128xf32> to vector<32x128xbf16>
    %cst_87 = arith.constant dense<0.000000e+00> : vector<8x128xf32>
    %148 = tpu.matmul %137, %147, %cst_87 {dimension_numbers = #tpu.dot_dimension_numbers<[1], [0], [0], [1], [0, 0, 1, 1], [], []>} : vector<8x32xbf16>, vector<32x128xbf16>, vector<8x128xf32> -> vector<8x128xf32>
    %cst_88 = arith.constant dense<0.000000e+00> : vector<8x32xf32>
    %149 = tpu.matmul %145, %141, %cst_88 {dimension_numbers = #tpu.dot_dimension_numbers<[1], [0], [0], [1], [0, 0, 1, 1], [], []>} : vector<8x128xf32>, vector<128x32xf32>, vector<8x32xf32> -> vector<8x32xf32>
    %cst_89 = arith.constant 6.250000e-02 : f32
    %150 = vector.broadcast %cst_89 : f32 to vector<8x32xf32>
    %151 = arith.mulf %149, %150 : vector<8x32xf32>
    %cst_90 = arith.constant dense<0.000000e+00> : vector<8x32xf32>
    %152 = tpu.matmul %148, %141, %cst_90 {dimension_numbers = #tpu.dot_dimension_numbers<[1], [0], [0], [1], [0, 0, 1, 1], [], []>} : vector<8x128xf32>, vector<128x32xf32>, vector<8x32xf32> -> vector<8x32xf32>
    %cst_91 = arith.constant 6.250000e-02 : f32
    %153 = vector.broadcast %cst_91 : f32 to vector<8x32xf32>
    %154 = arith.mulf %152, %153 : vector<8x32xf32>
    %155 = arith.mulf %151, %151 : vector<8x32xf32>
    %156 = arith.subf %154, %155 : vector<8x32xf32>
    %cst_92 = arith.constant 0.000000e+00 : f32
    %157 = vector.broadcast %cst_92 : f32 to vector<8x32xf32>
    %158 = arith.maximumf %156, %157 : vector<8x32xf32>
    %cst_93 = arith.constant 9.99999974E-6 : f32
    %159 = vector.broadcast %cst_93 : f32 to vector<8x32xf32>
    %160 = arith.addf %158, %159 : vector<8x32xf32>
    %161 = math.rsqrt %160 : vector<8x32xf32>
    %cst_94 = arith.constant dense<0.000000e+00> : vector<8x128xf32>
    %162 = tpu.matmul %161, %143, %cst_94 {dimension_numbers = #tpu.dot_dimension_numbers<[1], [0], [0], [1], [0, 0, 1, 1], [], []>} : vector<8x32xf32>, vector<32x128xf32>, vector<8x128xf32> -> vector<8x128xf32>
    %cst_95 = arith.constant dense<0.000000e+00> : vector<32x128xf32>
    %163 = tpu.matmul %139, %162, %cst_95 {dimension_numbers = #tpu.dot_dimension_numbers<[1], [0], [0], [1], [0, 0, 1, 1], [], []>} : vector<32x8xf32>, vector<8x128xf32>, vector<32x128xf32> -> vector<32x128xf32>
    %cst_96 = arith.constant 0.000000e+00 : f32
    %164 = vector.broadcast %cst_96 : f32 to vector<8x32xf32>
    %165 = arith.subf %164, %151 : vector<8x32xf32>
    %166 = arith.mulf %165, %161 : vector<8x32xf32>
    %cst_97 = arith.constant dense<0.000000e+00> : vector<8x128xf32>
    %167 = tpu.matmul %166, %143, %cst_97 {dimension_numbers = #tpu.dot_dimension_numbers<[1], [0], [0], [1], [0, 0, 1, 1], [], []>} : vector<8x32xf32>, vector<32x128xf32>, vector<8x128xf32> -> vector<8x128xf32>
    %cst_98 = arith.constant dense<0.000000e+00> : vector<32x128xf32>
    %168 = tpu.matmul %139, %167, %cst_98 {dimension_numbers = #tpu.dot_dimension_numbers<[1], [0], [0], [1], [0, 0, 1, 1], [], []>} : vector<32x8xf32>, vector<8x128xf32>, vector<32x128xf32> -> vector<32x128xf32>
    %169 = arith.mulf %136, %163 : vector<32x128xf32>
    %170 = arith.addf %169, %168 : vector<32x128xf32>
    %cst_99 = arith.constant 0.000000e+00 : f32
    %171 = vector.broadcast %cst_99 : f32 to vector<32x128xf32>
    %172 = arith.maximumf %170, %171 : vector<32x128xf32>
    %c0_100 = arith.constant 0 : index
    %c0_101 = arith.constant 0 : index
    %173 = vector.load %arg5[%c0_100, %c0_101] : memref<32x128xf32, #tpu.memory_space<vmem>>, vector<32x128xf32>
    tpu.vector_store %arg5[%c0_100, %c0_101], %172 {strides = array<i32>} : memref<32x128xf32, #tpu.memory_space<vmem>>, vector<32x128xf32>,
    return
  }
  func.func @transform_0(%arg0: i32) -> (i32, i32) {
    %c0_i32 = arith.constant 0 : i32
    %c0_i32_0 = arith.constant 0 : i32
    return %arg0, %c0_i32 : i32, i32
  }
  func.func @transform_1(%arg0: i32) -> (i32, i32) {
    %c0_i32 = arith.constant 0 : i32
    %c0_i32_0 = arith.constant 0 : i32
    %c0_i32_1 = arith.constant 0 : i32
    return %c0_i32, %c0_i32_0 : i32, i32
  }
  func.func @transform_2(%arg0: i32) -> (i32, i32) {
    %c0_i32 = arith.constant 0 : i32
    %c0_i32_0 = arith.constant 0 : i32
    %c0_i32_1 = arith.constant 0 : i32
    return %c0_i32, %c0_i32_0 : i32, i32
  }
  func.func @transform_3(%arg0: i32) -> (i32, i32) {
    %c0_i32 = arith.constant 0 : i32
    %c0_i32_0 = arith.constant 0 : i32
    %c0_i32_1 = arith.constant 0 : i32
    return %c0_i32, %c0_i32_0 : i32, i32
  }
  func.func @transform_4(%arg0: i32) -> (i32, i32) {
    %c0_i32 = arith.constant 0 : i32
    %c0_i32_0 = arith.constant 0 : i32
    return %arg0, %c0_i32 : i32, i32
  }
  func.func @transform_5(%arg0: i32) -> (i32, i32) {
    %c0_i32 = arith.constant 0 : i32
    %c0_i32_0 = arith.constant 0 : i32
    return %arg0, %c0_i32 : i32, i32
  }
  func.func @transform_6(%arg0: i32) -> (i32, i32) {
    %c0_i32 = arith.constant 0 : i32
    %c0_i32_0 = arith.constant 0 : i32
    return %arg0, %c0_i32 : i32, i32
  }
}

</mosaic_0001>

<bundles_post_ra>
// kernel: forward.1
= control target key start
LH: loop header
LB: loop body
LE: loop exit
PB: predicated region body
PF: predicated region fallthrough
CT: control target
= control target key end

     0   :  { %12 = vsyncpa [#allocation3], 0  ;;  %s6796_s0 = inlined_call_operand.hbm [shape: f32[256,16], index: 0, kind: input, shape index: {}]   ;;  %s6797_s1 = inlined_call_operand.hbm [shape: bf16[2208,128], index: 1, kind: input, shape index: {}]   ;;  %s6798_s2 = inlined_call_operand.hbm [shape: bf16[128,896], index: 2, kind: input, shape index: {}]   ;;  %s6799_s3 = inlined_call_operand.vmem [shape: f32[8,128], index: 3, kind: input, shape index: {}]   ;;  %s6800_s4 = inlined_call_operand.vmem [shape: f32[64,128], index: 4, kind: output, shape index: {0}]   ;;  %s6801_s5 = inlined_call_operand.vmem [shape: f32[256,128], index: 5, kind: output, shape index: {1}]   ;;  %s6802_s6 = inlined_call_operand.vmem [shape: f32[128,128], index: 6, kind: output, shape index: {2}]  }
   0x1   :  { %14 = vsyncpa [#allocation3 + $0x1], 0 }
   0x2   :  { %15 = vsyncpa [#allocation5], 0  ;;  %s5654_s21 = smov 0   ;;  %s5656_s22 = smov 0  }
   0x3   :  { %s5658_s23 = smov 0   ;;  %s5660_s24 = smov 0  }
   0x4 LB: > { %s5673_s25 = sadd.s32 4294967295, %s5609_s24   ;;  %p41_p0 = scmp.ne.s32.totalorder %s5601_s22, %s5597_s21  ;;  %s5609_s24 = sphi %s5660_s24, %s6858_s24   ;;  %s5605_s23 = sphi %s5658_s23, %s6857_s23   ;;  %s5601_s22 = sphi %s5656_s22, %s6856_s22   ;;  %s5597_s21 = sphi %s5654_s21, %s6855_s21  }
   0x5   : > { %p42_p1 = scmp.eq.s32.totalorder %s5673_s25, 0  ;;  %p4320_p2 = scmp.ge.s32.totalorder %s5609_s24, 1 }
   0x6   : > { %p193_p3 = scmp.lt.s32.totalorder %s5609_s24, 3  ;;  %s204_s29 = sshll.u32 %s6797_s1, 4  ;;  %s205_s29 = int_to_ptr.hbm [resolvable:$true] %s204_s29 }
   0x7   : > { %p5681_p4 = por %p42_p1, %p41_p0  ;;  %s5611_s7 = smov [#allocation4]  }
   0x8   : > { %p5688_p5 = pnand %p4320_p2, %p193_p3  ;;  %s206_s8 = sshll.u32 %s5611_s7, 4  ;;  %s207_s8 = int_to_ptr.vmem [resolvable:$true] %s206_s8 }
   0x9   : > { %s218_s11 = sshll.u32 %s6798_s2, 4  ;;  %s5612_s12 = smov 64   ;;  %s219_s11 = int_to_ptr.hbm [resolvable:$true] %s218_s11 }
   0xa   : > { %p5416_p6 = pneg %p5688_p5  ;;  %s5613_s13 = smov 4  }
   0xb   : > { %s5614_s14 = smov [#allocation6]   ;;  %s5615_s16 = smov 448  }
   0xc   : > { %p5417_p7 = pnand %p5416_p6, %p42_p1  ;;  %s220_s15 = sshll.u32 %s5614_s14, 4  ;;  %s221_s15 = int_to_ptr.vmem [resolvable:$true] %s220_s15 }
   0xd   : > { %s5616_s17 = smov 28   ;;  %s5700_s18 = sadd.s32 1, %s5609_s24  }
   0xe   : > { %5419 = dma.hbm_to_vmem [thread:$0]  (!%p5417_p7), %s205_s29, 17664, %s207_s8, [#allocation5], %s5612_s12, %s5612_s12, %s5613_s13  }
   0xf   : > { %5422 = dma.hbm_to_vmem [thread:$0]  (!%p5417_p7), %s219_s11, 7168, %s221_s15, [#allocation5], %s5615_s16, %s5615_s16, %s5616_s17  }
  0x10   : > { %s25_s19 = ssub.s32 %s5609_s24, %s5700_s18  ;;  %s28_s20 = sadd.s32 1, %s5605_s23 }
  0x11   : > { %p26_p8 = scmp.eq.s32.totalorder %s25_s19, 0  ;;  %p35_p9 = scmp.ne.s32.totalorder %s5605_s23, %s5601_s22 }
  0x12   : > { %p36_p10 = scmp.eq.s32.totalorder %s5609_s24, 0  ;;  %p5429_p12 = scmp.lt.s32.totalorder %s5609_s24, 2 }
  0x13   : > { %s5709_s21 = scalar_select %p26_p8, %s5605_s23, %s28_s20  }
  0x14   : > { %p37_p11 = por %p36_p10, %p35_p9  ;;  %s237_s27 = sand.u32 1, %s5605_s23  }
  0x15   : > { %s5073_s28 = sshll.u32 %s5609_s24, 7  ;;  %s4324_s29 = sshll.u32 %s237_s27, 7 }
  0x16   : > { %s246_s9 = scalar_lea.hbm %s6796_s0, %s5073_s28  ;;  %s241_s11 = scalar_lea.vmem [#allocation2], %s4324_s29 }
  0x17   : > { %s247_s10 = sshll.u32 %s246_s9, 4  ;;  %s249_s12 = sshll.u32 %s241_s11, 4  ;;  %s248_s10 = int_to_ptr.hbm [resolvable:$true] %s247_s10  ;;  %s250_s12 = int_to_ptr.vmem [resolvable:$true] %s249_s12 }
  0x18   : > { %p5717_p13 = pnand %p5429_p12, %p37_p11  ;;  %s238_s14 = scalar_lea.sflag [#allocation3], %s237_s27 }
  0x19   : > { %s5541_s15 = sshra.s32 %s248_s10, 4  ;;  %s5548_s19 = scalar_lea.hbm %s6796_s0, 256  ;;  %s5542_s15 = int_to_ptr.hbm [resolvable:$true] %s5541_s15 }
  0x1a   : > { %s5543_s16 = scalar_lea.hbm %s5542_s15, 128  ;;  %p5545_p2 = pneg %p5717_p13 }
  0x1b   : > { %p5544_p0 = scmp.ne.s32.totalorder %s5542_s15, %s5543_s16  ;;  %p5549_p7 = scmp.lt.s32.totalorder %s5542_s15, %s6796_s0 }
  0x1c   : > { %p5550_p8 = scmp.lt.s32.totalorder %s5548_s19, %s5543_s16 }
  0x1d   : > { %p5546_p3 = pnand %p5545_p2, %p5544_p0 }
  0x1e   : > { %p5551_p9 = por %p5550_p8, %p5549_p7 }
  0x1f   : > { %p5547_p6 = pneg %p5546_p3 }
  0x21   : > { %p5552_p10 = pnand %p5551_p9, %p5547_p6 }
  0x23   : > { %5555 = shalt.err (!%p5552_p10)
}
  0x24   : > { %s5617_s27 = smov 128   ;;  %s5618_s29 = smov 8  }
  0x25   : > { %5426 = dma.hbm_to_vmem [thread:$0]  (!%p5717_p13), %s248_s10, 2048, %s250_s12, %s238_s14, %s5617_s27, %s5617_s27, %s5618_s29  }
  0x26   : > { %261 = sbr.rel (%p5688_p5) target bundleno = 3396 (0xd44), region = 36 }
  0x2b   : > { %s263_s7 = sand.u32 1, %s5601_s22  }
  0x2c   : > { %s4328_s8 = sshll.u32 %s263_s7, 7  ;;  %s264_s9 = scalar_lea.sflag [#allocation3], %s263_s7 }
  0x2d   : > { %s5734_s11 = scalar_lea.vmem [#allocation2], %s4328_s8 }
  0x2e   : > { %5588 = dma.done.wait (%p5681_p4), %s264_s9, 2048  }
  0x2f   : > { %5590 = vsyncadd (%p5681_p4), %s264_s9, 4294965248 }
  0x30   : > { %5592 = dma.done.wait (%p42_p1), [#allocation5], 24832  }
  0x31   : > { %5594 = vsyncadd (%p42_p1), [#allocation5], 4294942464  ;;  %v5074_v0 = vld [vmem:[#allocation4] sm:$0xff]  ;;  %v5075_v1 = vld [vmem:[#allocation4 + $0x8] sm:$0xff]  ;;  %vm369_vm0 = vcmask 130048   ;;  %s4333_s10 = sshll.u32 %s5673_s25, 4 }
  0x32   : > { %v5076_v2 = vld [vmem:[#allocation4 + $0x10] sm:$0xff]  ;;  %v5077_v3 = vld [vmem:[#allocation4 + $0x18] sm:$0xff]  ;;  %v337_v4 = vld [vmem:[%s5734_s11] sm:$0xff]  ;;  %401 = vmatpush.bf16.msra.mxu0 %v5074_v0  ;;  %474 = vmatpush.bf16.msra.mxu1 %v5075_v1  ;;  %p325_p1 = scmp.lt.s32.totalorder %s4333_s10, 31  ;;  %vm2127_vm3 = vcmask 64512   ;;  %s4335_s16 = sshll.u32 %s5673_s25, 3 }
  0x33   : > { %v338_v5 = vld [vmem:[%s5734_s11 + $0x8] sm:$0xff]  ;;  %v339_v7 = vld [vmem:[%s5734_s11 + $0x10] sm:$0xff]  ;;  %v340_v8 = vld [vmem:[%s5734_s11 + $0x18] sm:$0xff]  ;;  %5405 = vmatpush.bf16.msra.mxu2 %v5076_v2  ;;  %620 = vmatpush.bf16.msra.mxu3 %v5077_v3  ;;  %p331_p4 = scmp.lt.s32.totalorder %s4335_s16, 15  ;;  %vm3109_vm5 = vcmask 523264   ;;  %vm3938_vm9 = vcmask 261120  }
  0x34   : > { %v5746_v6 = vpack.c.bf16 %v338_v5, %v337_v4  ;;  %v5750_v9 = vpack.c.bf16 %v340_v8, %v339_v7  ;;  %v341_v10 = vld [vmem:[%s5734_s11 + $0x20] sm:$0xff]  ;;  %v342_v11 = vld [vmem:[%s5734_s11 + $0x28] sm:$0xff]  ;;  %v343_v13 = vld [vmem:[%s5734_s11 + $0x30] sm:$0xff]  ;;  %s6860_s10 = smov (!%p325_p1, %s4333_s10), 31  ;;  %s4331_s8 = sshll.u32 %s5673_s25, 2 }
  0x35   : > { %v5762_v12 = vpack.c.bf16 %v342_v11, %v341_v10  ;;  %v344_v14 = vld [vmem:[%s5734_s11 + $0x38] sm:$0xff]  ;;  %v345_v16 = vld [vmem:[%s5734_s11 + $0x40] sm:$0xff]  ;;  %v346_v17 = vld [vmem:[%s5734_s11 + $0x48] sm:$0xff]  ;;  %s4334_s12 = sshll.u32 %s6860_s10, 3  ;;  %s6862_s16 = smov (!%p331_p4, %s4335_s16), 15 }
  0x36   : > { %547 = vmatpush.bf16.msrb.mxu0 %v5076_v2  ;;  %4353 = vmatmul.msk.bf16.vlgmr.msra.gmra.mxu1 %vm369_vm0, %v5746_v6  ;;  %v5774_v15 = vpack.c.bf16 %v344_v14, %v343_v13  ;;  %v5786_v18 = vpack.c.bf16 %v346_v17, %v345_v16  ;;  %v347_v19 = vld [vmem:[%s5734_s11 + $0x50] sm:$0xff]  ;;  %v348_v20 = vld [vmem:[%s5734_s11 + $0x58] sm:$0xff]  ;;  %v349_v23 = vld [vmem:[%s5734_s11 + $0x60] sm:$0xff]  ;;  %s6309_s15 = scalar_lea.vmem %s6801_s5, %s4334_s12  ;;  %s4336_s19 = sshll.u32 %s6862_s16, 3 }
  0x37   : > { %4341 = vmatmul.msk.bf16.vlgmr.msra.gmra.mxu0 %vm369_vm0, %v5746_v6  ;;  %4366 = vmatmul.msk.bf16.vlgmr.msra.gmra.mxu2 %vm369_vm0, %v5750_v9  ;;  %v5798_v21 = vpack.c.bf16 %v348_v20, %v347_v19  ;;  %v5080_v22 = vld [vmem:[#allocation4 + $0x30] sm:$0xff]  ;;  %v350_v24 = vld [vmem:[%s5734_s11 + $0x68] sm:$0xff]  ;;  %v352_v28 = vld [vmem:[%s5734_s11 + $0x78] sm:$0xff]  ;;  %s6580_s27 = scalar_lea.vmem %s6802_s6, %s4336_s19  ;;  %p319_p5 = scmp.lt.s32.totalorder %s4331_s8, 7 }
  0x38   : > { %4377 = vmatmul.msk.bf16.vlgmr.msra.gmra.mxu3 %vm369_vm0, %v5746_v6  ;;  %839 = vmatpush.bf16.msrb.mxu2 %v5080_v22  ;;  %v5810_v25 = vpack.c.bf16 %v350_v24, %v349_v23  ;;  %v5079_v26 = vld [vmem:[#allocation4 + $0x28] sm:$0xff]  ;;  %v351_v27 = vld [vmem:[%s5734_s11 + $0x70] sm:$0xff]  ;;  %v5078_v30 = vld [vmem:[#allocation4 + $0x20] sm:$0xff] }
  0x39   : > { %766 = vmatpush.bf16.msrb.mxu1 %v5079_v26  ;;  %v5822_v29 = vpack.c.bf16 %v352_v28, %v351_v27  ;;  %s6864_s8 = smov (!%p319_p5, %s4331_s8), 7 }
  0x3a   : > { %693 = vmatpush.bf16.msra.mxu0 %v5078_v30  ;;  %s4332_s9 = sshll.u32 %s6864_s8, 3 }
  0x3b   : > { %s322_s30 = scalar_lea.vmem %s6800_s4, %s4332_s9 }
  0x46   : > { %4354 = vmatmul.msk.bf16.gmra.mxu1 %vm369_vm0, %v5750_v9 }
  0x47   : > { %4342 = vmatmul.msk.bf16.gmra.mxu0 %vm369_vm0, %v5750_v9  ;;  %4367 = vmatmul.msk.bf16.gmra.mxu2 %vm369_vm0, %v5762_v12 }
  0x48   : > { %4378 = vmatmul.msk.bf16.gmra.mxu3 %vm369_vm0, %v5750_v9 }
  0x56   : > { %4355 = vmatmul.msk.bf16.gmra.mxu1 %vm369_vm0, %v5762_v12 }
  0x57   : > { %4343 = vmatmul.msk.bf16.gmra.mxu0 %vm369_vm0, %v5762_v12  ;;  %4368 = vmatmul.msk.bf16.gmra.mxu2 %vm369_vm0, %v5774_v15 }
  0x58   : > { %4379 = vmatmul.msk.bf16.gmra.mxu3 %vm369_vm0, %v5762_v12 }
  0x66   : > { %4356 = vmatmul.msk.bf16.gmra.mxu1 %vm369_vm0, %v5774_v15 }
  0x67   : > { %4344 = vmatmul.msk.bf16.gmra.mxu0 %vm369_vm0, %v5774_v15  ;;  %4369 = vmatmul.msk.bf16.gmra.mxu2 %vm369_vm0, %v5786_v18 }
  0x68   : > { %4380 = vmatmul.msk.bf16.gmra.mxu3 %vm369_vm0, %v5774_v15 }
  0x76   : > { %4357 = vmatmul.msk.bf16.gmra.mxu1 %vm369_vm0, %v5786_v18 }
  0x77   : > { %4345 = vmatmul.msk.bf16.gmra.mxu0 %vm369_vm0, %v5786_v18  ;;  %4370 = vmatmul.msk.bf16.gmra.mxu2 %vm369_vm0, %v5798_v21 }
  0x78   : > { %4381 = vmatmul.msk.bf16.gmra.mxu3 %vm369_vm0, %v5786_v18 }
  0x86   : > { %4358 = vmatmul.msk.bf16.gmra.mxu1 %vm369_vm0, %v5798_v21 }
  0x87   : > { %4346 = vmatmul.msk.bf16.gmra.mxu0 %vm369_vm0, %v5798_v21  ;;  %4371 = vmatmul.msk.bf16.gmra.mxu2 %vm369_vm0, %v5810_v25 }
  0x88   : > { %4382 = vmatmul.msk.bf16.gmra.mxu3 %vm369_vm0, %v5798_v21 }
  0x96   : > { %4359 = vmatmul.msk.bf16.gmra.mxu1 %vm369_vm0, %v5810_v25 }
  0x97   : > { %4347 = vmatmul.msk.bf16.gmra.mxu0 %vm369_vm0, %v5810_v25  ;;  %4372 = vmatmul.msk.bf16.gmra.mxu2 %vm369_vm0, %v5822_v29 }
  0x98   : > { %4383 = vmatmul.msk.bf16.gmra.mxu3 %vm369_vm0, %v5810_v25 }
  0xa6   : > { %4360 = vmatmul.msk.bf16.gmra.mxu1 %vm369_vm0, %v5822_v29 }
  0xa7   : > { %4348 = vmatmul.msk.bf16.gmra.mxu0 %vm369_vm0, %v5822_v29  ;;  %4413 = vmatmul.msk.bf16.vlgmr.msrb.gmra.mxu2 %vm369_vm0, %v5746_v6 }
  0xa8   : > { %4384 = vmatmul.msk.bf16.gmra.mxu3 %vm369_vm0, %v5822_v29 }
  0xb3   : > { %v476_v32 = vpop.f32.mrf.mxu1 }
  0xb4   : > { %v403_v31 = vpop.f32.mrf.mxu0  ;;  %v516_v33 = vpack.c.bf16 %v476_v32, %v476_v32 }
  0xb5   : > { %v443_v34 = vpack.c.bf16 %v403_v31, %v403_v31 }
  0xb6   : > { %4401 = vmatmul.msk.bf16.vlgmr.msrb.gmra.mxu1 %vm369_vm0, %v5746_v6  ;;  %v5848_v39 = vunpack.c.l.b16 %v516_v33 }
  0xb7   : > { %4365 = vmatmul.msk.bf16.vlgmr.msrb.gmra.mxu0 %vm369_vm0, %v5746_v6  ;;  %4414 = vmatmul.msk.bf16.gmra.mxu2 %vm369_vm0, %v5750_v9  ;;  %v5850_v42 = vunpack.c.l.b16 %v443_v34 }
  0xb8   : > { %6818 = vst [vmem:[#allocation10_spill] sm:$0xff] %v5848_v39 }
  0xb9   : > { %6819 = vst [vmem:[#allocation11_spill] sm:$0xff] %v5850_v42 }
  0xba   : > { %v554_v35 = vpop.f32.mrf.mxu2 }
  0xbb   : > { %v5846_v36 = vpop.f32.mrf.mxu3  ;;  %v478_v38 = vpop.f32.mrf.mxu1  ;;  %v591_v45 = vpack.c.bf16 %v554_v35, %v554_v35 }
  0xbc   : > { %6817 = vst [vmem:[#allocation9_spill] sm:$0xff] %v5846_v36  ;;  %v405_v37 = vpop.f32.mrf.mxu0  ;;  %v517_v41 = vpack.c.bf16 %v478_v38, %v478_v38 }
  0xbd   : > { %v444_v40 = vpack.c.bf16 %v405_v37, %v405_v37  ;;  %v5862_v50 = vunpack.c.l.b16 %v591_v45 }
  0xbe   : > { %v5854_v44 = vunpack.c.l.b16 %v517_v41 }
  0xbf   : > { %v5852_v43 = vunpack.c.l.b16 %v444_v40 }
  0xc0   : > { %6821 = vst [vmem:[#allocation13_spill] sm:$0xff] %v5854_v44 }
  0xc1   : > { %6820 = vst [vmem:[#allocation12_spill] sm:$0xff] %v5852_v43 }
  0xc2   : > { %v556_v48 = vpop.f32.mrf.mxu2 }
  0xc3   : > { %v5860_v49 = vpop.f32.mrf.mxu3  ;;  %v592_v51 = vpack.c.bf16 %v556_v48, %v556_v48  ;;  %v481_v53 = vpop.f32.mrf.mxu1 }
  0xc4   : > { %6822 = vst [vmem:[#allocation14_spill] sm:$0xff] %v5860_v49  ;;  %v408_v52 = vpop.f32.mrf.mxu0  ;;  %v518_v56 = vpack.c.bf16 %v481_v53, %v481_v53 }
  0xc5   : > { %v5864_v54 = vunpack.c.l.b16 %v592_v51  ;;  %v445_v57 = vpack.c.bf16 %v408_v52, %v408_v52 }
  0xc6   : > { %4402 = vmatmul.msk.bf16.gmra.mxu1 %vm369_vm0, %v5750_v9  ;;  %v5876_v62 = vunpack.c.l.b16 %v518_v56 }
  0xc7   : > { %4389 = vmatmul.msk.bf16.vlgmr.msra.gmra.mxu0 %vm369_vm0, %v5746_v6  ;;  %4415 = vmatmul.msk.bf16.gmra.mxu2 %vm369_vm0, %v5762_v12  ;;  %v5878_v1 = vunpack.c.l.b16 %v445_v57 }
  0xc8   : > { %6823 = vst [vmem:[#allocation15_spill] sm:$0xff] %v5876_v62 }
  0xc9   : > { %6824 = vst [vmem:[#allocation16_spill] sm:$0xff] %v5878_v1 }
  0xca   : > { %v559_v58 = vpop.f32.mrf.mxu2 }
  0xcb   : > { %v5874_v59 = vpop.f32.mrf.mxu3  ;;  %v483_v61 = vpop.f32.mrf.mxu1  ;;  %v593_v4 = vpack.c.bf16 %v559_v58, %v559_v58 }
  0xcc   : > { %v410_v60 = vpop.f32.mrf.mxu0  ;;  %v519_v0 = vpack.c.bf16 %v483_v61, %v483_v61 }
  0xcd   : > { %v446_v63 = vpack.c.bf16 %v410_v60, %v410_v60  ;;  %v5890_v10 = vunpack.c.l.b16 %v593_v4 }
  0xce   : > { %v5882_v3 = vunpack.c.l.b16 %v519_v0 }
  0xcf   : > { %v5880_v2 = vunpack.c.l.b16 %v446_v63 }
  0xd0   : > { %6826 = vst [vmem:[#allocation18_spill] sm:$0xff] %v5882_v3 }
  0xd1   : > { %6825 = vst [vmem:[#allocation17_spill] sm:$0xff] %v5880_v2 }
  0xd2   : > { %v561_v7 = vpop.f32.mrf.mxu2 }
  0xd3   : > { %v5888_v8 = vpop.f32.mrf.mxu3  ;;  %v594_v11 = vpack.c.bf16 %v561_v7, %v561_v7  ;;  %v486_v14 = vpop.f32.mrf.mxu1 }
  0xd4   : > { %v413_v13 = vpop.f32.mrf.mxu0  ;;  %v520_v19 = vpack.c.bf16 %v486_v14, %v486_v14 }
  0xd5   : > { %v5892_v16 = vunpack.c.l.b16 %v594_v11  ;;  %v447_v20 = vpack.c.bf16 %v413_v13, %v413_v13 }
  0xd6   : > { %4403 = vmatmul.msk.bf16.gmra.mxu1 %vm369_vm0, %v5762_v12  ;;  %v5904_v27 = vunpack.c.l.b16 %v520_v19 }
  0xd7   : > { %4390 = vmatmul.msk.bf16.gmra.mxu0 %vm369_vm0, %v5750_v9  ;;  %4416 = vmatmul.msk.bf16.gmra.mxu2 %vm369_vm0, %v5774_v15  ;;  %v5906_v30 = vunpack.c.l.b16 %v447_v20 }
  0xd8   : > { %6827 = vst [vmem:[#allocation19_spill] sm:$0xff] %v5904_v27 }
  0xd9   : > { %6828 = vst [vmem:[#allocation20_spill] sm:$0xff] %v5906_v30 }
  0xda   : > { %v564_v22 = vpop.f32.mrf.mxu2 }
  0xdb   : > { %v5902_v23 = vpop.f32.mrf.mxu3  ;;  %v488_v26 = vpop.f32.mrf.mxu1  ;;  %v595_v33 = vpack.c.bf16 %v564_v22, %v564_v22 }
  0xdc   : > { %v415_v24 = vpop.f32.mrf.mxu0  ;;  %v521_v9 = vpack.c.bf16 %v488_v26, %v488_v26 }
  0xdd   : > { %v448_v28 = vpack.c.bf16 %v415_v24, %v415_v24  ;;  %v5918_v40 = vunpack.c.l.b16 %v595_v33 }
  0xde   : > { %v5910_v32 = vunpack.c.l.b16 %v521_v9 }
  0xdf   : > { %v5908_v31 = vunpack.c.l.b16 %v448_v28 }
  0xe0   : > { %6829 = vst [vmem:[#allocation21_spill] sm:$0xff] %v5910_v32 }
  0xe2   : > { %v566_v37 = vpop.f32.mrf.mxu2 }
  0xe3   : > { %v5916_v38 = vpop.f32.mrf.mxu3  ;;  %v596_v41 = vpack.c.bf16 %v566_v37, %v566_v37  ;;  %v491_v48 = vpop.f32.mrf.mxu1 }
  0xe4   : > { %v418_v45 = vpop.f32.mrf.mxu0  ;;  %v522_v53 = vpack.c.bf16 %v491_v48, %v491_v48 }
  0xe5   : > { %v5920_v51 = vunpack.c.l.b16 %v596_v41  ;;  %v449_v56 = vpack.c.bf16 %v418_v45, %v418_v45 }
  0xe6   : > { %4404 = vmatmul.msk.bf16.gmra.mxu1 %vm369_vm0, %v5774_v15  ;;  %v5934_v63 = vunpack.c.l.b16 %v522_v53 }
  0xe7   : > { %4391 = vmatmul.msk.bf16.gmra.mxu0 %vm369_vm0, %v5762_v12  ;;  %4417 = vmatmul.msk.bf16.gmra.mxu2 %vm369_vm0, %v5786_v18  ;;  %v5936_v4 = vunpack.c.l.b16 %v449_v56 }
  0xea   : > { %v5930_v57 = vpop.f32.mrf.mxu2 }
  0xeb   : > { %v5932_v58 = vpop.f32.mrf.mxu3  ;;  %v493_v61 = vpop.f32.mrf.mxu1  ;;  %v597_v44 = vpack.c.bf16 %v5930_v57, %v5930_v57 }
  0xec   : > { %v420_v60 = vpop.f32.mrf.mxu0  ;;  %v523_v0 = vpack.c.bf16 %v493_v61, %v493_v61 }
  0xed   : > { %v450_v12 = vpack.c.bf16 %v420_v60, %v420_v60 }
  0xee   : > { %v5940_v11 = vunpack.c.l.b16 %v523_v0 }
  0xef   : > { %v5938_v7 = vunpack.c.l.b16 %v450_v12 }
  0xf2   : > { %v571_v19 = vpop.f32.mrf.mxu2 }
  0xf3   : > { %v5946_v20 = vpop.f32.mrf.mxu3  ;;  %v5950_v24 = vpop.f32.mrf.mxu1  ;;  %v598_v42 = vpack.c.bf16 %v571_v19, %v571_v19 }
  0xf4   : > { %v5948_v22 = vpop.f32.mrf.mxu0 }
  0xf5   : > { %v1018_v49 = vunpack.c.l.b16 %v598_v42 }
  0xf6   : > { %4405 = vmatmul.msk.bf16.gmra.mxu1 %vm369_vm0, %v5786_v18 }
  0xf7   : > { %4392 = vmatmul.msk.bf16.gmra.mxu0 %vm369_vm0, %v5774_v15  ;;  %4418 = vmatmul.msk.bf16.gmra.mxu2 %vm369_vm0, %v5798_v21 }
  0xfa   : > { %v574_v26 = vpop.f32.mrf.mxu2 }
  0xfb   : > { %v5958_v28 = vpop.f32.mrf.mxu3  ;;  %v5962_v33 = vpop.f32.mrf.mxu1 }
  0xfc   : > { %v5960_v9 = vpop.f32.mrf.mxu0 }
 0x102   : > { %v576_v37 = vpop.f32.mrf.mxu2 }
 0x103   : > { %v5964_v41 = vpop.f32.mrf.mxu3  ;;  %v5968_v48 = vpop.f32.mrf.mxu1 }
 0x104   : > { %v5966_v45 = vpop.f32.mrf.mxu0 }
 0x106   : > { %4406 = vmatmul.msk.bf16.gmra.mxu1 %vm369_vm0, %v5798_v21 }
 0x107   : > { %4393 = vmatmul.msk.bf16.gmra.mxu0 %vm369_vm0, %v5786_v18  ;;  %4419 = vmatmul.msk.bf16.gmra.mxu2 %vm369_vm0, %v5810_v25 }
 0x10a   : > { %v579_v15 = vpop.f32.mrf.mxu2 }
 0x10b   : > { %v5976_v53 = vpop.f32.mrf.mxu3  ;;  %v5980_v60 = vpop.f32.mrf.mxu1  ;;  %v601_v34 = vpack.c.bf16 %v579_v15, %v579_v15  ;;  %v599_v15 = vpack.c.bf16 %v574_v26, %v574_v26 }
 0x10c   : > { %v5978_v56 = vpop.f32.mrf.mxu0 }
 0x10d   : > { %v1021_v43 = vunpack.c.l.b16 %v601_v34  ;;  %v1019_v34 = vunpack.c.l.b16 %v599_v15 }
 0x112   : > { %v581_v61 = vpop.f32.mrf.mxu2 }
 0x113   : > { %v5982_v12 = vpop.f32.mrf.mxu3  ;;  %v506_v47 = vpop.f32.mrf.mxu1  ;;  %v602_v14 = vpack.c.bf16 %v581_v61, %v581_v61  ;;  %v600_v61 = vpack.c.bf16 %v576_v37, %v576_v37  ;;  %v526_v37 = vpack.c.bf16 %v5968_v48, %v5968_v48  ;;  %v452_v48 = vpack.c.bf16 %v5960_v9, %v5960_v9 }
 0x114   : > { %v5984_v0 = vpop.f32.mrf.mxu0 }
 0x115   : > { %v1022_v62 = vunpack.c.l.b16 %v602_v14 }
 0x116   : > { %4407 = vmatmul.msk.bf16.gmra.mxu1 %vm369_vm0, %v5810_v25 }
 0x117   : > { %4394 = vmatmul.msk.bf16.gmra.mxu0 %vm369_vm0, %v5798_v21  ;;  %4420 = vmatmul.msk.bf16.gmra.mxu2 %vm369_vm0, %v5822_v29  ;;  %v1031_v36 = vpack.c.b16 %v1022_v62, %v1021_v43  ;;  %v455_v43 = vpack.c.bf16 %v5984_v0, %v5984_v0 }
 0x11a   : > { %v584_v18 = vpop.f32.mrf.mxu2 }
 0x11b   : > { %v5992_v46 = vpop.f32.mrf.mxu3  ;;  %v508_v5 = vpop.f32.mrf.mxu1  ;;  %v603_v35 = vpack.c.bf16 %v584_v18, %v584_v18 }
 0x11c   : > { %v435_v6 = vpop.f32.mrf.mxu0 }
 0x11d   : > { %v1023_v17 = vunpack.c.l.b16 %v603_v35 }
 0x122   : > { %v586_v13 = vpop.f32.mrf.mxu2 }
 0x123   : > { %v5994_v55 = vpop.f32.mrf.mxu3  ;;  %v604_v52 = vpack.c.bf16 %v586_v13, %v586_v13  ;;  %v511_v39 = vpop.f32.mrf.mxu1  ;;  %v1017_v13 = vunpack.c.l.b16 %v597_v44  ;;  %v529_v44 = vpack.c.bf16 %v508_v5, %v508_v5 }
 0x124   : > { %v438_v21 = vpop.f32.mrf.mxu0  ;;  %v530_v35 = vpack.c.bf16 %v511_v39, %v511_v39  ;;  %v528_v39 = vpack.c.bf16 %v506_v47, %v506_v47  ;;  %v527_v47 = vpack.c.bf16 %v5980_v60, %v5980_v60  ;;  %v453_v60 = vpack.c.bf16 %v5966_v45, %v5966_v45 }
 0x125   : > { %v1024_v3 = vunpack.c.l.b16 %v604_v52  ;;  %v457_v1 = vpack.c.bf16 %v438_v21, %v438_v21  ;;  %v1020_v52 = vunpack.c.l.b16 %v600_v61  ;;  %v1029_v42 = vpack.c.b16 %v1018_v49, %v1017_v13 }
 0x126   : > { %4408 = vmatmul.msk.bf16.gmra.mxu1 %vm369_vm0, %v5822_v29  ;;  %v975_v27 = vunpack.c.l.b16 %v530_v35  ;;  %v673_v45 = vpack.c.bf16 %v5982_v12, %v5982_v12  ;;  %v922_v12 = vunpack.c.l.b16 %v452_v48  ;;  %v666_v48 = vpack.c.bf16 %v5902_v23, %v5902_v23 }
 0x127   : > { %4395 = vmatmul.msk.bf16.gmra.mxu0 %vm369_vm0, %v5810_v25  ;;  %v1032_v18 = vpack.c.b16 %v1024_v3, %v1023_v17  ;;  %v456_v25 = vpack.c.bf16 %v435_v6, %v435_v6  ;;  %v524_v3 = vpack.c.bf16 %v5950_v24, %v5950_v24  ;;  %v927_v62 = vunpack.c.l.b16 %v457_v1 }
 0x128   : > { %v454_v6 = vpack.c.bf16 %v5978_v56, %v5978_v56  ;;  %v1030_v21 = vpack.c.b16 %v1020_v52, %v1019_v34  ;;  %v973_v24 = vunpack.c.l.b16 %v528_v39  ;;  %v674_v1 = vpack.c.bf16 %v5992_v46, %v5992_v46 }
 0x129   : > { %1685 = vmatpush.bf16.msra.mxu1 %v1032_v18  ;;  %v926_v5 = vunpack.c.l.b16 %v456_v25  ;;  %v525_v56 = vpack.c.bf16 %v5962_v33, %v5962_v33  ;;  %v971_v46 = vunpack.c.l.b16 %v526_v37  ;;  %v972_v33 = vunpack.c.l.b16 %v527_v47 }
 0x12a   : > { %v6002_v19 = vpop.f32.mrf.mxu2  ;;  %v924_v13 = vunpack.c.l.b16 %v454_v6  ;;  %v1069_v34 = vunpack.c.l.b16 %v674_v1  ;;  %v451_v39 = vpack.c.bf16 %v5948_v22, %v5948_v22  ;;  %v1068_v6 = vunpack.c.l.b16 %v673_v45 }
 0x12b   : > { %v657_v57 = vpop.f32.mrf.mxu3  ;;  %v513_v2 = vpop.f32.mrf.mxu1  ;;  %v6830_v22 = vpack.c.b16 %v5920_v51, %v5918_v40  ;;  %v6831_v1 = vpack.c.b16 %v5892_v16, %v5890_v10  ;;  %v4431_v16 = vld [vmem:[#allocation6 + $0x8] sm:$0xf]  ;;  %v6834_v23 = vpack.c.b16 %v5940_v11, %v5934_v63  ;;  %v6835_v63 = vld [vmem:[#allocation20_spill] sm:$0xff]  ;;  %v6837_v11 = vld [vmem:[#allocation21_spill] sm:$0xff] }
 0x12c   : > { %v440_v14 = vpop.f32.mrf.mxu0  ;;  %v531_v30 = vpack.c.bf16 %v513_v2, %v513_v2  ;;  %v676_v2 = vpack.c.bf16 %v657_v57, %v657_v57 }
 0x12d   : > { %v458_v32 = vpack.c.bf16 %v440_v14, %v440_v14  ;;  %1686 = vmatpush.bf16.msra.mxu1 %v1031_v36 }
 0x12e   : > { %v976_v26 = vunpack.c.l.b16 %v531_v30  ;;  %v675_v30 = vpack.c.bf16 %v5994_v55, %v5994_v55  ;;  %v672_v55 = vpack.c.bf16 %v5976_v53, %v5976_v53  ;;  %v1071_v61 = vunpack.c.l.b16 %v676_v2 }
 0x12f   : > { %v928_v17 = vunpack.c.l.b16 %v458_v32  ;;  %v974_v32 = vunpack.c.l.b16 %v529_v44  ;;  %v923_v53 = vunpack.c.l.b16 %v453_v60  ;;  %v969_v44 = vunpack.c.l.b16 %v524_v3 }
 0x130   : > { %v984_v36 = vpack.c.b16 %v976_v26, %v975_v27  ;;  %v925_v27 = vunpack.c.l.b16 %v455_v43  ;;  %v1070_v52 = vunpack.c.l.b16 %v675_v30  ;;  %v670_v43 = vpack.c.bf16 %v5958_v28, %v5958_v28 }
 0x131   : > { %v936_v49 = vpack.c.b16 %v928_v17, %v927_v62  ;;  %1687 = vmatpush.bf16.msra.mxu1 %v1030_v21  ;;  %v983_v25 = vpack.c.b16 %v974_v32, %v973_v24  ;;  %v970_v17 = vunpack.c.l.b16 %v525_v56  ;;  %v934_v26 = vpack.c.b16 %v924_v13, %v923_v53 }
 0x132   : > { %v6024_v15 = vpop.f32.mrf.mxu2  ;;  %1636 = vmatpush.bf16.msrb.mxu0 %v984_v36  ;;  %v935_v57 = vpack.c.b16 %v926_v5, %v925_v27  ;;  %v1067_v37 = vunpack.c.l.b16 %v672_v55  ;;  %v1079_v3 = vpack.c.b16 %v1070_v52, %v1069_v34  ;;  %v921_v2 = vunpack.c.l.b16 %v451_v39  ;;  %v6841_v39 = vld [vmem:[#allocation16_spill] sm:$0xff] }
 0x133   : > { %v659_v0 = vpop.f32.mrf.mxu3  ;;  %1587 = vmatpush.bf16.msrb.mxu3 %v936_v49  ;;  %v6028_v9 = vpop.f32.mrf.mxu1  ;;  %v668_v28 = vpack.c.bf16 %v5932_v58, %v5932_v58  ;;  %v669_v5 = vpack.c.bf16 %v5946_v20, %v5946_v20  ;;  %v1065_v36 = vunpack.c.l.b16 %v670_v43  ;;  %v981_v32 = vpack.c.b16 %v970_v17, %v969_v44  ;;  %v4423_v44 = vld [vmem:[#allocation6] sm:$0xf]  ;;  %v5084_v43 = vld [vmem:[#allocation6 + $0x18] sm:$0xf0] }
 0x134   : > { %v677_v18 = vpack.c.bf16 %v659_v0, %v659_v0  ;;  %v549_v35 = vpop.f32.mrf.mxu0  ;;  %v933_v51 = vpack.c.b16 %v922_v12, %v921_v2  ;;  %v1078_v30 = vpack.c.b16 %v1068_v6, %v1067_v37  ;;  %v667_v20 = vpack.c.bf16 %v5916_v38, %v5916_v38  ;;  %v6844_v12 = vld [vmem:[#allocation14_spill] sm:$0xff] }
 0x135   : > { %1688 = vmatpush.bf16.msra.mxu1 %v1029_v42  ;;  %v671_v42 = vpack.c.bf16 %v5964_v41, %v5964_v41  ;;  %v589_v24 = vpack.c.bf16 %v549_v35, %v549_v35  ;;  %v1063_v56 = vunpack.c.l.b16 %v668_v28  ;;  %v1064_v60 = vunpack.c.l.b16 %v669_v5  ;;  %v6849_v5 = vld [vmem:[#allocation11_spill] sm:$0xff] }
 0x136   : > { %v1072_v14 = vunpack.c.l.b16 %v677_v18  ;;  %1637 = vmatpush.bf16.msrb.mxu0 %v983_v25  ;;  %v6832_v0 = vpack.c.b16 %v5864_v54, %v5862_v50  ;;  %v664_v54 = vpack.c.bf16 %v5874_v59, %v5874_v59  ;;  %v665_v13 = vpack.c.bf16 %v5888_v8, %v5888_v8  ;;  %v6840_v8 = vld [vmem:[#allocation17_spill] sm:$0xff] }
 0x137   : > { %4396 = vmatmul.msk.bf16.gmra.mxu0 %vm369_vm0, %v5822_v29  ;;  %1588 = vmatpush.bf16.msrb.mxu3 %v935_v57  ;;  %v982_v29 = vpack.c.b16 %v972_v33, %v971_v46  ;;  %v1066_v49 = vunpack.c.l.b16 %v671_v42  ;;  %v1009_v27 = vunpack.c.l.b16 %v589_v24  ;;  %v5085_v46 = vld [vmem:[#allocation6 + $0x20] sm:$0xf0]  ;;  %v1061_v33 = vunpack.c.l.b16 %v666_v48  ;;  %v6838_v57 = vld [vmem:[#allocation19_spill] sm:$0xff]  ;;  %v6845_v42 = vld [vmem:[#allocation18_spill] sm:$0xff] }
 0x138   : > { %v1080_v62 = vpack.c.b16 %v1072_v14, %v1071_v61  ;;  %v6833_v61 = vpack.c.b16 %v5938_v7, %v5936_v4  ;;  %v4432_v35 = vor.u32 %v5085_v46, %v4431_v16  ;;  %v1062_v45 = vunpack.c.l.b16 %v667_v20  ;;  %v6851_v24 = vld [vmem:[#allocation13_spill] sm:$0xff]  ;;  %v5092_v20 = vld [vmem:[#allocation6 + $0x58] sm:$0xf0] }
 0x139   : > { %1689 = vmatpush.bf16.msra.mxu1 %v6830_v22  ;;  %v1077_v10 = vpack.c.b16 %v1066_v49, %v1065_v36  ;;  %v1076_v4 = vpack.c.b16 %v1064_v60, %v1063_v56  ;;  %v6836_v7 = vpack.c.b16 %v5908_v31, %v6835_v63  ;;  %v6839_v34 = vpack.c.b16 %v6837_v11, %v6838_v57  ;;  %v4459_v48 = vld [vmem:[#allocation6 + $0x40] sm:$0xf]  ;;  %v5099_v11 = vld [vmem:[#allocation6 + $0x90] sm:$0xf0] }
 0x13a   : > { %1734 = vmatpush.bf16.msra.mxu2 %v1080_v62  ;;  %v6043_v21 = vpop.f32.mrf.mxu2  ;;  %1638 = vmatpush.bf16.msrb.mxu0 %v982_v29  ;;  %v1059_v52 = vunpack.c.l.b16 %v664_v54  ;;  %v1060_v59 = vunpack.c.l.b16 %v665_v13  ;;  %v1075_v14 = vpack.c.b16 %v1062_v45, %v1061_v33  ;;  %v6842_v53 = vpack.c.b16 %v6840_v8, %v6841_v39  ;;  %v6843_v62 = vld [vmem:[#allocation9_spill] sm:$0xff]  ;;  %v4453_v13 = vld [vmem:[#allocation6 + $0x54] sm:$0xf0]  ;;  %v4479_v39 = vld [vmem:[#allocation6 + $0x70] sm:$0xf] }
 0x13b   : > { %1589 = vmatpush.bf16.msrb.mxu3 %v934_v26  ;;  %v6047_v41 = vpop.f32.mrf.mxu1  ;;  %v662_v31 = vpack.c.bf16 %v6843_v62, %v6843_v62  ;;  %v663_v17 = vpack.c.bf16 %v6844_v12, %v6844_v12  ;;  %v6846_v26 = vld [vmem:[#allocation15_spill] sm:$0xff]  ;;  %v5081_v29 = vld [vmem:[#allocation6 + $0x4] sm:$0xf]  ;;  %v4424_v28 = vor.u32 %v5084_v43, %v4423_v44  ;;  %v4460_v16 = vor.u32 %v5092_v20, %v4459_v48  ;;  %v4461_v63 = vld [vmem:[#allocation6 + $0x5c] sm:$0xf0] }
 0x13c   : > { %v551_v47 = vpop.f32.mrf.mxu0  ;;  %v6847_v37 = vpack.c.b16 %v6845_v42, %v6846_v26  ;;  %v1074_v2 = vpack.c.b16 %v1060_v59, %v1059_v52  ;;  %v5095_v62 = vld [vmem:[#allocation6 + $0x74] sm:$0xf]  ;;  %v5096_v42 = vld [vmem:[#allocation6 + $0x7c] sm:$0xf]  ;;  %v4489_v26 = vld [vmem:[#allocation6 + $0x94] sm:$0xf0] }
 0x13d   : > { %v590_v40 = vpack.c.bf16 %v551_v47, %v551_v47  ;;  %1690 = vmatpush.bf16.msra.mxu1 %v6831_v1  ;;  %v6848_v47 = vld [vmem:[#allocation12_spill] sm:$0xff]  ;;  %v1058_v49 = vunpack.c.l.b16 %v663_v17  ;;  %v6852_v1 = vld [vmem:[#allocation10_spill] sm:$0xff]  ;;  %v5103_v48 = vld [vmem:[#allocation6 + $0xb4] sm:$0xf] }
 0x13e   : > { %1735 = vmatpush.bf16.msra.mxu2 %v1079_v3  ;;  %1639 = vmatpush.bf16.msrb.mxu0 %v981_v32  ;;  %v4425_v3 = vld [vmem:[#allocation6 + $0x1c] sm:$0xf0]  ;;  %v6850_v36 = vpack.c.b16 %v6848_v47, %v6849_v5  ;;  %v6853_v32 = vpack.c.b16 %v6851_v24, %v6852_v1  ;;  %v4492_v47 = vor.u32 %v5096_v42, %v4489_v26  ;;  %v5102_v1 = vld [vmem:[#allocation6 + $0xac] sm:$0xf]  ;;  %v4517_v20 = vld [vmem:[#allocation6 + $0xcc] sm:$0xf0] }
 0x13f   : > { %1590 = vmatpush.bf16.msrb.mxu3 %v933_v51  ;;  %v1010_v58 = vunpack.c.l.b16 %v590_v40  ;;  %v4428_v40 = vor.u32 %v5081_v29, %v4425_v3  ;;  %v1057_v51 = vunpack.c.l.b16 %v662_v31  ;;  %v4481_v31 = vld [vmem:[#allocation6 + $0x8c] sm:$0xf0]  ;;  %v5106_v29 = vld [vmem:[#allocation6 + $0xc8] sm:$0xf0] }
 0x140   : > { %v4484_v17 = vor.u32 %v5095_v62, %v4481_v31  ;;  %v4545_v62 = vld [vmem:[#allocation6 + $0x104] sm:$0xf0]  ;;  %v4571_v31 = vld [vmem:[#allocation6 + $0x120] sm:$0xf] }
 0x141   : > { %1691 = vmatpush.bf16.msra.mxu1 %v6832_v0  ;;  %v1025_v50 = vpack.c.b16 %v1010_v58, %v1009_v27  ;;  %v4433_v58 = vld [vmem:[#allocation6 + $0x24] sm:$0xf0]  ;;  %v1073_v0 = vpack.c.b16 %v1058_v49, %v1057_v51  ;;  %v5105_v51 = vld [vmem:[#allocation6 + $0xc0] sm:$0xf0] }
 0x142   : > { %1736 = vmatpush.bf16.msra.mxu2 %v1078_v30  ;;  %v6061_v55 = vpop.f32.mrf.mxu2  ;;  %1640 = vmatpush.bf16.msrb.mxu0 %v6834_v23  ;;  %v5082_v30 = vld [vmem:[#allocation6 + $0xc] sm:$0xf]  ;;  %v5091_v23 = vld [vmem:[#allocation6 + $0x50] sm:$0xf0] }
 0x143   : > { %1591 = vmatpush.bf16.msrb.mxu3 %v6833_v61  ;;  %v6071_v18 = vpop.f32.mrf.mxu1  ;;  %v4451_v61 = vld [vmem:[#allocation6 + $0x38] sm:$0xf] }
 0x144   : > { %v6069_v38 = vpop.f32.mrf.mxu0  ;;  %v4452_v33 = vor.u32 %v5091_v23, %v4451_v61 }
 0x145   : > { %1692 = vmatpush.bf16.msra.mxu1 %v1025_v50 }
 0x146   : > { %1737 = vmatpush.bf16.msra.mxu2 %v1077_v10  ;;  %1641 = vmatpush.bf16.msrb.mxu0 %v6839_v34  ;;  %v4436_v10 = vor.u32 %v5082_v30, %v4433_v58 }
 0x147   : > { %1592 = vmatpush.bf16.msrb.mxu3 %v6836_v7  ;;  %v4487_v7 = vld [vmem:[#allocation6 + $0x78] sm:$0xf] }
 0x148   : > { %1693 = vmatmul.bf16.vlgmr.msra.gmra.mxu1 %v4432_v35  ;;  %v5088_v35 = vld [vmem:[#allocation6 + $0x3c] sm:$0xf] }
 0x149   : > { %v4456_v45 = vor.u32 %v5088_v35, %v4453_v13  ;;  %v4520_v35 = vor.u32 %v5103_v48, %v4517_v20 }
 0x14a   : > { %1738 = vmatpush.bf16.msra.mxu2 %v1076_v4  ;;  %v6083_v25 = vpop.f32.mrf.mxu2  ;;  %1642 = vmatpush.bf16.msrb.mxu0 %v6847_v37  ;;  %v5089_v4 = vld [vmem:[#allocation6 + $0x44] sm:$0xf]  ;;  %v4515_v37 = vld [vmem:[#allocation6 + $0xb0] sm:$0xf] }
 0x14b   : > { %1593 = vmatpush.bf16.msrb.mxu3 %v6842_v53  ;;  %v6097_v22 = vpop.f32.mrf.mxu1  ;;  %v4464_v59 = vor.u32 %v5089_v4, %v4461_v63  ;;  %v5098_v53 = vld [vmem:[#allocation6 + $0x88] sm:$0xf0]  ;;  %v4516_v5 = vor.u32 %v5106_v29, %v4515_v37  ;;  %v5112_v4 = vld [vmem:[#allocation6 + $0xf8] sm:$0xf0] }
 0x14c   : > { %v6095_v6 = vpop.f32.mrf.mxu0  ;;  %v4480_v12 = vor.u32 %v5098_v53, %v4479_v39  ;;  %v5110_v53 = vld [vmem:[#allocation6 + $0xec] sm:$0xf] }
 0x14d   : > { %v4548_v37 = vor.u32 %v5110_v53, %v4545_v62 }
 0x14e   : > { %1739 = vmatpush.bf16.msra.mxu2 %v1075_v14  ;;  %1643 = vmatpush.bf16.msrb.mxu0 %v6853_v32  ;;  %v4488_v14 = vor.u32 %v5099_v11, %v4487_v7  ;;  %v4509_v32 = vld [vmem:[#allocation6 + $0xc4] sm:$0xf0]  ;;  %v5109_v11 = vld [vmem:[#allocation6 + $0xe4] sm:$0xf] }
 0x14f   : > { %1594 = vmatpush.bf16.msrb.mxu3 %v6850_v36  ;;  %v4512_v58 = vor.u32 %v5102_v1, %v4509_v32  ;;  %v5116_v32 = vld [vmem:[#allocation6 + $0x11c] sm:$0xf] }
 0x151   : > { %1644 = vmatmul.bf16.vlgmr.msrb.gmra.mxu0 %v4428_v40  ;;  %v4507_v40 = vld [vmem:[#allocation6 + $0xa8] sm:$0xf] }
 0x152   : > { %1740 = vmatpush.bf16.msra.mxu2 %v1074_v2  ;;  %1595 = vmatmul.bf16.vlgmr.msrb.gmra.mxu3 %v4424_v28  ;;  %v6105_v56 = vpop.f32.mrf.mxu2  ;;  %v4508_v30 = vor.u32 %v5105_v51, %v4507_v40  ;;  %v5119_v40 = vld [vmem:[#allocation6 + $0x130] sm:$0xf0] }
 0x153   : > { %v6109_v27 = vpop.f32.mrf.mxu1 }
 0x154   : > { %v6107_v60 = vpop.f32.mrf.mxu0 }
 0x156   : > { %1741 = vmatpush.bf16.msra.mxu2 %v1073_v0  ;;  %v4543_v0 = vld [vmem:[#allocation6 + $0xe8] sm:$0xf] }
 0x158   : > { %1698 = vmatmul.bf16.gmra.mxu1 %v4460_v16 }
 0x159   : > { %1742 = vmatmul.bf16.vlgmr.msra.gmra.mxu2 %v4436_v10  ;;  %v5113_v10 = vld [vmem:[#allocation6 + $0x100] sm:$0xf0] }
 0x15a   : > { %v6111_v46 = vpop.f32.mrf.mxu2  ;;  %v4544_v13 = vor.u32 %v5113_v10, %v4543_v0  ;;  %v5117_v0 = vld [vmem:[#allocation6 + $0x124] sm:$0xf] }
 0x15b   : > { %v6115_v54 = vpop.f32.mrf.mxu1 }
 0x15c   : > { %v6113_v50 = vpop.f32.mrf.mxu0 }
 0x161   : > { %1649 = vmatmul.bf16.gmra.mxu0 %v4456_v45  ;;  %v4535_v45 = vld [vmem:[#allocation6 + $0xe0] sm:$0xf] }
 0x162   : > { %1600 = vmatmul.bf16.gmra.mxu3 %v4452_v33  ;;  %v6117_v57 = vpop.f32.mrf.mxu2 }
 0x163   : > { %v6121_v52 = vpop.f32.mrf.mxu1 }
 0x164   : > { %v6119_v34 = vpop.f32.mrf.mxu0 }
 0x168   : > { %1703 = vmatmul.bf16.gmra.mxu1 %v4488_v14  ;;  %v4536_v14 = vor.u32 %v5112_v4, %v4535_v45  ;;  %v4599_v45 = vld [vmem:[#allocation6 + $0x158] sm:$0xf]  ;;  %v5127_v4 = vld [vmem:[#allocation6 + $0x170] sm:$0xf0] }
 0x169   : > { %1747 = vmatmul.bf16.gmra.mxu2 %v4464_v59  ;;  %v4537_v59 = vld [vmem:[#allocation6 + $0xfc] sm:$0xf0] }
 0x16a   : > { %v6123_v8 = vpop.f32.mrf.mxu2  ;;  %v4540_v39 = vor.u32 %v5109_v11, %v4537_v59 }
 0x16b   : > { %v6127_v43 = vpop.f32.mrf.mxu1 }
 0x16c   : > { %v6125_v44 = vpop.f32.mrf.mxu0 }
 0x171   : > { %1654 = vmatmul.bf16.gmra.mxu0 %v4484_v17 }
 0x172   : > { %1605 = vmatmul.bf16.gmra.mxu3 %v4480_v12  ;;  %v6129_v3 = vpop.f32.mrf.mxu2  ;;  %v5120_v12 = vld [vmem:[#allocation6 + $0x138] sm:$0xf0] }
 0x173   : > { %v6133_v28 = vpop.f32.mrf.mxu1  ;;  %v4572_v29 = vor.u32 %v5120_v12, %v4571_v31  ;;  %v4600_v31 = vor.u32 %v5127_v4, %v4599_v45  ;;  %v5123_v4 = vld [vmem:[#allocation6 + $0x154] sm:$0xf] }
 0x174   : > { %v6131_v2 = vpop.f32.mrf.mxu0 }
 0x178   : > { %1708 = vmatmul.bf16.gmra.mxu1 %v4516_v5  ;;  %v4563_v5 = vld [vmem:[#allocation6 + $0x118] sm:$0xf] }
 0x179   : > { %1752 = vmatmul.bf16.gmra.mxu2 %v4492_v47 }
 0x17a   : > { %v6135_v36 = vpop.f32.mrf.mxu2 }
 0x17b   : > { %v6139_v24 = vpop.f32.mrf.mxu1 }
 0x17c   : > { %v6137_v49 = vpop.f32.mrf.mxu0 }
 0x181   : > { %1659 = vmatmul.bf16.gmra.mxu0 %v4512_v58  ;;  %v4564_v58 = vor.u32 %v5119_v40, %v4563_v5 }
 0x182   : > { %1610 = vmatmul.bf16.gmra.mxu3 %v4508_v30  ;;  %v6141_v16 = vpop.f32.mrf.mxu2  ;;  %v4565_v30 = vld [vmem:[#allocation6 + $0x134] sm:$0xf0] }
 0x183   : > { %v6145_v23 = vpop.f32.mrf.mxu1  ;;  %v4568_v48 = vor.u32 %v5116_v32, %v4565_v30  ;;  %v889_v32 = vpack.c.bf16 %v6123_v8, %v6123_v8  ;;  %v4591_v30 = vld [vmem:[#allocation6 + $0x150] sm:$0xf] }
 0x184   : > { %v6143_v61 = vpop.f32.mrf.mxu0 }
 0x188   : > { %1713 = vmatmul.bf16.gmra.mxu1 %v4544_v13  ;;  %v4573_v13 = vld [vmem:[#allocation6 + $0x13c] sm:$0xf0] }
 0x189   : > { %1757 = vmatmul.bf16.gmra.mxu2 %v4520_v35  ;;  %v4576_v62 = vor.u32 %v5117_v0, %v4573_v13 }
 0x18a   : > { %v871_v33 = vpop.f32.mrf.mxu2 }
 0x18b   : > { %v6149_v7 = vpop.f32.mrf.mxu1  ;;  %v893_v10 = vpack.c.bf16 %v871_v33, %v871_v33  ;;  %v891_v33 = vpack.c.bf16 %v6135_v36, %v6135_v36 }
 0x18c   : > { %v6147_v63 = vpop.f32.mrf.mxu0 }
 0x18d   : > { %v1213_v12 = vunpack.c.l.b16 %v893_v10 }
 0x191   : > { %1664 = vmatmul.bf16.gmra.mxu0 %v4540_v39 }
 0x192   : > { %1615 = vmatmul.bf16.gmra.mxu3 %v4536_v14  ;;  %v873_v17 = vpop.f32.mrf.mxu2 }
 0x193   : > { %v6153_v26 = vpop.f32.mrf.mxu1  ;;  %v894_v35 = vpack.c.bf16 %v873_v17, %v873_v17  ;;  %v892_v17 = vpack.c.bf16 %v6141_v16, %v6141_v16 }
 0x194   : > { %v6151_v42 = vpop.f32.mrf.mxu0  ;;  %v820_v16 = vpack.c.bf16 %v6153_v26, %v6153_v26 }
 0x195   : > { %v1212_v0 = vunpack.c.l.b16 %v892_v17  ;;  %v5124_v17 = vld [vmem:[#allocation6 + $0x15c] sm:$0xf] }
 0x198   : > { %1718 = vmatmul.bf16.gmra.mxu1 %v4572_v29 }
 0x199   : > { %1762 = vmatmul.bf16.gmra.mxu2 %v4548_v37  ;;  %v1214_v37 = vunpack.c.l.b16 %v894_v35 }
 0x19a   : > { %v876_v47 = vpop.f32.mrf.mxu2 }
 0x19b   : > { %v800_v1 = vpop.f32.mrf.mxu1  ;;  %v895_v20 = vpack.c.bf16 %v876_v47, %v876_v47  ;;  %v1223_v40 = vpack.c.b16 %v1214_v37, %v1213_v12  ;;  %v819_v12 = vpack.c.bf16 %v6149_v7, %v6149_v7  ;;  %v1165_v37 = vunpack.c.l.b16 %v820_v16 }
 0x19c   : > { %v6155_v51 = vpop.f32.mrf.mxu0  ;;  %v821_v35 = vpack.c.bf16 %v800_v1, %v800_v1  ;;  %v816_v7 = vpack.c.bf16 %v6133_v28, %v6133_v28 }
 0x19d   : > { %v1215_v59 = vunpack.c.l.b16 %v895_v20  ;;  %v1211_v20 = vunpack.c.l.b16 %v891_v33 }
 0x19f   : > { %v1222_v26 = vpack.c.b16 %v1212_v0, %v1211_v20  ;;  %v1164_v0 = vunpack.c.l.b16 %v819_v12 }
 0x1a1   : > { %1669 = vmatmul.bf16.gmra.mxu0 %v4568_v48  ;;  %v890_v48 = vpack.c.bf16 %v6129_v3, %v6129_v3  ;;  %v888_v3 = vpack.c.bf16 %v6117_v57, %v6117_v57  ;;  %v5134_v57 = vld [vmem:[#allocation6 + $0x1a8] sm:$0xf0] }
 0x1a2   : > { %1620 = vmatmul.bf16.gmra.mxu3 %v4564_v58  ;;  %v878_v11 = vpop.f32.mrf.mxu2  ;;  %v5126_v58 = vld [vmem:[#allocation6 + $0x168] sm:$0xf0] }
 0x1a3   : > { %v896_v14 = vpack.c.bf16 %v878_v11, %v878_v11  ;;  %v803_v53 = vpop.f32.mrf.mxu1  ;;  %v4593_v11 = vld [vmem:[#allocation6 + $0x16c] sm:$0xf0]  ;;  %v4592_v8 = vor.u32 %v5126_v58, %v4591_v30  ;;  %v817_v30 = vpack.c.bf16 %v6139_v24, %v6139_v24  ;;  %v814_v24 = vpack.c.bf16 %v6121_v52, %v6121_v52  ;;  %v4619_v52 = vld [vmem:[#allocation6 + $0x188] sm:$0xf] }
 0x1a4   : > { %v6157_v39 = vpop.f32.mrf.mxu0  ;;  %v822_v5 = vpack.c.bf16 %v803_v53, %v803_v53  ;;  %v4596_v1 = vor.u32 %v5123_v4, %v4593_v11  ;;  %v815_v4 = vpack.c.bf16 %v6127_v43, %v6127_v43  ;;  %v1161_v11 = vunpack.c.l.b16 %v816_v7 }
 0x1a5   : > { %v1216_v29 = vunpack.c.l.b16 %v896_v14  ;;  %v1209_v14 = vunpack.c.l.b16 %v889_v32  ;;  %v1208_v32 = vunpack.c.l.b16 %v888_v3  ;;  %v812_v43 = vpack.c.bf16 %v6109_v27, %v6109_v27 }
 0x1a6   : > { %v1167_v13 = vunpack.c.l.b16 %v822_v5  ;;  %v885_v5 = vpack.c.bf16 %v6083_v25, %v6083_v25 }
 0x1a7   : > { %v1224_v47 = vpack.c.b16 %v1216_v29, %v1215_v59  ;;  %v887_v59 = vpack.c.bf16 %v6111_v46, %v6111_v46  ;;  %v1166_v29 = vunpack.c.l.b16 %v821_v35  ;;  %v4601_v46 = vld [vmem:[#allocation6 + $0x174] sm:$0xf0]  ;;  %v884_v35 = vpack.c.bf16 %v6061_v55, %v6061_v55 }
 0x1a8   : > { %1723 = vmatmul.bf16.gmra.mxu1 %v4600_v31  ;;  %v818_v31 = vpack.c.bf16 %v6145_v23, %v6145_v23  ;;  %v886_v23 = vpack.c.bf16 %v6105_v56, %v6105_v56  ;;  %v4604_v16 = vor.u32 %v5124_v17, %v4601_v46  ;;  %v883_v56 = vpack.c.bf16 %v6043_v21, %v6043_v21  ;;  %v4621_v17 = vld [vmem:[#allocation6 + $0x1a4] sm:$0xf0] }
 0x1a9   : > { %1767 = vmatmul.bf16.gmra.mxu2 %v4576_v62  ;;  %1881 = vmatpush.bf16.msrb.mxu1 %v1224_v47  ;;  %v1210_v62 = vunpack.c.l.b16 %v890_v48  ;;  %v4627_v47 = vld [vmem:[#allocation6 + $0x190] sm:$0xf]  ;;  %v1205_v28 = vunpack.c.l.b16 %v885_v5  ;;  %v881_v21 = vpack.c.bf16 %v6002_v19, %v6002_v19  ;;  %v882_v55 = vpack.c.bf16 %v6024_v15, %v6024_v15 }
 0x1aa   : > { %v1163_v58 = vunpack.c.l.b16 %v818_v31  ;;  %v4628_v25 = vor.u32 %v5134_v57, %v4627_v47  ;;  %v1203_v3 = vunpack.c.l.b16 %v883_v56  ;;  %v813_v31 = vpack.c.bf16 %v6115_v54, %v6115_v54 }
 0x1ab   : > { %v805_v10 = vpop.f32.mrf.mxu1  ;;  %v1221_v20 = vpack.c.b16 %v1210_v62, %v1209_v14  ;;  %v1204_v14 = vunpack.c.l.b16 %v884_v35  ;;  %v5133_v62 = vld [vmem:[#allocation6 + $0x1a0] sm:$0xf0]  ;;  %v1160_v19 = vunpack.c.l.b16 %v815_v4  ;;  %v1201_v46 = vunpack.c.l.b16 %v881_v21 }
 0x1ac   : > { %v6167_v36 = vpop.f32.mrf.mxu0  ;;  %v823_v45 = vpack.c.bf16 %v805_v10, %v805_v10  ;;  %v1175_v10 = vpack.c.b16 %v1166_v29, %v1165_v37  ;;  %v1202_v47 = vunpack.c.l.b16 %v882_v55  ;;  %v810_v57 = vpack.c.bf16 %v6071_v18, %v6071_v18 }
 0x1ad   : > { %1882 = vmatpush.bf16.msrb.mxu1 %v1223_v40  ;;  %v1207_v40 = vunpack.c.l.b16 %v887_v59  ;;  %v1174_v59 = vpack.c.b16 %v1164_v0, %v1163_v58  ;;  %v748_v15 = vpack.c.bf16 %v6167_v36, %v6167_v36  ;;  %v4620_v27 = vor.u32 %v5133_v62, %v4619_v52  ;;  %v5131_v0 = vld [vmem:[#allocation6 + $0x194] sm:$0xf] }
 0x1ae   : > { %v1168_v53 = vunpack.c.l.b16 %v823_v45  ;;  %v747_v54 = vpack.c.bf16 %v6157_v39, %v6157_v39  ;;  %v811_v36 = vpack.c.bf16 %v6097_v22, %v6097_v22  ;;  %v1158_v7 = vunpack.c.l.b16 %v813_v31 }
 0x1af   : > { %v1220_v45 = vpack.c.b16 %v1208_v32, %v1207_v40  ;;  %v1218_v40 = vpack.c.b16 %v1204_v14, %v1203_v3  ;;  %v1157_v32 = vunpack.c.l.b16 %v812_v43  ;;  %v746_v58 = vpack.c.bf16 %v6155_v51, %v6155_v51 }
 0x1b0   : > { %v1176_v33 = vpack.c.b16 %v1168_v53, %v1167_v13  ;;  %v1206_v13 = vunpack.c.l.b16 %v886_v23  ;;  %v808_v39 = vpack.c.bf16 %v6028_v9, %v6028_v9  ;;  %v809_v22 = vpack.c.bf16 %v6047_v41, %v6047_v41 }
 0x1b1   : > { %1883 = vmatpush.bf16.msrb.mxu1 %v1222_v26  ;;  %1674 = vmatmul.bf16.gmra.mxu0 %v4596_v1  ;;  %v1159_v26 = vunpack.c.l.b16 %v814_v24  ;;  %v745_v56 = vpack.c.bf16 %v6151_v42, %v6151_v42  ;;  %v1117_v35 = vunpack.c.l.b16 %v747_v54  ;;  %v1217_v51 = vpack.c.b16 %v1202_v47, %v1201_v46  ;;  %v4475_v46 = vld [vmem:[#allocation6 + $0x50] sm:$0xf]  ;;  %v5094_v47 = vld [vmem:[#allocation6 + $0x68] sm:$0xf0] }
 0x1b2   : > { %1625 = vmatmul.bf16.gmra.mxu3 %v4592_v8  ;;  %1832 = vmatpush.bf16.msra.mxu0 %v1176_v33  ;;  %v1162_v8 = vunpack.c.l.b16 %v817_v30  ;;  %v1219_v12 = vpack.c.b16 %v1206_v13, %v1205_v28  ;;  %v5130_v33 = vld [vmem:[#allocation6 + $0x18c] sm:$0xf]  ;;  %v1155_v28 = vunpack.c.l.b16 %v810_v57  ;;  %v1156_v13 = vunpack.c.l.b16 %v811_v36 }
 0x1b3   : > { %v4624_v30 = vor.u32 %v5130_v33, %v4621_v17  ;;  %v744_v9 = vpack.c.bf16 %v6147_v63, %v6147_v63  ;;  %v1171_v24 = vpack.c.b16 %v1158_v7, %v1157_v32  ;;  %v743_v42 = vpack.c.bf16 %v6143_v61, %v6143_v61 }
 0x1b4   : > { %v730_v48 = vpop.f32.mrf.mxu0  ;;  %v1173_v29 = vpack.c.b16 %v1162_v8, %v1161_v11  ;;  %v1153_v21 = vunpack.c.l.b16 %v808_v39  ;;  %v1154_v55 = vunpack.c.l.b16 %v809_v22  ;;  %v742_v3 = vpack.c.bf16 %v6137_v49, %v6137_v49 }
 0x1b5   : > { %1884 = vmatpush.bf16.msrb.mxu1 %v1221_v20  ;;  %v749_v53 = vpack.c.bf16 %v730_v48, %v730_v48  ;;  %v1118_v48 = vunpack.c.l.b16 %v748_v15  ;;  %v1172_v20 = vpack.c.b16 %v1160_v19, %v1159_v26  ;;  %v1114_v63 = vunpack.c.l.b16 %v744_v9  ;;  %v4503_v9 = vld [vmem:[#allocation6 + $0x88] sm:$0xf] }
 0x1b6   : > { %1833 = vmatpush.bf16.msra.mxu0 %v1175_v10  ;;  %v4629_v10 = vld [vmem:[#allocation6 + $0x1ac] sm:$0xf0]  ;;  %v741_v52 = vpack.c.bf16 %v6131_v2, %v6131_v2  ;;  %v1113_v62 = vunpack.c.l.b16 %v743_v42  ;;  %v740_v61 = vpack.c.bf16 %v6125_v44, %v6125_v44  ;;  %v1112_v43 = vunpack.c.l.b16 %v742_v3 }
 0x1b7   : > { %v1119_v5 = vunpack.c.l.b16 %v749_v53  ;;  %v1127_v4 = vpack.c.b16 %v1118_v48, %v1117_v35  ;;  %v4632_v11 = vor.u32 %v5131_v0, %v4629_v10  ;;  %v1170_v53 = vpack.c.b16 %v1156_v13, %v1155_v28  ;;  %v6236_v44 = vld [vmem:[%s6799_s3] ss:$0 sm:$0xff]  ;;  %v5086_v0 = vld [vmem:[#allocation6 + $0x28] sm:$0xf0] }
 0x1b8   : > { %1728 = vmatmul.bf16.gmra.mxu1 %v4628_v25  ;;  %v5087_v25 = vld [vmem:[#allocation6 + $0x30] sm:$0xf0]  ;;  %v1125_v31 = vpack.c.b16 %v1114_v63, %v1113_v62  ;;  %v1169_v26 = vpack.c.b16 %v1154_v55, %v1153_v21  ;;  %v739_v19 = vpack.c.bf16 %v6119_v34, %v6119_v34  ;;  %v1111_v15 = vunpack.c.l.b16 %v741_v52  ;;  %v4467_v21 = vld [vmem:[#allocation6 + $0x48] sm:$0xf]  ;;  %v5093_v55 = vld [vmem:[#allocation6 + $0x60] sm:$0xf0] }
 0x1b9   : > { %1772 = vmatmul.bf16.gmra.mxu2 %v4604_v16  ;;  %1885 = vmatpush.bf16.msrb.mxu1 %v1220_v45  ;;  %v4447_v16 = vld [vmem:[#allocation6 + $0x18] sm:$0xf]  ;;  %v1116_v45 = vunpack.c.l.b16 %v746_v58  ;;  %v1110_v33 = vunpack.c.l.b16 %v740_v61  ;;  %v737_v34 = vpack.c.bf16 %v6107_v60, %v6107_v60  ;;  %v735_v32 = vpack.c.bf16 %v6069_v38, %v6069_v38  ;;  %v5097_v63 = vld [vmem:[#allocation6 + $0x84] sm:$0xf] }
 0x1ba   : > { %1834 = vmatpush.bf16.msra.mxu0 %v1174_v59  ;;  %v4448_v8 = vor.u32 %v5087_v25, %v4447_v16  ;;  %v1115_v59 = vunpack.c.l.b16 %v745_v56  ;;  %v1124_v17 = vpack.c.b16 %v1112_v43, %v1111_v15  ;;  %v1109_v57 = vunpack.c.l.b16 %v739_v19  ;;  %v5090_v16 = vld [vmem:[#allocation6 + $0x4c] sm:$0xf]  ;;  %v4469_v25 = vld [vmem:[#allocation6 + $0x64] sm:$0xf0] }
 0x1bb   : > { %v1107_v7 = vunpack.c.l.b16 %v737_v34  ;;  %v4472_v28 = vor.u32 %v5090_v16, %v4469_v25  ;;  %v5104_v34 = vld [vmem:[#allocation6 + $0xbc] sm:$0xf]  ;;  %v5111_v25 = vld [vmem:[#allocation6 + $0xf4] sm:$0xf] }
 0x1bc   : > { %v732_v1 = vpop.f32.mrf.mxu0  ;;  %v1126_v14 = vpack.c.b16 %v1116_v45, %v1115_v59 }
 0x1bd   : > { %v750_v37 = vpack.c.bf16 %v732_v1, %v732_v1  ;;  %1886 = vmatpush.bf16.msrb.mxu1 %v1219_v12  ;;  %v5083_v1 = vld [vmem:[#allocation6 + $0x14] sm:$0xf]  ;;  %v4441_v12 = vld [vmem:[#allocation6 + $0x2c] sm:$0xf0] }
 0x1be   : > { %1835 = vmatpush.bf16.msra.mxu0 %v1173_v29  ;;  %v4444_v2 = vor.u32 %v5083_v1, %v4441_v12  ;;  %v738_v29 = vpack.c.bf16 %v6113_v50, %v6113_v50  ;;  %v1123_v50 = vpack.c.b16 %v1110_v33, %v1109_v57  ;;  %v4531_v1 = vld [vmem:[#allocation6 + $0xc0] sm:$0xf]  ;;  %v5108_v12 = vld [vmem:[#allocation6 + $0xd8] sm:$0xf0]  ;;  %v4525_v57 = vld [vmem:[#allocation6 + $0xd4] sm:$0xf0] }
 0x1bf   : > { %v1120_v23 = vunpack.c.l.b16 %v750_v37  ;;  %v4532_v19 = vor.u32 %v5108_v12, %v4531_v1  ;;  %v4615_v12 = vld [vmem:[#allocation6 + $0x168] sm:$0xf] }
 0x1c0   : > { %v1108_v54 = vunpack.c.l.b16 %v738_v29 }
 0x1c1   : > { %v1128_v18 = vpack.c.b16 %v1120_v23, %v1119_v5  ;;  %1887 = vmatpush.bf16.msrb.mxu1 %v1218_v40  ;;  %1679 = vmatmul.bf16.gmra.mxu0 %v4624_v30  ;;  %v4476_v23 = vor.u32 %v5094_v47, %v4475_v46  ;;  %v5100_v46 = vld [vmem:[#allocation6 + $0x98] sm:$0xf0] }
 0x1c2   : > { %1630 = vmatmul.bf16.gmra.mxu3 %v4620_v27  ;;  %1836 = vmatpush.bf16.msra.mxu0 %v1172_v20  ;;  %v736_v27 = vpack.c.bf16 %v6095_v6, %v6095_v6  ;;  %v1122_v48 = vpack.c.b16 %v1108_v54, %v1107_v7  ;;  %v1105_v6 = vunpack.c.l.b16 %v735_v32  ;;  %v4439_v20 = vld [vmem:[#allocation6 + $0x10] sm:$0xf]  ;;  %v4559_v32 = vld [vmem:[#allocation6 + $0xf8] sm:$0xf]  ;;  %v5115_v7 = vld [vmem:[#allocation6 + $0x110] sm:$0xf0] }
 0x1c3   : > { %1783 = vmatpush.bf16.msra.mxu3 %v1128_v18  ;;  %v4440_v22 = vor.u32 %v5086_v0, %v4439_v20 }
 0x1c4   : > { %v1106_v58 = vunpack.c.l.b16 %v736_v27 }
 0x1c5   : > { %1888 = vmatpush.bf16.msrb.mxu1 %v1217_v51  ;;  %v1694_v41 = vpop.f32.mrf.mxu1 }
 0x1c6   : > { %1837 = vmatpush.bf16.msra.mxu0 %v1171_v24  ;;  %v1121_v39 = vpack.c.b16 %v1106_v58, %v1105_v6  ;;  %v5101_v24 = vld [vmem:[#allocation6 + $0xa0] sm:$0xf0] }
 0x1c7   : > { %1784 = vmatpush.bf16.msra.mxu3 %v1127_v4  ;;  %v4504_v4 = vor.u32 %v5101_v24, %v4503_v9 }
 0x1c8   : > { %1889 = vmatmul.bf16.vlgmr.msrb.gmra.mxu1 %v4448_v8 }
 0x1c9   : > { %1777 = vmatmul.bf16.gmra.mxu2 %v4632_v11 }
 0x1ca   : > { %1838 = vmatpush.bf16.msra.mxu0 %v1170_v53  ;;  %v4468_v53 = vor.u32 %v5093_v55, %v4467_v21 }
 0x1cb   : > { %1785 = vmatpush.bf16.msra.mxu3 %v1126_v14  ;;  %v4497_v14 = vld [vmem:[#allocation6 + $0x9c] sm:$0xf0] }
 0x1cd   : > { %v1696_v49 = vpop.f32.mrf.mxu1 }
 0x1ce   : > { %1839 = vmatpush.bf16.msra.mxu0 %v1169_v26  ;;  %v1645_v37 = vpop.f32.mrf.mxu0 }
 0x1cf   : > { %1786 = vmatpush.bf16.msra.mxu3 %v1125_v31  ;;  %v4500_v31 = vor.u32 %v5097_v63, %v4497_v14  ;;  %v4551_v63 = vld [vmem:[#allocation6 + $0xf0] sm:$0xf]  ;;  %v5114_v14 = vld [vmem:[#allocation6 + $0x108] sm:$0xf0] }
 0x1d1   : > { %1840 = vmatmul.bf16.vlgmr.msra.gmra.mxu0 %v4444_v2 }
 0x1d3   : > { %1787 = vmatpush.bf16.msra.mxu3 %v1124_v17  ;;  %v4495_v17 = vld [vmem:[#allocation6 + $0x80] sm:$0xf] }
 0x1d4   : > { %v4496_v27 = vor.u32 %v5100_v46, %v4495_v17 }
 0x1d5   : > { %v1596_v5 = vpop.f32.mrf.mxu3  ;;  %v1699_v36 = vpop.f32.mrf.mxu1 }
 0x1d6   : > { %v1597_v40 = vadd.f32 %v6236_v44, %v1596_v5  ;;  %v1647_v60 = vpop.f32.mrf.mxu0 }
 0x1d7   : > { %1788 = vmatpush.bf16.msra.mxu3 %v1123_v50 }
 0x1d8   : > { %v1646_v30 = vadd.f32 %v1645_v37, %v1597_v40  ;;  %1894 = vmatmul.bf16.gmra.mxu1 %v4476_v23  ;;  %v4528_v40 = vor.u32 %v5104_v34, %v4525_v57  ;;  %v5121_v34 = vld [vmem:[#allocation6 + $0x140] sm:$0xf0] }
 0x1da   : > { %v6245_v18 = vadd.f32 %v1694_v41, %v1646_v30 }
 0x1db   : > { %1789 = vmatpush.bf16.msra.mxu3 %v1122_v48 }
 0x1dd   : > { %v1598_v10 = vpop.f32.mrf.mxu3  ;;  %v1701_v56 = vpop.f32.mrf.mxu1 }
 0x1de   : > { %v1599_v38 = vadd.f32 %v6236_v44, %v1598_v10  ;;  %v1650_v51 = vpop.f32.mrf.mxu0  ;;  %v5107_v10 = vld [vmem:[#allocation6 + $0xd0] sm:$0xf0] }
 0x1df   : > { %1790 = vmatpush.bf16.msra.mxu3 %v1121_v39  ;;  %v4523_v39 = vld [vmem:[#allocation6 + $0xb8] sm:$0xf] }
 0x1e0   : > { %v1648_v35 = vadd.f32 %v1647_v60, %v1599_v38  ;;  %v4560_v60 = vor.u32 %v5115_v7, %v4559_v32  ;;  %v4524_v38 = vor.u32 %v5107_v10, %v4523_v39  ;;  %v4643_v32 = vld [vmem:[#allocation6 + $0x1a0] sm:$0xf]  ;;  %v5136_v7 = vld [vmem:[#allocation6 + $0x1b8] sm:$0xf0] }
 0x1e1   : > { %1845 = vmatmul.bf16.gmra.mxu0 %v4472_v28  ;;  %v4607_v10 = vld [vmem:[#allocation6 + $0x160] sm:$0xf] }
 0x1e2   : > { %1791 = vmatmul.bf16.vlgmr.msra.gmra.mxu3 %v4440_v22  ;;  %v6248_v13 = vadd.f32 %v1696_v49, %v1648_v35  ;;  %v4553_v22 = vld [vmem:[#allocation6 + $0x10c] sm:$0xf0] }
 0x1e3   : > { %v4556_v9 = vor.u32 %v5111_v25, %v4553_v22  ;;  %v5132_v22 = vld [vmem:[#allocation6 + $0x19c] sm:$0xf] }
 0x1e5   : > { %v1601_v45 = vpop.f32.mrf.mxu3  ;;  %v1704_v8 = vpop.f32.mrf.mxu1 }
 0x1e6   : > { %v1602_v11 = vadd.f32 %v6236_v44, %v1601_v45  ;;  %v1652_v42 = vpop.f32.mrf.mxu0  ;;  %v4587_v45 = vld [vmem:[#allocation6 + $0x130] sm:$0xf] }
 0x1e8   : > { %v1651_v41 = vadd.f32 %v1650_v51, %v1602_v11  ;;  %1899 = vmatmul.bf16.gmra.mxu1 %v4504_v4  ;;  %v5122_v4 = vld [vmem:[#allocation6 + $0x148] sm:$0xf0] }
 0x1ea   : > { %v6251_v59 = vadd.f32 %v1699_v36, %v1651_v41 }
 0x1ed   : > { %v1603_v3 = vpop.f32.mrf.mxu3  ;;  %v1706_v62 = vpop.f32.mrf.mxu1 }
 0x1ee   : > { %v1604_v52 = vadd.f32 %v6236_v44, %v1603_v3  ;;  %v1655_v43 = vpop.f32.mrf.mxu0 }
 0x1f0   : > { %v1653_v61 = vadd.f32 %v1652_v42, %v1604_v52  ;;  %v5118_v52 = vld [vmem:[#allocation6 + $0x12c] sm:$0xf] }
 0x1f1   : > { %1850 = vmatmul.bf16.gmra.mxu0 %v4500_v31 }
 0x1f2   : > { %1796 = vmatmul.bf16.gmra.mxu3 %v4468_v53  ;;  %v6254_v26 = vadd.f32 %v1701_v56, %v1653_v61  ;;  %v4552_v61 = vor.u32 %v5114_v14, %v4551_v63  ;;  %v5135_v63 = vld [vmem:[#allocation6 + $0x1b0] sm:$0xf0] }
 0x1f5   : > { %v1606_v49 = vpop.f32.mrf.mxu3  ;;  %v1709_v37 = vpop.f32.mrf.mxu1 }
 0x1f6   : > { %v1607_v15 = vadd.f32 %v6236_v44, %v1606_v49  ;;  %v1657_v29 = vpop.f32.mrf.mxu0  ;;  %v5129_v49 = vld [vmem:[#allocation6 + $0x180] sm:$0xf0] }
 0x1f8   : > { %v1656_v2 = vadd.f32 %v1655_v43, %v1607_v15  ;;  %1904 = vmatmul.bf16.gmra.mxu1 %v4532_v19  ;;  %v4616_v15 = vor.u32 %v5129_v49, %v4615_v12 }
 0x1fa   : > { %v6257_v33 = vadd.f32 %v1704_v8, %v1656_v2  ;;  %v4588_v8 = vor.u32 %v5122_v4, %v4587_v45  ;;  %v1743_v45 = vpop.f32.mrf.mxu2 }
 0x1fd   : > { %v1608_v47 = vpop.f32.mrf.mxu3  ;;  %v1711_v50 = vpop.f32.mrf.mxu1 }
 0x1fe   : > { %v1609_v54 = vadd.f32 %v6236_v44, %v1608_v47  ;;  %v1660_v23 = vpop.f32.mrf.mxu0  ;;  %v4579_v47 = vld [vmem:[#allocation6 + $0x128] sm:$0xf] }
 0x200   : > { %v1658_v5 = vadd.f32 %v1657_v29, %v1609_v54  ;;  %v4609_v54 = vld [vmem:[#allocation6 + $0x17c] sm:$0xf0] }
 0x201   : > { %1855 = vmatmul.bf16.gmra.mxu0 %v4528_v40 }
 0x202   : > { %1801 = vmatmul.bf16.gmra.mxu3 %v4496_v27  ;;  %v6260_v36 = vadd.f32 %v1706_v62, %v1658_v5  ;;  %v4581_v62 = vld [vmem:[#allocation6 + $0x144] sm:$0xf0]  ;;  %v5125_v27 = vld [vmem:[#allocation6 + $0x164] sm:$0xf] }
 0x203   : > { %v4584_v1 = vor.u32 %v5118_v52, %v4581_v62  ;;  %v1745_v52 = vpop.f32.mrf.mxu2 }
 0x205   : > { %v1611_v30 = vpop.f32.mrf.mxu3  ;;  %v1714_v48 = vpop.f32.mrf.mxu1 }
 0x206   : > { %v1612_v58 = vadd.f32 %v6236_v44, %v1611_v30  ;;  %v1662_v20 = vpop.f32.mrf.mxu0 }
 0x208   : > { %v1661_v6 = vadd.f32 %v1660_v23, %v1612_v58  ;;  %1909 = vmatmul.bf16.gmra.mxu1 %v4560_v60  ;;  %v4612_v23 = vor.u32 %v5125_v27, %v4609_v54  ;;  %v4644_v60 = vor.u32 %v5136_v7, %v4643_v32 }
 0x20a   : > { %v6263_v0 = vadd.f32 %v1709_v37, %v1661_v6 }
 0x20d   : > { %v1613_v16 = vpop.f32.mrf.mxu3  ;;  %v6266_v35 = vpop.f32.mrf.mxu1 }
 0x20e   : > { %v1614_v56 = vadd.f32 %v6236_v44, %v1613_v16  ;;  %v1665_v28 = vpop.f32.mrf.mxu0  ;;  %v5128_v16 = vld [vmem:[#allocation6 + $0x178] sm:$0xf0] }
 0x210   : > { %v1663_v51 = vadd.f32 %v1662_v20, %v1614_v56  ;;  %v4608_v56 = vor.u32 %v5128_v16, %v4607_v10 }
 0x211   : > { %1860 = vmatmul.bf16.gmra.mxu0 %v4556_v9 }
 0x212   : > { %1806 = vmatmul.bf16.gmra.mxu3 %v4524_v38  ;;  %v6268_v24 = vadd.f32 %v1711_v50, %v1663_v51  ;;  %v4580_v50 = vor.u32 %v5121_v34, %v4579_v47  ;;  %v4637_v38 = vld [vmem:[#allocation6 + $0x1b4] sm:$0xf0] }
 0x213   : > { %v4640_v51 = vor.u32 %v5132_v22, %v4637_v38 }
 0x215   : > { %v1616_v11 = vpop.f32.mrf.mxu3  ;;  %v1719_v42 = vpop.f32.mrf.mxu1 }
 0x216   : > { %v1617_v41 = vadd.f32 %v6236_v44, %v1616_v11  ;;  %v6271_v55 = vpop.f32.mrf.mxu0 }
 0x218   : > { %v1666_v21 = vadd.f32 %v1665_v28, %v1617_v41  ;;  %1914 = vmatmul.bf16.gmra.mxu1 %v4588_v8 }
 0x21a   : > { %v6273_v3 = vadd.f32 %v1714_v48, %v1666_v21  ;;  %v4635_v21 = vld [vmem:[#allocation6 + $0x198] sm:$0xf] }
 0x21b   : > { %v4636_v62 = vor.u32 %v5135_v63, %v4635_v21 }
 0x21d   : > { %v6275_v53 = vpop.f32.mrf.mxu3  ;;  %v6277_v43 = vpop.f32.mrf.mxu1 }
 0x21e   : > { %v1670_v31 = vpop.f32.mrf.mxu0 }
 0x221   : > { %1865 = vmatmul.bf16.gmra.mxu0 %v4584_v1  ;;  %v1748_v1 = vpop.f32.mrf.mxu2 }
 0x222   : > { %1811 = vmatmul.bf16.gmra.mxu3 %v4552_v61 }
 0x225   : > { %v1621_v19 = vpop.f32.mrf.mxu3  ;;  %v1724_v2 = vpop.f32.mrf.mxu1 }
 0x226   : > { %v1622_v37 = vadd.f32 %v6236_v44, %v1621_v19  ;;  %v6280_v17 = vpop.f32.mrf.mxu0 }
 0x228   : > { %v1671_v29 = vadd.f32 %v1670_v31, %v1622_v37  ;;  %1919 = vmatmul.bf16.gmra.mxu1 %v4616_v15 }
 0x229   : > { %v1750_v15 = vpop.f32.mrf.mxu2 }
 0x22a   : > { %v6282_v46 = vadd.f32 %v1719_v42, %v1671_v29 }
 0x22d   : > { %v6284_v57 = vpop.f32.mrf.mxu3  ;;  %v6286_v5 = vpop.f32.mrf.mxu1 }
 0x22e   : > { %v1675_v40 = vpop.f32.mrf.mxu0 }
 0x231   : > { %1870 = vmatmul.bf16.gmra.mxu0 %v4612_v23  ;;  %v1753_v23 = vpop.f32.mrf.mxu2 }
 0x232   : > { %1816 = vmatmul.bf16.gmra.mxu3 %v4580_v50 }
 0x235   : > { %v1626_v30 = vpop.f32.mrf.mxu3  ;;  %v1729_v48 = vpop.f32.mrf.mxu1 }
 0x236   : > { %v1627_v58 = vadd.f32 %v6236_v44, %v1626_v30  ;;  %v6289_v20 = vpop.f32.mrf.mxu0 }
 0x238   : > { %v1676_v6 = vadd.f32 %v1675_v40, %v1627_v58  ;;  %1924 = vmatmul.bf16.gmra.mxu1 %v4644_v60  ;;  %v1746_v40 = vadd.f32 %v1745_v52, %v6248_v13 }
 0x23a   : > { %v6291_v39 = vadd.f32 %v1724_v2, %v1676_v6  ;;  %v1744_v2 = vadd.f32 %v1743_v45, %v6245_v18  ;;  %v1755_v6 = vpop.f32.mrf.mxu2 }
 0x23d   : > { %v6293_v25 = vpop.f32.mrf.mxu3  ;;  %v6295_v9 = vpop.f32.mrf.mxu1 }
 0x23e   : > { %v1680_v28 = vpop.f32.mrf.mxu0 }
 0x241   : > { %1875 = vmatmul.bf16.gmra.mxu0 %v4640_v51 }
 0x242   : > { %1821 = vmatmul.bf16.gmra.mxu3 %v4608_v56  ;;  %v1751_v56 = vadd.f32 %v1750_v15, %v6254_v26 }
 0x245   : > { %v1631_v4 = vpop.f32.mrf.mxu3  ;;  %v1890_v14 = vpop.f32.mrf.mxu1 }
 0x246   : > { %v1632_v11 = vadd.f32 %v6236_v44, %v1631_v4  ;;  %v6298_v41 = vpop.f32.mrf.mxu0  ;;  %v1758_v4 = vpop.f32.mrf.mxu2 }
 0x248   : > { %v1681_v8 = vadd.f32 %v1680_v28, %v1632_v11 }
 0x24a   : > { %v6300_v42 = vadd.f32 %v1729_v48, %v1681_v8  ;;  %v1749_v48 = vadd.f32 %v1748_v1, %v6251_v59  ;;  %v1754_v8 = vadd.f32 %v1753_v23, %v6257_v33 }
 0x24d   : > { %v1892_v31 = vpop.f32.mrf.mxu1  ;;  %v6303_v49 = vpop.f32.mrf.mxu3 }
 0x24e   : > { %v1841_v61 = vpop.f32.mrf.mxu0 }
 0x252   : > { %1826 = vmatmul.bf16.gmra.mxu3 %v4636_v62  ;;  %v1760_v62 = vpop.f32.mrf.mxu2 }
 0x255   : > { %v1895_v19 = vpop.f32.mrf.mxu1 }
 0x256   : > { %v1843_v12 = vpop.f32.mrf.mxu0 }
 0x25d   : > { %v1897_v54 = vpop.f32.mrf.mxu1 }
 0x25e   : > { %v1846_v37 = vpop.f32.mrf.mxu0 }
 0x265   : > { %v1792_v29 = vpop.f32.mrf.mxu3  ;;  %v1900_v58 = vpop.f32.mrf.mxu1 }
 0x266   : > { %v1793_v47 = vadd.f32 %v1792_v29, %v1744_v2  ;;  %v1848_v27 = vpop.f32.mrf.mxu0  ;;  %v1763_v2 = vpop.f32.mrf.mxu2  ;;  %v1759_v29 = vadd.f32 %v1758_v4, %v6263_v0  ;;  %v1619_v0 = vadd.f32 %v6236_v44, %v6275_v53 }
 0x268   : > { %v1842_v34 = vadd.f32 %v1841_v61, %v1793_v47 }
 0x26a   : > { %v6311_v50 = vadd.f32 %v1890_v14, %v1842_v34 }
 0x26c   : > { %1930 = vst [vmem:[%s6309_s15] sm:$0xff] %v6311_v50 }
 0x26d   : > { %v1794_v18 = vpop.f32.mrf.mxu3  ;;  %v1902_v28 = vpop.f32.mrf.mxu1 }
 0x26e   : > { %v1795_v32 = vadd.f32 %v1794_v18, %v1746_v40  ;;  %v1851_v30 = vpop.f32.mrf.mxu0  ;;  %v1761_v40 = vadd.f32 %v1760_v62, %v6268_v24  ;;  %v1765_v18 = vpop.f32.mrf.mxu2 }
 0x270   : > { %v1844_v7 = vadd.f32 %v1843_v12, %v1795_v32 }
 0x272   : > { %v6316_v60 = vadd.f32 %v1892_v31, %v1844_v7  ;;  %v1756_v31 = vadd.f32 %v1755_v6, %v6260_v36  ;;  %v1764_v6 = vadd.f32 %v1763_v2, %v6273_v3 }
 0x274   : > { %1931 = vst [vmem:[%s6309_s15 + $0x8] sm:$0xff] %v6316_v60 }
 0x275   : > { %v1797_v10 = vpop.f32.mrf.mxu3  ;;  %v1905_v52 = vpop.f32.mrf.mxu1 }
 0x276   : > { %v1798_v16 = vadd.f32 %v1797_v10, %v1749_v48  ;;  %v1853_v38 = vpop.f32.mrf.mxu0  ;;  %v1668_v10 = vadd.f32 %v6271_v55, %v1619_v0  ;;  %v1624_v55 = vadd.f32 %v6236_v44, %v6284_v57 }
 0x278   : > { %v1847_v22 = vadd.f32 %v1846_v37, %v1798_v16 }
 0x27a   : > { %v6321_v13 = vadd.f32 %v1895_v19, %v1847_v22 }
 0x27c   : > { %1932 = vst [vmem:[%s6309_s15 + $0x10] sm:$0xff] %v6321_v13 }
 0x27d   : > { %v1799_v51 = vpop.f32.mrf.mxu3  ;;  %v1907_v15 = vpop.f32.mrf.mxu1 }
 0x27e   : > { %v1800_v45 = vadd.f32 %v1799_v51, %v1751_v56  ;;  %v1856_v63 = vpop.f32.mrf.mxu0  ;;  %v1717_v56 = vadd.f32 %v6266_v35, %v1668_v10 }
 0x280   : > { %v1849_v59 = vadd.f32 %v1848_v27, %v1800_v45  ;;  %v1766_v53 = vadd.f32 %v1765_v18, %v1717_v56 }
 0x282   : > { %v6326_v11 = vadd.f32 %v1897_v54, %v1849_v59 }
 0x284   : > { %1933 = vst [vmem:[%s6309_s15 + $0x18] sm:$0xff] %v6326_v11 }
 0x285   : > { %v1802_v21 = vpop.f32.mrf.mxu3  ;;  %v1910_v23 = vpop.f32.mrf.mxu1 }
 0x286   : > { %v1803_v14 = vadd.f32 %v1802_v21, %v1754_v8  ;;  %v1858_v19 = vpop.f32.mrf.mxu0 }
 0x288   : > { %v1852_v26 = vadd.f32 %v1851_v30, %v1803_v14  ;;  %v1673_v14 = vadd.f32 %v6280_v17, %v1624_v55  ;;  %v1629_v17 = vadd.f32 %v6236_v44, %v6293_v25 }
 0x28a   : > { %v6331_v61 = vadd.f32 %v1900_v58, %v1852_v26 }
 0x28c   : > { %1934 = vst [vmem:[%s6309_s15 + $0x20] sm:$0xff] %v6331_v61 }
 0x28d   : > { %v1804_v1 = vpop.f32.mrf.mxu3  ;;  %v1912_v16 = vpop.f32.mrf.mxu1 }
 0x28e   : > { %v1805_v12 = vadd.f32 %v1804_v1, %v1756_v31  ;;  %v1861_v36 = vpop.f32.mrf.mxu0  ;;  %v1722_v31 = vadd.f32 %v6277_v43, %v1673_v14 }
 0x290   : > { %v1854_v33 = vadd.f32 %v1853_v38, %v1805_v12  ;;  %v1768_v38 = vpop.f32.mrf.mxu2 }
 0x291   : > { %v1769_v35 = vadd.f32 %v1768_v38, %v6282_v46 }
 0x292   : > { %v6336_v37 = vadd.f32 %v1902_v28, %v1854_v33 }
 0x294   : > { %1935 = vst [vmem:[%s6309_s15 + $0x28] sm:$0xff] %v6336_v37 }
 0x295   : > { %v1807_v47 = vpop.f32.mrf.mxu3  ;;  %v1915_v59 = vpop.f32.mrf.mxu1 }
 0x296   : > { %v1808_v34 = vadd.f32 %v1807_v47, %v1759_v29  ;;  %v1863_v48 = vpop.f32.mrf.mxu0 }
 0x298   : > { %v1857_v27 = vadd.f32 %v1856_v63, %v1808_v34  ;;  %v1770_v21 = vpop.f32.mrf.mxu2 }
 0x299   : > { %v1771_v33 = vadd.f32 %v1770_v21, %v1722_v31 }
 0x29a   : > { %v6341_v54 = vadd.f32 %v1905_v52, %v1857_v27  ;;  %v1678_v27 = vadd.f32 %v6289_v20, %v1629_v17  ;;  %v1634_v20 = vadd.f32 %v6236_v44, %v6303_v49 }
 0x29c   : > { %1936 = vst [vmem:[%s6309_s15 + $0x30] sm:$0xff] %v6341_v54  ;;  %v1727_v18 = vadd.f32 %v6286_v5, %v1678_v27 }
 0x29d   : > { %v1809_v32 = vpop.f32.mrf.mxu3  ;;  %v1917_v12 = vpop.f32.mrf.mxu1 }
 0x29e   : > { %v1810_v7 = vadd.f32 %v1809_v32, %v1761_v40  ;;  %v1866_v4 = vpop.f32.mrf.mxu0 }
 0x2a0   : > { %v1859_v30 = vadd.f32 %v1858_v19, %v1810_v7  ;;  %v1773_v19 = vpop.f32.mrf.mxu2 }
 0x2a1   : > { %v1774_v34 = vadd.f32 %v1773_v19, %v6291_v39 }
 0x2a2   : > { %v6348_v58 = vadd.f32 %v1907_v15, %v1859_v30 }
 0x2a4   : > { %1937 = vst [vmem:[%s6309_s15 + $0x38] sm:$0xff] %v6348_v58 }
 0x2a5   : > { %v1812_v24 = vpop.f32.mrf.mxu3  ;;  %v1920_v43 = vpop.f32.mrf.mxu1 }
 0x2a6   : > { %v1813_v22 = vadd.f32 %v1812_v24, %v1764_v6  ;;  %v1868_v62 = vpop.f32.mrf.mxu0 }
 0x2a8   : > { %v1862_v51 = vadd.f32 %v1861_v36, %v1813_v22  ;;  %v1775_v36 = vpop.f32.mrf.mxu2 }
 0x2a9   : > { %v1776_v0 = vadd.f32 %v1775_v36, %v1727_v18  ;;  %v2039_v36 = vmul.f32 %v6336_v37, %v6336_v37 }
 0x2aa   : > { %v6355_v28 = vadd.f32 %v1910_v23, %v1862_v51 }
 0x2ac   : > { %1938 = vst [vmem:[%s6309_s15 + $0x40] sm:$0xff] %v6355_v28  ;;  %v2042_v17 = vmul.f32 %v6355_v28, %v6355_v28 }
 0x2ad   : > { %v1814_v45 = vpop.f32.mrf.mxu3  ;;  %v1922_v30 = vpop.f32.mrf.mxu1 }
 0x2ae   : > { %v1815_v3 = vadd.f32 %v1814_v45, %v1766_v53  ;;  %v1871_v29 = vpop.f32.mrf.mxu0 }
 0x2b0   : > { %v1864_v8 = vadd.f32 %v1863_v48, %v1815_v3  ;;  %v1778_v6 = vpop.f32.mrf.mxu2 }
 0x2b1   : > { %v1779_v5 = vadd.f32 %v1778_v6, %v6300_v42 }
 0x2b2   : > { %v6361_v63 = vadd.f32 %v1912_v16, %v1864_v8  ;;  %v1683_v16 = vadd.f32 %v6298_v41, %v1634_v20  ;;  %v5382_v20 = vld [vmem:[#allocation4 + $0x370] sm:$0xff]  }
 0x2b4   : > { %1939 = vst [vmem:[%s6309_s15 + $0x48] sm:$0xff] %v6361_v63  ;;  %v1732_v53 = vadd.f32 %v6295_v9, %v1683_v16 }
 0x2b5   : > { %v1817_v52 = vpop.f32.mrf.mxu3  ;;  %v1925_v51 = vpop.f32.mrf.mxu1 }
 0x2b6   : > { %v1818_v26 = vadd.f32 %v1817_v52, %v1769_v35  ;;  %v1873_v7 = vpop.f32.mrf.mxu0 }
 0x2b8   : > { %v1867_v1 = vadd.f32 %v1866_v4, %v1818_v26  ;;  %v1780_v4 = vpop.f32.mrf.mxu2 }
 0x2b9   : > { %v1781_v44 = vadd.f32 %v1780_v4, %v1732_v53 }
 0x2ba   : > { %v6368_v57 = vadd.f32 %v1915_v59, %v1867_v1 }
 0x2bc   : > { %1940 = vst [vmem:[%s6309_s15 + $0x50] sm:$0xff] %v6368_v57  ;;  %v2044_v19 = vmul.f32 %v6368_v57, %v6368_v57 }
 0x2bd   : > { %v1819_v15 = vpop.f32.mrf.mxu3  ;;  %v1927_v55 = vpop.f32.mrf.mxu1 }
 0x2be   : > { %v1820_v46 = vadd.f32 %v1819_v15, %v1771_v33  ;;  %v1876_v22 = vpop.f32.mrf.mxu0  ;;  %v2043_v15 = vmul.f32 %v6361_v63, %v6361_v63 }
 0x2c0   : > { %v1869_v2 = vadd.f32 %v1868_v62, %v1820_v46  ;;  %v6433_v46 = vpack.c.bf16 %v6361_v63, %v6355_v28 }
 0x2c2   : > { %v6374_v47 = vadd.f32 %v1917_v12, %v1869_v2  ;;  %v2054_v2 = vpack.c.bf16 %v2043_v15, %v2042_v17 }
 0x2c4   : > { %1941 = vst [vmem:[%s6309_s15 + $0x58] sm:$0xff] %v6374_v47  ;;  %v2045_v1 = vmul.f32 %v6374_v47, %v6374_v47  ;;  %v6424_v12 = vpack.c.bf16 %v6374_v47, %v6368_v57 }
 0x2c5   : > { %v1822_v23 = vpop.f32.mrf.mxu3 }
 0x2c6   : > { %v1823_v40 = vadd.f32 %v1822_v23, %v1774_v34  ;;  %v1878_v59 = vpop.f32.mrf.mxu0  ;;  %v2055_v33 = vpack.c.bf16 %v2045_v1, %v2044_v19  ;;  %v2040_v34 = vmul.f32 %v6341_v54, %v6341_v54  ;;  %v6451_v23 = vpack.c.bf16 %v6336_v37, %v6331_v61 }
 0x2c8   : > { %v1872_v32 = vadd.f32 %v1871_v29, %v1823_v40  ;;  %v2041_v29 = vmul.f32 %v6348_v58, %v6348_v58  ;;  %v2038_v40 = vmul.f32 %v6331_v61, %v6331_v61 }
 0x2ca   : > { %v6381_v25 = vadd.f32 %v1920_v43, %v1872_v32  ;;  %v6442_v43 = vpack.c.bf16 %v6348_v58, %v6341_v54  ;;  %v2053_v27 = vpack.c.bf16 %v2041_v29, %v2040_v34  ;;  %v2052_v18 = vpack.c.bf16 %v2039_v36, %v2038_v40 }
 0x2cb   : > { %v2037_v32 = vmul.f32 %v6326_v11, %v6326_v11 }
 0x2cc   : > { %1942 = vst [vmem:[%s6309_s15 + $0x60] sm:$0xff] %v6381_v25  ;;  %v2046_v62 = vmul.f32 %v6381_v25, %v6381_v25 }
 0x2cd   : > { %v1824_v48 = vpop.f32.mrf.mxu3 }
 0x2ce   : > { %v1825_v39 = vadd.f32 %v1824_v48, %v1776_v0  ;;  %v2036_v0 = vmul.f32 %v6321_v13, %v6321_v13 }
 0x2d0   : > { %v1874_v10 = vadd.f32 %v1873_v7, %v1825_v39  ;;  %v6460_v7 = vpack.c.bf16 %v6326_v11, %v6321_v13  ;;  %v2051_v48 = vpack.c.bf16 %v2037_v32, %v2036_v0  ;;  %v2035_v39 = vmul.f32 %v6316_v60, %v6316_v60 }
 0x2d2   : > { %v6387_v24 = vadd.f32 %v1922_v30, %v1874_v10  ;;  %v6464_v30 = vld [vmem:[#allocation4 + $0x378] sm:$0xff]   ;;  %v6472_v10 = vpack.c.bf16 %v6316_v60, %v6311_v50 }
 0x2d3   : > { %v2010_v6 = vunpack.c.l.bf16 %v6464_v30 }
 0x2d4   : > { %1943 = vst [vmem:[%s6309_s15 + $0x68] sm:$0xff] %v6387_v24  ;;  %v2047_v52 = vmul.f32 %v6387_v24, %v6387_v24  ;;  %v6415_v26 = vpack.c.bf16 %v6387_v24, %v6381_v25 }
 0x2d5   : > { %v1827_v38 = vpop.f32.mrf.mxu3 }
 0x2d6   : > { %v1828_v56 = vadd.f32 %v1827_v38, %v1779_v5  ;;  %v2056_v31 = vpack.c.bf16 %v2047_v52, %v2046_v62  ;;  %v2034_v5 = vmul.f32 %v6311_v50, %v6311_v50  ;;  %v5280_v38 = vunpack.c.h.bf16 %v5382_v20  ;;  %v5376_v62 = vld [vmem:[#allocation4 + $0x340] sm:$0xff]  }
 0x2d7   : > { %v5256_v1 = vunpack.c.h.bf16 %v5376_v62  ;;  %v5255_v19 = vunpack.c.l.bf16 %v5376_v62 }
 0x2d8   : > { %v1877_v45 = vadd.f32 %v1876_v22, %v1828_v56  ;;  %v2050_v16 = vpack.c.bf16 %v2035_v39, %v2034_v5  ;;  %v1946_v22 = vld [vmem:[#allocation4 + $0x2f8] sm:$0xf]  ;;  %v5381_v56 = vld [vmem:[#allocation4 + $0x368] sm:$0xff]  }
 0x2d9   : > { %v5276_v53 = vunpack.c.h.bf16 %v5381_v56  ;;  %v5275_v4 = vunpack.c.l.bf16 %v5381_v56 }
 0x2da   : > { %v6394_v3 = vadd.f32 %v1925_v51, %v1877_v45  ;;  %v5279_v51 = vunpack.c.l.bf16 %v5382_v20  ;;  %v5380_v45 = vld [vmem:[#allocation4 + $0x360] sm:$0xff]  }
 0x2dc   : > { %1944 = vst [vmem:[%s6309_s15 + $0x70] sm:$0xff] %v6394_v3  ;;  %v2048_v9 = vmul.f32 %v6394_v3, %v6394_v3 }
 0x2dd   : > { %v1829_v49 = vpop.f32.mrf.mxu3 }
 0x2de   : > { %v1830_v42 = vadd.f32 %v1829_v49, %v1781_v44  ;;  %v5272_v44 = vunpack.c.h.bf16 %v5380_v45  ;;  %v5379_v49 = vld [vmem:[#allocation4 + $0x358] sm:$0xff]  }
 0x2e0   : > { %v1879_v41 = vadd.f32 %v1878_v59, %v1830_v42  ;;  %v5271_v42 = vunpack.c.l.bf16 %v5380_v45  ;;  %v5268_v59 = vunpack.c.h.bf16 %v5379_v49  ;;  %v1947_v45 = vld [vmem:[#allocation4 + $0x2fc] sm:$0xf] }
 0x2e2   : > { %v6398_v8 = vadd.f32 %v1927_v55, %v1879_v41  ;;  %v5378_v41 = vld [vmem:[#allocation4 + $0x350] sm:$0xff]   ;;  %v5267_v55 = vunpack.c.l.bf16 %v5379_v49  ;;  %v5369_v49 = vld [vmem:[#allocation4 + $0x300] sm:$0xff]  }
 0x2e4   : > { %1945 = vst [vmem:[%s6309_s15 + $0x78] sm:$0xff] %v6398_v8  ;;  %v6404_v21 = vpack.c.bf16 %v6398_v8, %v6394_v3  ;;  %v2049_v35 = vmul.f32 %v6398_v8, %v6398_v8 }
 0x2e6   : > { %2021 = vmatpush.bf16.msrb.mxu2 %v6404_v21  ;;  %v2057_v14 = vpack.c.bf16 %v2049_v35, %v2048_v9  ;;  %v5264_v9 = vunpack.c.h.bf16 %v5378_v41  ;;  %v5377_v35 = vld [vmem:[#allocation4 + $0x348] sm:$0xff]  }
 0x2e7   : > { %v5260_v52 = vunpack.c.h.bf16 %v5377_v35 }
 0x2e8   : > { %2058 = vmatpush.bf16.msrb.mxu3 %v2057_v14  ;;  %v5263_v14 = vunpack.c.l.bf16 %v5378_v41  ;;  %v5228_v41 = vunpack.c.h.bf16 %v5369_v49 }
 0x2ea   : > { %2022 = vmatpush.bf16.msrb.mxu2 %v6415_v26 }
 0x2ec   : > { %2059 = vmatpush.bf16.msrb.mxu3 %v2056_v31  ;;  %v5259_v31 = vunpack.c.l.bf16 %v5377_v35 }
 0x2ee   : > { %2023 = vmatpush.bf16.msrb.mxu2 %v6424_v12 }
 0x2f0   : > { %2060 = vmatpush.bf16.msrb.mxu3 %v2055_v33  ;;  %v6477_v33 = vld [vmem:[#allocation4 + $0x338] sm:$0xff]  }
 0x2f1   : > { %v1995_v15 = vunpack.c.h.bf16 %v6477_v33 }
 0x2f2   : > { %2024 = vmatpush.bf16.msrb.mxu2 %v6433_v46 }
 0x2f4   : > { %2061 = vmatpush.bf16.msrb.mxu3 %v2054_v2 }
 0x2f6   : > { %2025 = vmatpush.bf16.msrb.mxu2 %v6442_v43 }
 0x2f8   : > { %2062 = vmatpush.bf16.msrb.mxu3 %v2053_v27  ;;  %v2012_v27 = vunpack.c.h.bf16 %v6464_v30 }
 0x2fa   : > { %2026 = vmatpush.bf16.msrb.mxu2 %v6451_v23 }
 0x2fc   : > { %2063 = vmatpush.bf16.msrb.mxu3 %v2052_v18 }
 0x2fe   : > { %2027 = vmatpush.bf16.msrb.mxu2 %v6460_v7 }
 0x300   : > { %2064 = vmatpush.bf16.msrb.mxu3 %v2051_v48 }
 0x302   : > { %2028 = vmatpush.bf16.msrb.mxu2 %v6472_v10 }
 0x304   : > { %2065 = vmatpush.bf16.msrb.mxu3 %v2050_v16 }
 0x305   : > { %2029 = vmatmul.bf16.vlgmr.msrb.gmra.mxu2 %v1946_v22 }
 0x306   : > { %2071 = vmatpush.msra.mxu2 %v2010_v6 }
 0x307   : > { %2066 = vmatmul.bf16.vlgmr.msrb.gmra.mxu3 %v1946_v22 }
 0x308   : > { %2092 = vmatpush.msra.mxu3 %v2010_v6  ;;  %2072 = vmatpush.msra.mxu2 %v5280_v38 }
 0x30a   : > { %2073 = vmatpush.msra.mxu2 %v5279_v51  ;;  %2093 = vmatpush.msra.mxu3 %v5280_v38 }
 0x30c   : > { %2074 = vmatpush.msra.mxu2 %v5276_v53  ;;  %2094 = vmatpush.msra.mxu3 %v5279_v51 }
 0x30e   : > { %2075 = vmatpush.msra.mxu2 %v5275_v4  ;;  %2095 = vmatpush.msra.mxu3 %v5276_v53 }
 0x310   : > { %2076 = vmatpush.msra.mxu2 %v5272_v44  ;;  %2096 = vmatpush.msra.mxu3 %v5275_v4  ;;  %v1963_v4 = vunpack.c.l.bf16 %v1947_v45 }
 0x312   : > { %2077 = vmatpush.msra.mxu2 %v5271_v42  ;;  %2097 = vmatpush.msra.mxu3 %v5272_v44 }
 0x314   : > { %2078 = vmatpush.msra.mxu2 %v5268_v59  ;;  %2098 = vmatpush.msra.mxu3 %v5271_v42  ;;  %v5227_v42 = vunpack.c.l.bf16 %v5369_v49 }
 0x316   : > { %2079 = vmatpush.msra.mxu2 %v5267_v55  ;;  %2099 = vmatpush.msra.mxu3 %v5268_v59 }
 0x318   : > { %2080 = vmatpush.msra.mxu2 %v5264_v9  ;;  %2100 = vmatpush.msra.mxu3 %v5267_v55  ;;  %v5370_v55 = vld [vmem:[#allocation4 + $0x308] sm:$0xff]  }
 0x31a   : > { %2081 = vmatpush.msra.mxu2 %v5263_v14  ;;  %2101 = vmatpush.msra.mxu3 %v5264_v9  ;;  %v5231_v9 = vunpack.c.l.bf16 %v5370_v55 }
 0x31c   : > { %2082 = vmatpush.msra.mxu2 %v5260_v52  ;;  %2102 = vmatpush.msra.mxu3 %v5263_v14 }
 0x31e   : > { %2083 = vmatpush.msra.mxu2 %v5259_v31  ;;  %2103 = vmatpush.msra.mxu3 %v5260_v52  ;;  %v5374_v52 = vld [vmem:[#allocation4 + $0x328] sm:$0xff]  }
 0x31f   : > { %v5247_v62 = vunpack.c.l.bf16 %v5374_v52 }
 0x320   : > { %2084 = vmatpush.msra.mxu2 %v5256_v1  ;;  %2104 = vmatpush.msra.mxu3 %v5259_v31  ;;  %v5248_v31 = vunpack.c.h.bf16 %v5374_v52 }
 0x322   : > { %2085 = vmatpush.msra.mxu2 %v5255_v19  ;;  %2105 = vmatpush.msra.mxu3 %v5256_v1  ;;  %v5375_v1 = vld [vmem:[#allocation4 + $0x330] sm:$0xff]  }
 0x324   : > { %2106 = vmatpush.msra.mxu3 %v5255_v19  ;;  %2086 = vmatpush.msra.mxu2 %v1995_v15  ;;  %v5251_v19 = vunpack.c.l.bf16 %v5375_v1 }
 0x326   : > { %2107 = vmatpush.msra.mxu3 %v1995_v15  ;;  %2146 = vmatpush.msrb.mxu2 %v2012_v27  ;;  %v5252_v15 = vunpack.c.h.bf16 %v5375_v1 }
 0x388   : > { %v2030_v17 = vpop.f32.mrf.mxu2 }
 0x389   : > { %2087 = vmatmul.f32.vlgmr.msra.gmra.mxu2 %v2030_v17  ;;  %v1978_v17 = vunpack.c.l.bf16 %v6477_v33 }
 0x38a   : > { %v2067_v2 = vpop.f32.mrf.mxu3  ;;  %2284 = vmatpush.msra.mxu2 %v2012_v27 }
 0x38b   : > { %2108 = vmatmul.f32.vlgmr.msra.gmra.mxu3 %v2067_v2 }
 0x390   : > { %v2032_v29 = vpop.f32.mrf.mxu2 }
 0x392   : > { %v2069_v34 = vpop.f32.mrf.mxu3 }
 0x40c   : > { %v2088_v36 = vpop.f32.mrf.mxu2 }
 0x40d   : > { %v2091_v40 = vmul.f32 0.00390625, %v2088_v36 }
 0x40e   : > { %v2109_v18 = vpop.f32.mrf.mxu3 }
 0x40f   : > { %v2113_v32 = vmul.f32 %v2091_v40, %v2091_v40  ;;  %v2112_v0 = vmul.f32 0.00390625, %v2109_v18  ;;  %v2264_v51 = vsub.f32 0.0, %v2091_v40 }
 0x411   : > { %v2114_v48 = vsub.f32 %v2112_v0, %v2113_v32 }
 0x413   : > { %v2115_v39 = vmax.f32 %v2114_v48, 0.0 }
 0x415   : > { %v2116_v6 = vadd.f32 1e-05, %v2115_v39 }
 0x417   : > { %5475 = vrsqrt.f32 %v2116_v6  ;;  %vm2123_vm2 = vweird.f32 %v2116_v6 }
 0x41d   : > { %v5476_v20 = vpop.eup %5475 }
 0x41e   : > { %v2118_v5 = vmul.f32 %v5476_v20, %v2116_v6  ;;  %vm2124_vm1 = vweird.f32 %v5476_v20 }
 0x41f   : > { %vm2125_vm4 = vmor %vm2123_vm2, %vm2124_vm1 }
 0x420   : > { %v2119_v16 = vmul.f32 %v5476_v20, %v2118_v5 }
 0x422   : > { %v2120_v22 = vmul.f32 0.5, %v2119_v16 }
 0x424   : > { %v2121_v38 = vsub.f32 1.5, %v2120_v22 }
 0x426   : > { %v2122_v56 = vmul.f32 %v5476_v20, %v2121_v38 }
 0x428   : > { %v2126_v30 = vsel %vm2125_vm4, %v5476_v20, %v2122_v56 }
 0x429   : > { %4645 = vmatmul.msk.f32.vlgmr.msrb.gmra.mxu2 %vm2127_vm3, %v2126_v30  ;;  %v2265_v53 = vmul.f32 %v2264_v51, %v2126_v30 }
 0x431   : > { %4662 = vmatmul.msk.f32.vlgmr.msra.gmra.mxu2 %vm2127_vm3, %v2265_v53 }
 0x4ac   : > { %v2148_v44 = vpop.f32.mrf.mxu2 }
 0x4ad   : > { %2214 = vmatpush.msrb.mxu3 %v2148_v44 }
 0x4ae   : > { %4646 = vmatmul.msk.f32.vlgmr.msrb.gmra.mxu3 %vm2127_vm3, %v1963_v4 }
 0x4b4   : > { %v2286_v59 = vpop.f32.mrf.mxu2 }
 0x4b5   : > { %2304 = vmatpush.msrb.mxu2 %v2286_v59 }
 0x4b6   : > { %4647 = vmatmul.msk.f32.gmra.mxu3 %vm2127_vm3, %v5227_v42  ;;  %4663 = vmatmul.msk.f32.vlgmr.msrb.gmra.mxu2 %vm2127_vm3, %v1963_v4 }
 0x4b7   : > { %2626 = vmatpush.bf16.msra.mxu2 %v6404_v21  ;;  %v5232_v21 = vunpack.c.h.bf16 %v5370_v55 }
 0x4bb   : > { %2627 = vmatpush.bf16.msra.mxu2 %v6415_v26  ;;  %v5371_v26 = vld [vmem:[#allocation4 + $0x310] sm:$0xff]  }
 0x4be   : > { %4648 = vmatmul.msk.f32.gmra.mxu3 %vm2127_vm3, %v5228_v41  ;;  %4664 = vmatmul.msk.f32.gmra.mxu2 %vm2127_vm3, %v5227_v42 }
 0x4bf   : > { %2628 = vmatpush.bf16.msra.mxu2 %v6424_v12  ;;  %v5235_v12 = vunpack.c.l.bf16 %v5371_v26 }
 0x4c3   : > { %2629 = vmatpush.bf16.msra.mxu2 %v6433_v46  ;;  %v5236_v46 = vunpack.c.h.bf16 %v5371_v26 }
 0x4c6   : > { %4649 = vmatmul.msk.f32.gmra.mxu3 %vm2127_vm3, %v5231_v9  ;;  %4665 = vmatmul.msk.f32.gmra.mxu2 %vm2127_vm3, %v5228_v41 }
 0x4c7   : > { %2630 = vmatpush.bf16.msra.mxu2 %v6442_v43  ;;  %v5372_v43 = vld [vmem:[#allocation4 + $0x318] sm:$0xff]  }
 0x4cb   : > { %2631 = vmatpush.bf16.msra.mxu2 %v6451_v23  ;;  %v5239_v23 = vunpack.c.l.bf16 %v5372_v43 }
 0x4ce   : > { %4650 = vmatmul.msk.f32.gmra.mxu3 %vm2127_vm3, %v5232_v21  ;;  %4666 = vmatmul.msk.f32.gmra.mxu2 %vm2127_vm3, %v5231_v9 }
 0x4cf   : > { %2632 = vmatpush.bf16.msra.mxu2 %v6460_v7  ;;  %v5240_v7 = vunpack.c.h.bf16 %v5372_v43 }
 0x4d3   : > { %2633 = vmatpush.bf16.msra.mxu2 %v6472_v10  ;;  %v5373_v10 = vld [vmem:[#allocation4 + $0x320] sm:$0xff]  }
 0x4d4   : > { %v5243_v35 = vunpack.c.l.bf16 %v5373_v10  ;;  %v5244_v14 = vunpack.c.h.bf16 %v5373_v10 }
 0x4d6   : > { %4651 = vmatmul.msk.f32.gmra.mxu3 %vm2127_vm3, %v5235_v12  ;;  %4667 = vmatmul.msk.f32.gmra.mxu2 %vm2127_vm3, %v5232_v21 }
 0x4de   : > { %4652 = vmatmul.msk.f32.gmra.mxu3 %vm2127_vm3, %v5236_v46  ;;  %4668 = vmatmul.msk.f32.gmra.mxu2 %vm2127_vm3, %v5235_v12 }
 0x4e6   : > { %4653 = vmatmul.msk.f32.gmra.mxu3 %vm2127_vm3, %v5239_v23  ;;  %4669 = vmatmul.msk.f32.gmra.mxu2 %vm2127_vm3, %v5236_v46  ;;  %v5149_v46 = vld [vmem:[#allocation4 + $0x98] sm:$0xff] }
 0x4ee   : > { %4654 = vmatmul.msk.f32.gmra.mxu3 %vm2127_vm3, %v5240_v7  ;;  %4670 = vmatmul.msk.f32.gmra.mxu2 %vm2127_vm3, %v5239_v23 }
 0x4f6   : > { %4655 = vmatmul.msk.f32.gmra.mxu3 %vm2127_vm3, %v5243_v35  ;;  %4671 = vmatmul.msk.f32.gmra.mxu2 %vm2127_vm3, %v5240_v7 }
 0x4fe   : > { %4656 = vmatmul.msk.f32.gmra.mxu3 %vm2127_vm3, %v5244_v14  ;;  %4672 = vmatmul.msk.f32.gmra.mxu2 %vm2127_vm3, %v5243_v35 }
 0x506   : > { %4657 = vmatmul.msk.f32.gmra.mxu3 %vm2127_vm3, %v5247_v62  ;;  %4673 = vmatmul.msk.f32.gmra.mxu2 %vm2127_vm3, %v5244_v14 }
 0x50e   : > { %4658 = vmatmul.msk.f32.gmra.mxu3 %vm2127_vm3, %v5248_v31  ;;  %4674 = vmatmul.msk.f32.gmra.mxu2 %vm2127_vm3, %v5247_v62 }
 0x516   : > { %4659 = vmatmul.msk.f32.gmra.mxu3 %vm2127_vm3, %v5251_v19  ;;  %4675 = vmatmul.msk.f32.gmra.mxu2 %vm2127_vm3, %v5248_v31 }
 0x51e   : > { %4660 = vmatmul.msk.f32.gmra.mxu3 %vm2127_vm3, %v5252_v15  ;;  %4676 = vmatmul.msk.f32.gmra.mxu2 %vm2127_vm3, %v5251_v19 }
 0x526   : > { %4661 = vmatmul.msk.f32.gmra.mxu3 %vm2127_vm3, %v1978_v17  ;;  %4677 = vmatmul.msk.f32.gmra.mxu2 %vm2127_vm3, %v5252_v15 }
 0x52e   : > { %4678 = vmatmul.msk.f32.gmra.mxu2 %vm2127_vm3, %v1978_v17 }
 0x531   : > { %v2216_v2 = vpop.f32.mrf.mxu3 }
 0x532   : > { %v2354_v29 = vmul.f32 %v2216_v2, %v6311_v50 }
 0x536   : > { %2634 = vmatmul.bf16.vlgmr.msra.gmra.mxu2 %v5149_v46  ;;  %v5168_v46 = vld [vmem:[#allocation4 + $0x130] sm:$0xff] }
 0x539   : > { %v6525_v34 = vpop.f32.mrf.mxu3  ;;  %v2306_v27 = vpop.f32.mrf.mxu2 }
 0x53a   : > { %v6527_v36 = vadd.f32 %v2354_v29, %v2306_v27 }
 0x541   : > { %v2222_v40 = vpop.f32.mrf.mxu3  ;;  %v6529_v18 = vpop.f32.mrf.mxu2 }
 0x542   : > { %v2356_v32 = vmul.f32 %v2222_v40, %v6321_v13 }
 0x549   : > { %v6532_v33 = vpop.f32.mrf.mxu3  ;;  %v2312_v0 = vpop.f32.mrf.mxu2 }
 0x54a   : > { %v6534_v48 = vadd.f32 %v2356_v32, %v2312_v0  ;;  %v5150_v32 = vld [vmem:[#allocation4 + $0xa0] sm:$0xff] }
 0x54b   : > { %2639 = vmatmul.bf16.gmra.mxu2 %v5150_v32  ;;  %v5179_v32 = vld [vmem:[#allocation4 + $0x188] sm:$0xff] }
 0x551   : > { %v2228_v39 = vpop.f32.mrf.mxu3  ;;  %v6536_v6 = vpop.f32.mrf.mxu2 }
 0x552   : > { %v2358_v50 = vmul.f32 %v2228_v39, %v6331_v61 }
 0x559   : > { %v6539_v20 = vpop.f32.mrf.mxu3  ;;  %v2318_v5 = vpop.f32.mrf.mxu2 }
 0x55a   : > { %v6541_v16 = vadd.f32 %v2358_v50, %v2318_v5 }
 0x561   : > { %v2234_v22 = vpop.f32.mrf.mxu3  ;;  %v6543_v38 = vpop.f32.mrf.mxu2 }
 0x562   : > { %v2360_v13 = vmul.f32 %v2234_v22, %v6341_v54 }
 0x569   : > { %v2237_v56 = vpop.f32.mrf.mxu3  ;;  %v2324_v30 = vpop.f32.mrf.mxu2 }
 0x56a   : > { %v6546_v51 = vadd.f32 %v2360_v13, %v2324_v30  ;;  %v2361_v50 = vmul.f32 %v2237_v56, %v6348_v58  ;;  %v2359_v30 = vmul.f32 %v6539_v20, %v6336_v37  ;;  %v2357_v58 = vmul.f32 %v6532_v33, %v6326_v11 }
 0x56b   : > { %v2355_v20 = vmul.f32 %v6525_v34, %v6316_v60  ;;  %v2386_v60 = vmax.f32 %v6527_v36, 0.0  ;;  %v5176_v36 = vld [vmem:[#allocation4 + $0x170] sm:$0xff] }
 0x56c   : > { %v2392_v56 = vmax.f32 %v6546_v51, 0.0 }
 0x56d   : > { %v2371_v11 = vadd.f32 %v2355_v20, %v6529_v18  ;;  %v5145_v18 = vld [vmem:[#allocation4 + $0x78] sm:$0xff] }
 0x571   : > { %v2240_v53 = vpop.f32.mrf.mxu3  ;;  %v2327_v45 = vpop.f32.mrf.mxu2 }
 0x579   : > { %v2243_v4 = vpop.f32.mrf.mxu3  ;;  %v2330_v44 = vpop.f32.mrf.mxu2 }
 0x581   : > { %v2246_v49 = vpop.f32.mrf.mxu3  ;;  %v2333_v61 = vpop.f32.mrf.mxu2 }
 0x582   : > { %v2364_v2 = vmul.f32 %v2246_v49, %v6368_v57 }
 0x589   : > { %v2249_v42 = vpop.f32.mrf.mxu3  ;;  %v2336_v59 = vpop.f32.mrf.mxu2 }
 0x58a   : > { %v2365_v1 = vmul.f32 %v2249_v42, %v6374_v47  ;;  %v2380_v40 = vadd.f32 %v2364_v2, %v2336_v59  ;;  %v2388_v42 = vmax.f32 %v6534_v48, 0.0  ;;  %v5152_v48 = vld [vmem:[#allocation4 + $0xb0] sm:$0xff]  ;;  %v5165_v2 = vld [vmem:[#allocation4 + $0x118] sm:$0xff] }
 0x58c   : > { %v2396_v5 = vmax.f32 %v2380_v40, 0.0  ;;  %v5144_v40 = vld [vmem:[#allocation4 + $0x70] sm:$0xff] }
 0x591   : > { %v2252_v41 = vpop.f32.mrf.mxu3  ;;  %v2339_v55 = vpop.f32.mrf.mxu2 }
 0x592   : > { %v2366_v52 = vmul.f32 %v2252_v41, %v6381_v25  ;;  %v2381_v29 = vadd.f32 %v2365_v1, %v2339_v55  ;;  %v2362_v25 = vmul.f32 %v2240_v53, %v6355_v28  ;;  %v2375_v28 = vadd.f32 %v2359_v30, %v6543_v38  ;;  %v5151_v38 = vld [vmem:[#allocation4 + $0xa8] sm:$0xff]  ;;  %v5141_v41 = vld [vmem:[#allocation4 + $0x58] sm:$0xff]  ;;  %v5138_v55 = vld [vmem:[#allocation4 + $0x40] sm:$0xff] }
 0x593   : > { %2644 = vmatmul.bf16.gmra.mxu2 %v5151_v38  ;;  %v5139_v1 = vld [vmem:[#allocation4 + $0x48] sm:$0xff] }
 0x594   : > { %v2397_v47 = vmax.f32 %v2381_v29, 0.0  ;;  %v2378_v57 = vadd.f32 %v2362_v25, %v2330_v44  ;;  %v2391_v44 = vmax.f32 %v2375_v28, 0.0  ;;  %v5172_v29 = vld [vmem:[#allocation4 + $0x150] sm:$0xff]  ;;  %v5171_v30 = vld [vmem:[#allocation4 + $0x148] sm:$0xff]  ;;  %v5153_v28 = vld [vmem:[#allocation4 + $0xb8] sm:$0xff] }
 0x596   : > { %v2408_v13 = vpack.c.bf16 %v2397_v47, %v2396_v5  ;;  %v5178_v47 = vld [vmem:[#allocation4 + $0x180] sm:$0xff] }
 0x599   : > { %v2255_v9 = vpop.f32.mrf.mxu3  ;;  %v2342_v21 = vpop.f32.mrf.mxu2 }
 0x59a   : > { %v2367_v7 = vmul.f32 %v2255_v9, %v6387_v24  ;;  %v2382_v19 = vadd.f32 %v2366_v52, %v2342_v21  ;;  %v2363_v24 = vmul.f32 %v2243_v4, %v6361_v63  ;;  %v2377_v63 = vadd.f32 %v2361_v50, %v2327_v45  ;;  %v5142_v9 = vld [vmem:[#allocation4 + $0x60] sm:$0xff]  ;;  %v5163_v50 = vld [vmem:[#allocation4 + $0x108] sm:$0xff] }
 0x59b   : > { %v2394_v4 = vmax.f32 %v2378_v57, 0.0  ;;  %v2373_v45 = vadd.f32 %v2357_v58, %v6536_v6  ;;  %v2387_v6 = vmax.f32 %v2371_v11, 0.0  ;;  %v5146_v21 = vld [vmem:[#allocation4 + $0x80] sm:$0xff]  ;;  %v5177_v57 = vld [vmem:[#allocation4 + $0x178] sm:$0xff] }
 0x59c   : > { %v2379_v0 = vadd.f32 %v2363_v24, %v2333_v61  ;;  %v2393_v53 = vmax.f32 %v2377_v63, 0.0  ;;  %v2390_v61 = vmax.f32 %v6541_v16, 0.0  ;;  %v5137_v16 = vld [vmem:[#allocation4 + $0x38] sm:$0xff]  ;;  %v5166_v52 = vld [vmem:[#allocation4 + $0x120] sm:$0xff]  ;;  %v5140_v24 = vld [vmem:[#allocation4 + $0x50] sm:$0xff] }
 0x59d   : > { %v2389_v33 = vmax.f32 %v2373_v45, 0.0  ;;  %v2403_v34 = vpack.c.bf16 %v2387_v6, %v2386_v60  ;;  %v5169_v58 = vld [vmem:[#allocation4 + $0x138] sm:$0xff] }
 0x59e   : > { %v2395_v22 = vmax.f32 %v2379_v0, 0.0  ;;  %v2406_v37 = vpack.c.bf16 %v2393_v53, %v2392_v56  ;;  %v2405_v51 = vpack.c.bf16 %v2391_v44, %v2390_v61  ;;  %v5164_v0 = vld [vmem:[#allocation4 + $0x110] sm:$0xff]  ;;  %v5161_v53 = vld [vmem:[#allocation4 + $0xf8] sm:$0xff] }
 0x59f   : > { %v2404_v59 = vpack.c.bf16 %v2389_v33, %v2388_v42 }
 0x5a0   : > { %v2407_v49 = vpack.c.bf16 %v2395_v22, %v2394_v4  ;;  %v5154_v22 = vld [vmem:[#allocation4 + $0xc0] sm:$0xff] }
 0x5a1   : > { %v2345_v26 = vpop.f32.mrf.mxu2  ;;  %v2258_v12 = vpop.f32.mrf.mxu3  ;;  %v5170_v4 = vld [vmem:[#allocation4 + $0x140] sm:$0xff] }
 0x5a2   : > { %v2368_v23 = vmul.f32 %v2258_v12, %v6394_v3  ;;  %v2383_v62 = vadd.f32 %v2367_v7, %v2345_v26  ;;  %v5160_v26 = vld [vmem:[#allocation4 + $0xf0] sm:$0xff]  ;;  %v5167_v7 = vld [vmem:[#allocation4 + $0x128] sm:$0xff] }
 0x5a3   : > { %2649 = vmatmul.bf16.gmra.mxu2 %v5152_v48  ;;  %v5184_v12 = vld [vmem:[#allocation4 + $0x1b0] sm:$0xff] }
 0x5a4   : > { %v2399_v27 = vmax.f32 %v2383_v62, 0.0  ;;  %3015 = vmatpush.bf16.msrb.mxu2 %v5184_v12  ;;  %v5173_v62 = vld [vmem:[#allocation4 + $0x158] sm:$0xff] }
 0x5a9   : > { %v2348_v54 = vpop.f32.mrf.mxu2  ;;  %v2261_v43 = vpop.f32.mrf.mxu3 }
 0x5aa   : > { %v2369_v10 = vmul.f32 %v2261_v43, %v6398_v8  ;;  %v2384_v35 = vadd.f32 %v2368_v23, %v2348_v54  ;;  %v2398_v8 = vmax.f32 %v2382_v19, 0.0  ;;  %v5175_v54 = vld [vmem:[#allocation4 + $0x168] sm:$0xff] }
 0x5ab   : > { %v5159_v43 = vld [vmem:[#allocation4 + $0xe8] sm:$0xff] }
 0x5ac   : > { %v2400_v15 = vmax.f32 %v2384_v35, 0.0  ;;  %v2409_v39 = vpack.c.bf16 %v2399_v27, %v2398_v8  ;;  %v5183_v23 = vld [vmem:[#allocation4 + $0x1a8] sm:$0xff]  ;;  %v5158_v35 = vld [vmem:[#allocation4 + $0xe0] sm:$0xff]  ;;  %v5156_v27 = vld [vmem:[#allocation4 + $0xd0] sm:$0xff] }
 0x5ad   : > { %3016 = vmatpush.bf16.msrb.mxu2 %v5183_v23  ;;  %v5143_v19 = vld [vmem:[#allocation4 + $0x68] sm:$0xff]  ;;  %v5148_v8 = vld [vmem:[#allocation4 + $0x90] sm:$0xff] }
 0x5b1   : > { %v2351_v14 = vpop.f32.mrf.mxu2 }
 0x5b2   : > { %v2385_v31 = vadd.f32 %v2369_v10, %v2351_v14  ;;  %v5174_v10 = vld [vmem:[#allocation4 + $0x160] sm:$0xff] }
 0x5b3   : > { %v5182_v14 = vld [vmem:[#allocation4 + $0x1a0] sm:$0xff] }
 0x5b4   : > { %v2401_v17 = vmax.f32 %v2385_v31, 0.0  ;;  %v5157_v31 = vld [vmem:[#allocation4 + $0xd8] sm:$0xff]  ;;  %3017 = vmatpush.bf16.msrb.mxu2 %v5182_v14 }
 0x5b6   : > { %v2410_v3 = vpack.c.bf16 %v2401_v17, %v2400_v15  ;;  %v5147_v15 = vld [vmem:[#allocation4 + $0x88] sm:$0xff]  ;;  %v5181_v17 = vld [vmem:[#allocation4 + $0x198] sm:$0xff] }
 0x5b8   : > { %2443 = vmatpush.bf16.msrb.mxu0 %v2410_v3  ;;  %2504 = vmatpush.bf16.msra.mxu1 %v2410_v3 }
 0x5b9   : > { %2565 = vmatpush.bf16.msra.mxu3 %v2410_v3  ;;  %3018 = vmatpush.bf16.msrb.mxu2 %v5181_v17  ;;  %v5180_v3 = vld [vmem:[#allocation4 + $0x190] sm:$0xff]  ;;  %v2635_v25 = vpop.f32.mrf.mxu2 }
 0x5bc   : > { %2444 = vmatpush.bf16.msrb.mxu0 %v2409_v39  ;;  %2505 = vmatpush.bf16.msra.mxu1 %v2409_v39 }
 0x5bd   : > { %2566 = vmatpush.bf16.msra.mxu3 %v2409_v39  ;;  %3019 = vmatpush.bf16.msrb.mxu2 %v5180_v3  ;;  %v5155_v39 = vld [vmem:[#allocation4 + $0xc8] sm:$0xff] }
 0x5c0   : > { %2445 = vmatpush.bf16.msrb.mxu0 %v2408_v13  ;;  %2506 = vmatpush.bf16.msra.mxu1 %v2408_v13 }
 0x5c1   : > { %2567 = vmatpush.bf16.msra.mxu3 %v2408_v13  ;;  %3020 = vmatpush.bf16.msrb.mxu2 %v5179_v32  ;;  %v2637_v5 = vpop.f32.mrf.mxu2  ;;  %v5162_v13 = vld [vmem:[#allocation4 + $0x100] sm:$0xff] }
 0x5c2   : > { %v2658_v63 = vpack.c.bf16 %v2637_v5, %v2635_v25  ;;  %v6574_v32 = vld [vmem:[%s6799_s3 + $0x1] ss:$0 sm:$0xff] }
 0x5c4   : > { %2446 = vmatpush.bf16.msrb.mxu0 %v2407_v49  ;;  %2507 = vmatpush.bf16.msra.mxu1 %v2407_v49 }
 0x5c5   : > { %2568 = vmatpush.bf16.msra.mxu3 %v2407_v49  ;;  %3021 = vmatpush.bf16.msrb.mxu2 %v5178_v47 }
 0x5c8   : > { %2447 = vmatpush.bf16.msrb.mxu0 %v2406_v37  ;;  %2508 = vmatpush.bf16.msra.mxu1 %v2406_v37 }
 0x5c9   : > { %2569 = vmatpush.bf16.msra.mxu3 %v2406_v37  ;;  %3022 = vmatpush.bf16.msrb.mxu2 %v5177_v57 }
 0x5cc   : > { %2448 = vmatpush.bf16.msrb.mxu0 %v2405_v51  ;;  %2509 = vmatpush.bf16.msra.mxu1 %v2405_v51 }
 0x5cd   : > { %2570 = vmatpush.bf16.msra.mxu3 %v2405_v51  ;;  %3023 = vmatmul.bf16.vlgmr.msrb.gmra.mxu2 %v2658_v63 }
 0x5ce   : > { %v2640_v49 = vpop.f32.mrf.mxu2 }
 0x5d0   : > { %2449 = vmatpush.bf16.msrb.mxu0 %v2404_v59  ;;  %2510 = vmatpush.bf16.msra.mxu1 %v2404_v59 }
 0x5d1   : > { %2571 = vmatpush.bf16.msra.mxu3 %v2404_v59 }
 0x5d4   : > { %2450 = vmatpush.bf16.msrb.mxu0 %v2403_v34  ;;  %2511 = vmatpush.bf16.msra.mxu1 %v2403_v34 }
 0x5d5   : > { %2572 = vmatpush.bf16.msra.mxu3 %v2403_v34 }
 0x5d6   : > { %v2642_v56 = vpop.f32.mrf.mxu2 }
 0x5d7   : > { %2451 = vmatmul.bf16.vlgmr.msrb.gmra.mxu0 %v5137_v16  ;;  %2512 = vmatmul.bf16.vlgmr.msra.gmra.mxu1 %v5141_v41  ;;  %v2662_v45 = vpack.c.bf16 %v2642_v56, %v2640_v49 }
 0x5d8   : > { %2573 = vmatmul.bf16.vlgmr.msra.gmra.mxu3 %v5145_v18  ;;  %2928 = vmatpush.bf16.msra.mxu0 %v5160_v26 }
 0x5d9   : > { %2986 = vmatpush.bf16.msrb.mxu3 %v5176_v36  ;;  %2957 = vmatpush.bf16.msrb.mxu1 %v5168_v46 }
 0x5dc   : > { %2929 = vmatpush.bf16.msra.mxu0 %v5159_v43 }
 0x5dd   : > { %2987 = vmatpush.bf16.msrb.mxu3 %v5175_v54  ;;  %2958 = vmatpush.bf16.msrb.mxu1 %v5167_v7 }
 0x5de   : > { %3028 = vmatmul.bf16.gmra.mxu2 %v2662_v45 }
 0x5e0   : > { %2930 = vmatpush.bf16.msra.mxu0 %v5158_v35 }
 0x5e1   : > { %2988 = vmatpush.bf16.msrb.mxu3 %v5174_v10  ;;  %2959 = vmatpush.bf16.msrb.mxu1 %v5166_v52 }
 0x5e4   : > { %2931 = vmatpush.bf16.msra.mxu0 %v5157_v31 }
 0x5e5   : > { %2989 = vmatpush.bf16.msrb.mxu3 %v5173_v62  ;;  %2960 = vmatpush.bf16.msrb.mxu1 %v5165_v2 }
 0x5e7   : > { %2456 = vmatmul.bf16.gmra.mxu0 %v5138_v55  ;;  %2517 = vmatmul.bf16.gmra.mxu1 %v5142_v9 }
 0x5e8   : > { %2578 = vmatmul.bf16.gmra.mxu3 %v5146_v21  ;;  %2932 = vmatpush.bf16.msra.mxu0 %v5156_v27 }
 0x5e9   : > { %2990 = vmatpush.bf16.msrb.mxu3 %v5172_v29  ;;  %2961 = vmatpush.bf16.msrb.mxu1 %v5164_v0 }
 0x5ec   : > { %2933 = vmatpush.bf16.msra.mxu0 %v5155_v39 }
 0x5ed   : > { %2962 = vmatpush.bf16.msrb.mxu1 %v5163_v50  ;;  %2991 = vmatpush.bf16.msrb.mxu3 %v5171_v30 }
 0x5f0   : > { %2934 = vmatpush.bf16.msra.mxu0 %v5154_v22 }
 0x5f1   : > { %2963 = vmatpush.bf16.msrb.mxu1 %v5162_v13  ;;  %2992 = vmatpush.bf16.msrb.mxu3 %v5170_v4 }
 0x5f4   : > { %2935 = vmatpush.bf16.msra.mxu0 %v5153_v28 }
 0x5f5   : > { %2964 = vmatpush.bf16.msrb.mxu1 %v5161_v53  ;;  %2993 = vmatpush.bf16.msrb.mxu3 %v5169_v58 }
 0x5f7   : > { %2461 = vmatmul.bf16.gmra.mxu0 %v5139_v1  ;;  %2522 = vmatmul.bf16.gmra.mxu1 %v5143_v19 }
 0x5f8   : > { %2583 = vmatmul.bf16.gmra.mxu3 %v5147_v15 }
 0x607   : > { %2466 = vmatmul.bf16.gmra.mxu0 %v5140_v24  ;;  %2527 = vmatmul.bf16.gmra.mxu1 %v5144_v40 }
 0x608   : > { %2588 = vmatmul.bf16.gmra.mxu3 %v5148_v8 }
 0x616   : > { %v2645_v44 = vpop.f32.mrf.mxu2 }
 0x61e   : > { %v2647_v61 = vpop.f32.mrf.mxu2 }
 0x61f   : > { %v2666_v38 = vpack.c.bf16 %v2647_v61, %v2645_v44 }
 0x621   : > { %3033 = vmatmul.bf16.gmra.mxu2 %v2666_v38 }
 0x626   : > { %v2650_v59 = vpop.f32.mrf.mxu2 }
 0x62e   : > { %v2652_v18 = vpop.f32.mrf.mxu2 }
 0x62f   : > { %v2670_v48 = vpack.c.bf16 %v2652_v18, %v2650_v59 }
 0x631   : > { %3038 = vmatmul.bf16.gmra.mxu2 %v2670_v48 }
 0x650   : > { %v3024_v24 = vpop.f32.mrf.mxu2 }
 0x654   : > { %v2452_v37 = vpop.f32.mrf.mxu0  ;;  %v2513_v20 = vpop.f32.mrf.mxu1 }
 0x658   : > { %v3026_v39 = vpop.f32.mrf.mxu2 }
 0x65b   : > { %v2574_v11 = vpop.f32.mrf.mxu3 }
 0x65c   : > { %v2454_v33 = vpop.f32.mrf.mxu0  ;;  %v2515_v51 = vpop.f32.mrf.mxu1 }
 0x65d   : > { %v2655_v42 = vpack.c.bf16 %v2454_v33, %v2452_v37  ;;  %v2656_v6 = vpack.c.bf16 %v2515_v51, %v2513_v20 }
 0x65f   : > { %2936 = vmatmul.bf16.vlgmr.msra.gmra.mxu0 %v2655_v42  ;;  %2965 = vmatmul.bf16.vlgmr.msrb.gmra.mxu1 %v2656_v6 }
 0x661   : > { %v3029_v28 = vpop.f32.mrf.mxu2 }
 0x663   : > { %v2576_v60 = vpop.f32.mrf.mxu3 }
 0x664   : > { %v2657_v34 = vpack.c.bf16 %v2576_v60, %v2574_v11  ;;  %v2457_v16 = vpop.f32.mrf.mxu0  ;;  %v2518_v41 = vpop.f32.mrf.mxu1 }
 0x666   : > { %2994 = vmatmul.bf16.vlgmr.msrb.gmra.mxu3 %v2657_v34 }
 0x669   : > { %v3031_v38 = vpop.f32.mrf.mxu2 }
 0x66b   : > { %v2579_v55 = vpop.f32.mrf.mxu3 }
 0x66c   : > { %v2459_v9 = vpop.f32.mrf.mxu0  ;;  %v2520_v21 = vpop.f32.mrf.mxu1 }
 0x66d   : > { %v2659_v36 = vpack.c.bf16 %v2459_v9, %v2457_v16  ;;  %v2660_v26 = vpack.c.bf16 %v2520_v21, %v2518_v41 }
 0x66f   : > { %2941 = vmatmul.bf16.gmra.mxu0 %v2659_v36  ;;  %2970 = vmatmul.bf16.gmra.mxu1 %v2660_v26 }
 0x673   : > { %v2581_v12 = vpop.f32.mrf.mxu3 }
 0x674   : > { %v2661_v46 = vpack.c.bf16 %v2581_v12, %v2579_v55  ;;  %v2462_v54 = vpop.f32.mrf.mxu0  ;;  %v2523_v43 = vpop.f32.mrf.mxu1 }
 0x676   : > { %2999 = vmatmul.bf16.gmra.mxu3 %v2661_v46 }
 0x67b   : > { %v2584_v23 = vpop.f32.mrf.mxu3 }
 0x67c   : > { %v2464_v7 = vpop.f32.mrf.mxu0  ;;  %v2525_v10 = vpop.f32.mrf.mxu1 }
 0x67d   : > { %v2663_v35 = vpack.c.bf16 %v2464_v7, %v2462_v54  ;;  %v2664_v14 = vpack.c.bf16 %v2525_v10, %v2523_v43 }
 0x67f   : > { %2946 = vmatmul.bf16.gmra.mxu0 %v2663_v35  ;;  %2975 = vmatmul.bf16.gmra.mxu1 %v2664_v14 }
 0x683   : > { %v2586_v52 = vpop.f32.mrf.mxu3 }
 0x684   : > { %v2665_v62 = vpack.c.bf16 %v2586_v52, %v2584_v23  ;;  %v2467_v31 = vpop.f32.mrf.mxu0  ;;  %v2528_v1 = vpop.f32.mrf.mxu1 }
 0x686   : > { %3004 = vmatmul.bf16.gmra.mxu3 %v2665_v62 }
 0x68b   : > { %v2589_v19 = vpop.f32.mrf.mxu3 }
 0x68c   : > { %v2469_v15 = vpop.f32.mrf.mxu0  ;;  %v2530_v17 = vpop.f32.mrf.mxu1 }
 0x68d   : > { %v2667_v2 = vpack.c.bf16 %v2469_v15, %v2467_v31  ;;  %v2668_v29 = vpack.c.bf16 %v2530_v17, %v2528_v1  ;;  %v6612_v1 = vld [vmem:[#allocation4 + $0x3e0] sm:$0xff]  }
 0x68e   : > { %v3100_v17 = vunpack.c.l.bf16 %v6612_v1 }
 0x68f   : > { %2951 = vmatmul.bf16.gmra.mxu0 %v2667_v2  ;;  %2980 = vmatmul.bf16.gmra.mxu1 %v2668_v29  ;;  %v6618_v29 = vld [vmem:[#allocation4 + $0x3d0] sm:$0xff]  }
 0x690   : > { %3151 = vmatpush.msra.mxu3 %v3100_v17 }
 0x693   : > { %v2591_v27 = vpop.f32.mrf.mxu3 }
 0x694   : > { %v2669_v3 = vpack.c.bf16 %v2591_v27, %v2589_v19  ;;  %v6614_v19 = vld [vmem:[#allocation4 + $0x3d8] sm:$0xff]  }
 0x695   : > { %v5320_v2 = vunpack.c.h.bf16 %v6614_v19 }
 0x696   : > { %3009 = vmatmul.bf16.gmra.mxu3 %v2669_v3 }
 0x697   : > { %3152 = vmatpush.msra.mxu3 %v5320_v2 }
 0x6a4   : > { %v3034_v41 = vpop.f32.mrf.mxu2 }
 0x6ac   : > { %v3036_v12 = vpop.f32.mrf.mxu2 }
 0x6b4   : > { %v3039_v52 = vpop.f32.mrf.mxu2 }
 0x6dc   : > { %v2937_v40 = vpop.f32.mrf.mxu0  ;;  %v2966_v8 = vpop.f32.mrf.mxu1 }
 0x6dd   : > { %v2938_v25 = vadd.f32 %v6574_v32, %v2937_v40  ;;  %v5316_v40 = vunpack.c.h.bf16 %v6618_v29 }
 0x6df   : > { %v2967_v50 = vadd.f32 %v2966_v8, %v2938_v25  ;;  %v6631_v25 = vld [vmem:[#allocation4 + $0x3c8] sm:$0xff]  }
 0x6e4   : > { %v2939_v0 = vpop.f32.mrf.mxu0  ;;  %v2968_v47 = vpop.f32.mrf.mxu1 }
 0x6e5   : > { %v2940_v22 = vadd.f32 %v6574_v32, %v2939_v0 }
 0x6e7   : > { %v2969_v4 = vadd.f32 %v2968_v47, %v2940_v22 }
 0x6e9   : > { %v2995_v57 = vpop.f32.mrf.mxu3 }
 0x6ea   : > { %v2996_v5 = vadd.f32 %v2995_v57, %v2967_v50  ;;  %v5312_v50 = vunpack.c.h.bf16 %v6631_v25  ;;  %v3041_v57 = vpop.f32.mrf.mxu2 }
 0x6ec   : > { %v6582_v63 = vadd.f32 %v3024_v24, %v2996_v5  ;;  %v2942_v13 = vpop.f32.mrf.mxu0  ;;  %v2971_v30 = vpop.f32.mrf.mxu1  ;;  %v5319_v24 = vunpack.c.l.bf16 %v6614_v19  ;;  %v5389_v5 = vld [vmem:[#allocation4 + $0x3c0] sm:$0xff]  }
 0x6ed   : > { %v2943_v56 = vadd.f32 %v6574_v32, %v2942_v13  ;;  %v5311_v13 = vunpack.c.l.bf16 %v6631_v25 }
 0x6ee   : > { %3044 = vst [vmem:[%s6580_s27] sm:$0xff] %v6582_v63  ;;  %3153 = vmatpush.msra.mxu3 %v5319_v24 }
 0x6ef   : > { %v2972_v37 = vadd.f32 %v2971_v30, %v2943_v56 }
 0x6f0   : > { %3154 = vmatpush.msra.mxu3 %v5316_v40 }
 0x6f1   : > { %v2997_v53 = vpop.f32.mrf.mxu3 }
 0x6f2   : > { %v2998_v49 = vadd.f32 %v2997_v53, %v2969_v4  ;;  %v5308_v53 = vunpack.c.h.bf16 %v5389_v5 }
 0x6f4   : > { %v6587_v58 = vadd.f32 %v3026_v39, %v2998_v49  ;;  %v2944_v45 = vpop.f32.mrf.mxu0  ;;  %v2973_v44 = vpop.f32.mrf.mxu1  ;;  %v5388_v49 = vld [vmem:[#allocation4 + $0x3b8] sm:$0xff]  }
 0x6f5   : > { %v2945_v33 = vadd.f32 %v6574_v32, %v2944_v45 }
 0x6f6   : > { %3045 = vst [vmem:[%s6580_s27 + $0x8] sm:$0xff] %v6587_v58 }
 0x6f7   : > { %v2974_v42 = vadd.f32 %v2973_v44, %v2945_v33  ;;  %v5307_v44 = vunpack.c.l.bf16 %v5389_v5  ;;  %v3053_v5 = vld [vmem:[#allocation4 + $0x384] sm:$0xf] }
 0x6f9   : > { %v3000_v20 = vpop.f32.mrf.mxu3 }
 0x6fa   : > { %v3001_v61 = vadd.f32 %v3000_v20, %v2972_v37 }
 0x6fc   : > { %v6592_v11 = vadd.f32 %v3029_v28, %v3001_v61  ;;  %v2947_v51 = vpop.f32.mrf.mxu0  ;;  %v2976_v59 = vpop.f32.mrf.mxu1  ;;  %v5304_v61 = vunpack.c.h.bf16 %v5388_v49 }
 0x6fd   : > { %v2948_v16 = vadd.f32 %v6574_v32, %v2947_v51 }
 0x6fe   : > { %3046 = vst [vmem:[%s6580_s27 + $0x10] sm:$0xff] %v6592_v11 }
 0x6ff   : > { %v2977_v48 = vadd.f32 %v2976_v59, %v2948_v16  ;;  %v3128_v59 = vmul.f32 %v6592_v11, %v6592_v11  ;;  %v5386_v16 = vld [vmem:[#allocation4 + $0x3a8] sm:$0xff]  }
 0x701   : > { %v3002_v6 = vpop.f32.mrf.mxu3 }
 0x702   : > { %v3003_v60 = vadd.f32 %v3002_v6, %v2974_v42  ;;  %v5303_v42 = vunpack.c.l.bf16 %v5388_v49 }
 0x704   : > { %v6597_v34 = vadd.f32 %v3031_v38, %v3003_v60  ;;  %v2949_v18 = vpop.f32.mrf.mxu0  ;;  %v2978_v21 = vpop.f32.mrf.mxu1  ;;  %v5387_v38 = vld [vmem:[#allocation4 + $0x3b0] sm:$0xff]  }
 0x705   : > { %v2950_v26 = vadd.f32 %v6574_v32, %v2949_v18  ;;  %v5300_v60 = vunpack.c.h.bf16 %v5387_v38  ;;  %v3127_v18 = vmul.f32 %v6587_v58, %v6587_v58 }
 0x706   : > { %3047 = vst [vmem:[%s6580_s27 + $0x18] sm:$0xff] %v6597_v34  ;;  %v3129_v51 = vmul.f32 %v6597_v34, %v6597_v34  ;;  %v6668_v6 = vpack.c.bf16 %v6597_v34, %v6592_v11 }
 0x707   : > { %v2979_v54 = vadd.f32 %v2978_v21, %v2950_v26  ;;  %v5296_v21 = vunpack.c.h.bf16 %v5386_v16 }
 0x709   : > { %v3005_v55 = vpop.f32.mrf.mxu3 }
 0x70a   : > { %v3006_v9 = vadd.f32 %v3005_v55, %v2977_v48  ;;  %v5299_v48 = vunpack.c.l.bf16 %v5387_v38  ;;  %v6677_v55 = vpack.c.bf16 %v6587_v58, %v6582_v63 }
 0x70c   : > { %v6602_v36 = vadd.f32 %v3034_v41, %v3006_v9  ;;  %v2952_v46 = vpop.f32.mrf.mxu0  ;;  %v2981_v35 = vpop.f32.mrf.mxu1  ;;  %v3135_v41 = vpack.c.bf16 %v3129_v51, %v3128_v59  ;;  %v3126_v9 = vmul.f32 %v6582_v63, %v6582_v63 }
 0x70d   : > { %v2953_v10 = vadd.f32 %v6574_v32, %v2952_v46  ;;  %v5295_v46 = vunpack.c.l.bf16 %v5386_v16 }
 0x70e   : > { %3048 = vst [vmem:[%s6580_s27 + $0x20] sm:$0xff] %v6602_v36  ;;  %v3130_v20 = vmul.f32 %v6602_v36, %v6602_v36  ;;  %v3134_v26 = vpack.c.bf16 %v3127_v18, %v3126_v9 }
 0x70f   : > { %v2982_v14 = vadd.f32 %v2981_v35, %v2953_v10 }
 0x711   : > { %v3007_v43 = vpop.f32.mrf.mxu3 }
 0x712   : > { %v3008_v23 = vadd.f32 %v3007_v43, %v2979_v54  ;;  %v6694_v54 = vld [vmem:[#allocation4 + $0x3a0] sm:$0xff]  }
 0x713   : > { %v3085_v43 = vunpack.c.h.bf16 %v6694_v54  ;;  %v3068_v51 = vunpack.c.l.bf16 %v6694_v54 }
 0x714   : > { %v6607_v7 = vadd.f32 %v3036_v12, %v3008_v23  ;;  %v2954_v31 = vpop.f32.mrf.mxu0  ;;  %v2983_v8 = vpop.f32.mrf.mxu1  ;;  %v3052_v12 = vld [vmem:[#allocation4 + $0x380] sm:$0xf] }
 0x715   : > { %v2955_v3 = vadd.f32 %v6574_v32, %v2954_v31  ;;  %v5315_v32 = vunpack.c.l.bf16 %v6618_v29  ;;  %v3103_v31 = vunpack.c.h.bf16 %v6612_v1 }
 0x716   : > { %3049 = vst [vmem:[%s6580_s27 + $0x28] sm:$0xff] %v6607_v7  ;;  %v3131_v45 = vmul.f32 %v6607_v7, %v6607_v7  ;;  %v6659_v37 = vpack.c.bf16 %v6607_v7, %v6602_v36 }
 0x717   : > { %v2984_v0 = vadd.f32 %v2983_v8, %v2955_v3  ;;  %3155 = vmatpush.msra.mxu3 %v5315_v32 }
 0x718   : > { %v3136_v33 = vpack.c.bf16 %v3131_v45, %v3130_v20  ;;  %v5384_v45 = vld [vmem:[#allocation4 + $0x390] sm:$0xff]  }
 0x719   : > { %v3010_v62 = vpop.f32.mrf.mxu3  ;;  %3156 = vmatpush.msra.mxu3 %v5312_v50  ;;  %v5288_v20 = vunpack.c.h.bf16 %v5384_v45 }
 0x71a   : > { %v3011_v15 = vadd.f32 %v3010_v62, %v2982_v14 }
 0x71b   : > { %3157 = vmatpush.msra.mxu3 %v5311_v13 }
 0x71c   : > { %v6620_v27 = vadd.f32 %v3039_v52, %v3011_v15  ;;  %v3102_v52 = vld [vmem:[#allocation4 + $0x3e8] sm:$0xf] }
 0x71d   : > { %3158 = vmatpush.msra.mxu3 %v5308_v53  ;;  %v3104_v62 = vunpack.c.l.bf16 %v3102_v52 }
 0x71e   : > { %3050 = vst [vmem:[%s6580_s27 + $0x30] sm:$0xff] %v6620_v27  ;;  %v3132_v30 = vmul.f32 %v6620_v27, %v6620_v27 }
 0x71f   : > { %3159 = vmatpush.msra.mxu3 %v5307_v44 }
 0x721   : > { %v3012_v47 = vpop.f32.mrf.mxu3  ;;  %3160 = vmatpush.msra.mxu3 %v5304_v61 }
 0x722   : > { %v3013_v39 = vadd.f32 %v3012_v47, %v2984_v0 }
 0x723   : > { %3161 = vmatpush.msra.mxu3 %v5303_v42 }
 0x724   : > { %v6639_v22 = vadd.f32 %v3041_v57, %v3013_v39 }
 0x725   : > { %3162 = vmatpush.msra.mxu3 %v5300_v60 }
 0x726   : > { %3051 = vst [vmem:[%s6580_s27 + $0x38] sm:$0xff] %v6639_v22  ;;  %v3133_v4 = vmul.f32 %v6639_v22, %v6639_v22  ;;  %v6652_v28 = vpack.c.bf16 %v6639_v22, %v6620_v27 }
 0x727   : > { %3163 = vmatpush.msra.mxu3 %v5299_v48 }
 0x728   : > { %3117 = vmatpush.bf16.msrb.mxu0 %v6652_v28  ;;  %v3137_v56 = vpack.c.bf16 %v3133_v4, %v3132_v30  ;;  %v5383_v4 = vld [vmem:[#allocation4 + $0x388] sm:$0xff]  }
 0x729   : > { %3164 = vmatpush.msra.mxu3 %v5296_v21 }
 0x72a   : > { %3142 = vmatpush.bf16.msra.mxu1 %v3137_v56  ;;  %v5284_v56 = vunpack.c.h.bf16 %v5383_v4 }
 0x72b   : > { %3165 = vmatpush.msra.mxu3 %v5295_v46 }
 0x72c   : > { %3118 = vmatpush.bf16.msrb.mxu0 %v6659_v37 }
 0x72d   : > { %3166 = vmatpush.msra.mxu3 %v3085_v43 }
 0x72e   : > { %3143 = vmatpush.bf16.msra.mxu1 %v3136_v33 }
 0x72f   : > { %3314 = vmatpush.msrb.mxu3 %v3104_v62 }
 0x730   : > { %3119 = vmatpush.bf16.msrb.mxu0 %v6668_v6 }
 0x731   : > { %3315 = vmatpush.msrb.mxu3 %v3103_v31 }
 0x732   : > { %3144 = vmatpush.bf16.msra.mxu1 %v3135_v41 }
 0x734   : > { %3120 = vmatpush.bf16.msrb.mxu0 %v6677_v55 }
 0x736   : > { %3145 = vmatpush.bf16.msra.mxu1 %v3134_v26 }
 0x737   : > { %4871 = vmatmul.msk.bf16.vlgmr.msrb.gmra.mxu0 %vm3109_vm5, %v3052_v12 }
 0x739   : > { %4872 = vmatmul.msk.bf16.vlgmr.msra.gmra.mxu1 %vm3109_vm5, %v3052_v12 }
 0x73a   : > { %3172 = vmatpush.msrb.mxu1 %v3100_v17 }
 0x73c   : > { %3173 = vmatpush.msrb.mxu1 %v5320_v2 }
 0x73e   : > { %3174 = vmatpush.msrb.mxu1 %v5319_v24 }
 0x740   : > { %3175 = vmatpush.msrb.mxu1 %v5316_v40 }
 0x742   : > { %3176 = vmatpush.msrb.mxu1 %v5315_v32 }
 0x744   : > { %3177 = vmatpush.msrb.mxu1 %v5312_v50 }
 0x746   : > { %3178 = vmatpush.msrb.mxu1 %v5311_v13  ;;  %v3061_v13 = vunpack.c.l.bf16 %v3053_v5  ;;  %v5187_v5 = vld [vmem:[#allocation4 + $0x1c8] sm:$0xff] }
 0x748   : > { %3179 = vmatpush.msrb.mxu1 %v5308_v53  ;;  %v5283_v53 = vunpack.c.l.bf16 %v5383_v4  ;;  %v5190_v4 = vld [vmem:[#allocation4 + $0x1e0] sm:$0xff] }
 0x74a   : > { %3180 = vmatpush.msrb.mxu1 %v5307_v44  ;;  %v5287_v44 = vunpack.c.l.bf16 %v5384_v45  ;;  %v5206_v45 = vld [vmem:[#allocation4 + $0x260] sm:$0xff] }
 0x74c   : > { %3181 = vmatpush.msrb.mxu1 %v5304_v61  ;;  %v5385_v61 = vld [vmem:[#allocation4 + $0x398] sm:$0xff]  }
 0x74d   : > { %v5291_v38 = vunpack.c.l.bf16 %v5385_v61  ;;  %v5292_v33 = vunpack.c.h.bf16 %v5385_v61  ;;  %v5196_v61 = vld [vmem:[#allocation4 + $0x210] sm:$0xff] }
 0x74e   : > { %3182 = vmatpush.msrb.mxu1 %v5303_v42 }
 0x750   : > { %3183 = vmatpush.msrb.mxu1 %v5300_v60 }
 0x752   : > { %3184 = vmatpush.msrb.mxu1 %v5299_v48 }
 0x754   : > { %3185 = vmatpush.msrb.mxu1 %v5296_v21 }
 0x756   : > { %3186 = vmatpush.msrb.mxu1 %v5295_v46 }
 0x758   : > { %3187 = vmatpush.msrb.mxu1 %v3085_v43 }
 0x75a   : > { %3224 = vmatpush.msra.mxu1 %v3104_v62 }
 0x75c   : > { %3225 = vmatpush.msra.mxu1 %v3103_v31 }
 0x7b4   : > { %v3122_v23 = vpop.f32.mrf.mxu0 }
 0x7b5   : > { %3167 = vmatmul.f32.vlgmr.msra.gmra.mxu3 %v3122_v23 }
 0x7b6   : > { %v3147_v10 = vpop.f32.mrf.mxu1 }
 0x7b7   : > { %3188 = vmatmul.f32.vlgmr.msrb.gmra.mxu1 %v3147_v10 }
 0x7bc   : > { %v3124_v35 = vpop.f32.mrf.mxu0 }
 0x7be   : > { %v3149_v14 = vpop.f32.mrf.mxu1 }
 0x834   : > { %v3189_v19 = vpop.f32.mrf.mxu1 }
 0x835   : > { %v3192_v2 = vmul.f32 0.015625, %v3189_v19 }
 0x838   : > { %v3168_v15 = vpop.f32.mrf.mxu3 }
 0x839   : > { %v3171_v17 = vmul.f32 0.015625, %v3168_v15 }
 0x83b   : > { %v3193_v29 = vmul.f32 %v3171_v17, %v3171_v17  ;;  %v3295_v39 = vsub.f32 0.0, %v3171_v17 }
 0x83d   : > { %v3194_v3 = vsub.f32 %v3192_v2, %v3193_v29 }
 0x83f   : > { %v3195_v24 = vmax.f32 %v3194_v3, 0.0 }
 0x841   : > { %v3196_v40 = vadd.f32 1e-05, %v3195_v24 }
 0x843   : > { %5477 = vrsqrt.f32 %v3196_v40  ;;  %vm3203_vm7 = vweird.f32 %v3196_v40 }
 0x849   : > { %v5478_v8 = vpop.eup %5477 }
 0x84a   : > { %v3198_v25 = vmul.f32 %v5478_v8, %v3196_v40  ;;  %vm3204_vm6 = vweird.f32 %v5478_v8 }
 0x84b   : > { %vm3205_vm8 = vmor %vm3203_vm7, %vm3204_vm6 }
 0x84c   : > { %v3199_v0 = vmul.f32 %v5478_v8, %v3198_v25 }
 0x84e   : > { %v3200_v32 = vmul.f32 0.5, %v3199_v0 }
 0x850   : > { %v3201_v47 = vsub.f32 1.5, %v3200_v32 }
 0x852   : > { %v3202_v1 = vmul.f32 %v5478_v8, %v3201_v47 }
 0x854   : > { %v3206_v50 = vsel %vm3205_vm8, %v5478_v8, %v3202_v1 }
 0x855   : > { %4873 = vmatmul.msk.f32.vlgmr.msra.gmra.mxu1 %vm369_vm0, %v3206_v50  ;;  %v3296_v57 = vmul.f32 %v3295_v39, %v3206_v50 }
 0x857   : > { %4882 = vmatmul.msk.f32.vlgmr.msrb.gmra.mxu3 %vm369_vm0, %v3296_v57  ;;  %v5185_v57 = vld [vmem:[#allocation4 + $0x1b8] sm:$0xff] }
 0x8d2   : > { %v3227_v30 = vpop.f32.mrf.mxu1 }
 0x8d3   : > { %3269 = vmatpush.msrb.mxu1 %v3227_v30  ;;  %v5191_v30 = vld [vmem:[#allocation4 + $0x1e8] sm:$0xff] }
 0x8d4   : > { %4874 = vmatmul.msk.f32.vlgmr.msrb.gmra.mxu1 %vm2127_vm3, %v3061_v13 }
 0x8da   : > { %v3317_v49 = vpop.f32.mrf.mxu3 }
 0x8db   : > { %3335 = vmatpush.msra.mxu0 %v3317_v49  ;;  %v5207_v49 = vld [vmem:[#allocation4 + $0x268] sm:$0xff] }
 0x8dc   : > { %4875 = vmatmul.msk.f32.gmra.mxu1 %vm2127_vm3, %v5283_v53  ;;  %4883 = vmatmul.msk.f32.vlgmr.msra.gmra.mxu0 %vm2127_vm3, %v3061_v13  ;;  %v5188_v13 = vld [vmem:[#allocation4 + $0x1d0] sm:$0xff] }
 0x8e4   : > { %4876 = vmatmul.msk.f32.gmra.mxu1 %vm2127_vm3, %v5284_v56  ;;  %4884 = vmatmul.msk.f32.gmra.mxu0 %vm2127_vm3, %v5283_v53  ;;  %v5199_v53 = vld [vmem:[#allocation4 + $0x228] sm:$0xff] }
 0x8ec   : > { %4877 = vmatmul.msk.f32.gmra.mxu1 %vm2127_vm3, %v5287_v44  ;;  %4885 = vmatmul.msk.f32.gmra.mxu0 %vm2127_vm3, %v5284_v56  ;;  %v5198_v56 = vld [vmem:[#allocation4 + $0x220] sm:$0xff] }
 0x8f4   : > { %4878 = vmatmul.msk.f32.gmra.mxu1 %vm2127_vm3, %v5288_v20  ;;  %4886 = vmatmul.msk.f32.gmra.mxu0 %vm2127_vm3, %v5287_v44  ;;  %v5197_v44 = vld [vmem:[#allocation4 + $0x218] sm:$0xff] }
 0x8fc   : > { %4879 = vmatmul.msk.f32.gmra.mxu1 %vm2127_vm3, %v5291_v38  ;;  %4887 = vmatmul.msk.f32.gmra.mxu0 %vm2127_vm3, %v5288_v20  ;;  %v5205_v20 = vld [vmem:[#allocation4 + $0x258] sm:$0xff] }
 0x904   : > { %4880 = vmatmul.msk.f32.gmra.mxu1 %vm2127_vm3, %v5292_v33  ;;  %4888 = vmatmul.msk.f32.gmra.mxu0 %vm2127_vm3, %v5291_v38  ;;  %v5204_v38 = vld [vmem:[#allocation4 + $0x250] sm:$0xff] }
 0x90c   : > { %4881 = vmatmul.msk.f32.gmra.mxu1 %vm2127_vm3, %v3068_v51  ;;  %4889 = vmatmul.msk.f32.gmra.mxu0 %vm2127_vm3, %v5292_v33  ;;  %v5195_v33 = vld [vmem:[#allocation4 + $0x208] sm:$0xff] }
 0x914   : > { %4890 = vmatmul.msk.f32.gmra.mxu0 %vm2127_vm3, %v3068_v51  ;;  %v5203_v51 = vld [vmem:[#allocation4 + $0x248] sm:$0xff] }
 0x951   : > { %v3271_v42 = vpop.f32.mrf.mxu1 }
 0x952   : > { %v3361_v59 = vmul.f32 %v3271_v42, %v6582_v63  ;;  %v5194_v42 = vld [vmem:[#allocation4 + $0x200] sm:$0xff] }
 0x959   : > { %v3274_v60 = vpop.f32.mrf.mxu1  ;;  %v3337_v16 = vpop.f32.mrf.mxu0 }
 0x95a   : > { %v3369_v41 = vadd.f32 %v3361_v59, %v3337_v16  ;;  %v5202_v59 = vld [vmem:[#allocation4 + $0x240] sm:$0xff]  ;;  %v5201_v16 = vld [vmem:[#allocation4 + $0x238] sm:$0xff] }
 0x95c   : > { %v3377_v50 = vmax.f32 %v3369_v41, 0.0  ;;  %v5216_v41 = vld [vmem:[#allocation4 + $0x2b0] sm:$0xff] }
 0x961   : > { %v3277_v18 = vpop.f32.mrf.mxu1  ;;  %v3340_v48 = vpop.f32.mrf.mxu0 }
 0x962   : > { %v3363_v40 = vmul.f32 %v3277_v18, %v6592_v11  ;;  %v5224_v18 = vld [vmem:[#allocation4 + $0x2f0] sm:$0xff] }
 0x969   : > { %v3280_v9 = vpop.f32.mrf.mxu1  ;;  %v3343_v21 = vpop.f32.mrf.mxu0 }
 0x96a   : > { %v3364_v2 = vmul.f32 %v3280_v9, %v6597_v34  ;;  %v3371_v0 = vadd.f32 %v3363_v40, %v3343_v21  ;;  %v5223_v9 = vld [vmem:[#allocation4 + $0x2e8] sm:$0xff]  ;;  %v5214_v21 = vld [vmem:[#allocation4 + $0x2a0] sm:$0xff] }
 0x96c   : > { %v3379_v1 = vmax.f32 %v3371_v0, 0.0 }
 0x971   : > { %v3283_v26 = vpop.f32.mrf.mxu1  ;;  %v3346_v12 = vpop.f32.mrf.mxu0 }
 0x972   : > { %v3365_v19 = vmul.f32 %v3283_v26, %v6602_v36  ;;  %v3372_v8 = vadd.f32 %v3364_v2, %v3346_v12  ;;  %v5222_v26 = vld [vmem:[#allocation4 + $0x2e0] sm:$0xff]  ;;  %v5213_v12 = vld [vmem:[#allocation4 + $0x298] sm:$0xff] }
 0x974   : > { %v3380_v36 = vmax.f32 %v3372_v8, 0.0 }
 0x976   : > { %v3387_v39 = vpack.c.bf16 %v3380_v36, %v3379_v1 }
 0x979   : > { %v3286_v46 = vpop.f32.mrf.mxu1  ;;  %v3349_v54 = vpop.f32.mrf.mxu0 }
 0x97a   : > { %v3366_v52 = vmul.f32 %v3286_v46, %v6607_v7  ;;  %v3373_v29 = vadd.f32 %v3365_v19, %v3349_v54  ;;  %v3362_v7 = vmul.f32 %v3274_v60, %v6587_v58  ;;  %v5186_v58 = vld [vmem:[#allocation4 + $0x1c0] sm:$0xff]  ;;  %v5193_v60 = vld [vmem:[#allocation4 + $0x1f8] sm:$0xff]  ;;  %v5212_v54 = vld [vmem:[#allocation4 + $0x290] sm:$0xff] }
 0x97b   : > { %v5221_v46 = vld [vmem:[#allocation4 + $0x2d8] sm:$0xff] }
 0x97c   : > { %v3370_v32 = vadd.f32 %v3362_v7, %v3340_v48  ;;  %v5215_v48 = vld [vmem:[#allocation4 + $0x2a8] sm:$0xff] }
 0x97e   : > { %v3378_v34 = vmax.f32 %v3370_v32, 0.0 }
 0x980   : > { %v3386_v11 = vpack.c.bf16 %v3378_v34, %v3377_v50 }
 0x981   : > { %v3352_v43 = vpop.f32.mrf.mxu0  ;;  %v3289_v23 = vpop.f32.mrf.mxu1 }
 0x982   : > { %v3367_v14 = vmul.f32 %v3289_v23, %v6620_v27  ;;  %v3374_v15 = vadd.f32 %v3366_v52, %v3352_v43  ;;  %v5220_v43 = vld [vmem:[#allocation4 + $0x2d0] sm:$0xff]  ;;  %v5211_v23 = vld [vmem:[#allocation4 + $0x288] sm:$0xff]  ;;  %v5210_v52 = vld [vmem:[#allocation4 + $0x280] sm:$0xff] }
 0x984   : > { %v3382_v25 = vmax.f32 %v3374_v15, 0.0 }
 0x989   : > { %v3355_v10 = vpop.f32.mrf.mxu0  ;;  %v3292_v35 = vpop.f32.mrf.mxu1 }
 0x98a   : > { %v3368_v63 = vmul.f32 %v3292_v35, %v6639_v22  ;;  %v3375_v62 = vadd.f32 %v3367_v14, %v3355_v10  ;;  %v3381_v22 = vmax.f32 %v3373_v29, 0.0  ;;  %v5219_v10 = vld [vmem:[#allocation4 + $0x2c8] sm:$0xff] }
 0x98c   : > { %v3383_v3 = vmax.f32 %v3375_v62, 0.0  ;;  %v3388_v47 = vpack.c.bf16 %v3382_v25, %v3381_v22  ;;  %v5209_v62 = vld [vmem:[#allocation4 + $0x278] sm:$0xff] }
 0x991   : > { %v3358_v31 = vpop.f32.mrf.mxu0 }
 0x992   : > { %v3376_v17 = vadd.f32 %v3368_v63, %v3358_v31  ;;  %v5218_v63 = vld [vmem:[#allocation4 + $0x2c0] sm:$0xff]  ;;  %v5217_v31 = vld [vmem:[#allocation4 + $0x2b8] sm:$0xff] }
 0x994   : > { %v3384_v24 = vmax.f32 %v3376_v17, 0.0 }
 0x996   : > { %v3389_v27 = vpack.c.bf16 %v3384_v24, %v3383_v3 }
 0x998   : > { %3414 = vmatpush.bf16.msra.mxu2 %v3389_v27  ;;  %3453 = vmatpush.bf16.msra.mxu3 %v3389_v27 }
 0x99c   : > { %3415 = vmatpush.bf16.msra.mxu2 %v3388_v47  ;;  %3454 = vmatpush.bf16.msra.mxu3 %v3388_v47 }
 0x9a0   : > { %3416 = vmatpush.bf16.msra.mxu2 %v3387_v39  ;;  %3455 = vmatpush.bf16.msra.mxu3 %v3387_v39 }
 0x9a4   : > { %3417 = vmatpush.bf16.msra.mxu2 %v3386_v11  ;;  %3456 = vmatpush.bf16.msra.mxu3 %v3386_v11 }
 0x9a7   : > { %4899 = vmatmul.msk.bf16.vlgmr.msra.gmra.mxu2 %vm3109_vm5, %v5185_v57  ;;  %4909 = vmatmul.msk.bf16.vlgmr.msra.gmra.mxu3 %vm3109_vm5, %v5187_v5 }
 0x9a8   : > { %3492 = vmatpush.bf16.msrb.mxu2 %v3389_v27  ;;  %3531 = vmatpush.bf16.msrb.mxu3 %v6652_v28  ;;  %v5189_v28 = vld [vmem:[#allocation4 + $0x1d8] sm:$0xff] }
 0x9ac   : > { %3493 = vmatpush.bf16.msrb.mxu2 %v3388_v47  ;;  %3532 = vmatpush.bf16.msrb.mxu3 %v6659_v37  ;;  %v5192_v37 = vld [vmem:[#allocation4 + $0x1f0] sm:$0xff] }
 0x9b0   : > { %3494 = vmatpush.bf16.msrb.mxu2 %v3387_v39  ;;  %3533 = vmatpush.bf16.msrb.mxu3 %v6668_v6  ;;  %v5200_v6 = vld [vmem:[#allocation4 + $0x230] sm:$0xff] }
 0x9b1   : > { %3811 = vmatpush.bf16.msra.mxu1 %v5200_v6 }
 0x9b4   : > { %3495 = vmatpush.bf16.msrb.mxu2 %v3386_v11  ;;  %3534 = vmatpush.bf16.msrb.mxu3 %v6677_v55  ;;  %v5208_v55 = vld [vmem:[#allocation4 + $0x270] sm:$0xff] }
 0x9b5   : > { %3830 = vmatpush.bf16.msrb.mxu0 %v5208_v55  ;;  %3812 = vmatpush.bf16.msra.mxu1 %v5199_v53  ;;  %v5402_v55 = vld [vmem:[#allocation4 + $0x438] sm:$0xff]   ;;  %v5401_v53 = vld [vmem:[#allocation4 + $0x430] sm:$0xff]  }
 0x9b7   : > { %4900 = vmatmul.msk.bf16.gmra.mxu2 %vm3109_vm5, %v5186_v58  ;;  %4910 = vmatmul.msk.bf16.gmra.mxu3 %vm3109_vm5, %v5188_v13 }
 0x9b8   : > { %3849 = vmatpush.bf16.msra.mxu2 %v5216_v41  ;;  %3868 = vmatpush.bf16.msra.mxu3 %v5224_v18 }
 0x9b9   : > { %3831 = vmatpush.bf16.msrb.mxu0 %v5207_v49  ;;  %3813 = vmatpush.bf16.msra.mxu1 %v5198_v56  ;;  %v5360_v49 = vunpack.c.h.bf16 %v5402_v55  ;;  %v5359_v56 = vunpack.c.l.bf16 %v5402_v55  ;;  %v5403_v55 = vld [vmem:[#allocation4 + $0x440] sm:$0xff]  }
 0x9bc   : > { %3850 = vmatpush.bf16.msra.mxu2 %v5215_v48  ;;  %3869 = vmatpush.bf16.msra.mxu3 %v5223_v9 }
 0x9bd   : > { %3832 = vmatpush.bf16.msrb.mxu0 %v5206_v45  ;;  %3814 = vmatpush.bf16.msra.mxu1 %v5197_v44  ;;  %v5356_v45 = vunpack.c.h.bf16 %v5401_v53 }
 0x9c0   : > { %3851 = vmatpush.bf16.msra.mxu2 %v5214_v21  ;;  %3870 = vmatpush.bf16.msra.mxu3 %v5222_v26 }
 0x9c1   : > { %3833 = vmatpush.bf16.msrb.mxu0 %v5205_v20  ;;  %3815 = vmatpush.bf16.msra.mxu1 %v5196_v61  ;;  %v5400_v20 = vld [vmem:[#allocation4 + $0x428] sm:$0xff]   ;;  %v5474_v61 = vld [vmem:[%s6799_s3 + $0x2] ss:$0 sm:$0xff] }
 0x9c2   : > { %v5351_v18 = vunpack.c.l.bf16 %v5400_v20 }
 0x9c4   : > { %3852 = vmatpush.bf16.msra.mxu2 %v5213_v12  ;;  %3871 = vmatpush.bf16.msra.mxu3 %v5221_v46  ;;  %v5398_v12 = vld [vmem:[#allocation4 + $0x418] sm:$0xff]  }
 0x9c5   : > { %3834 = vmatpush.bf16.msrb.mxu0 %v5204_v38  ;;  %3816 = vmatpush.bf16.msra.mxu1 %v5195_v33  ;;  %v5355_v38 = vunpack.c.l.bf16 %v5401_v53  ;;  %v5364_v53 = vunpack.c.h.bf16 %v5403_v55 }
 0x9c7   : > { %4919 = vmatmul.msk.bf16.vlgmr.msrb.gmra.mxu2 %vm3109_vm5, %v5189_v28  ;;  %4929 = vmatmul.msk.bf16.vlgmr.msrb.gmra.mxu3 %vm3109_vm5, %v5191_v30 }
 0x9c8   : > { %3853 = vmatpush.bf16.msra.mxu2 %v5212_v54  ;;  %3872 = vmatpush.bf16.msra.mxu3 %v5220_v43 }
 0x9c9   : > { %3835 = vmatpush.bf16.msrb.mxu0 %v5203_v51  ;;  %3817 = vmatpush.bf16.msra.mxu1 %v5194_v42  ;;  %v5352_v42 = vunpack.c.h.bf16 %v5400_v20 }
 0x9cc   : > { %3854 = vmatpush.bf16.msra.mxu2 %v5211_v23  ;;  %3873 = vmatpush.bf16.msra.mxu3 %v5219_v10 }
 0x9cd   : > { %3836 = vmatpush.bf16.msrb.mxu0 %v5202_v59  ;;  %3818 = vmatpush.bf16.msra.mxu1 %v5193_v60 }
 0x9d0   : > { %3855 = vmatpush.bf16.msra.mxu2 %v5210_v52  ;;  %3874 = vmatpush.bf16.msra.mxu3 %v5218_v63  ;;  %v5344_v52 = vunpack.c.h.bf16 %v5398_v12 }
 0x9d1   : > { %3837 = vmatpush.bf16.msrb.mxu0 %v5201_v16  ;;  %v5399_v16 = vld [vmem:[#allocation4 + $0x420] sm:$0xff]  }
 0x9d2   : > { %v5348_v26 = vunpack.c.h.bf16 %v5399_v16  ;;  %v5347_v43 = vunpack.c.l.bf16 %v5399_v16 }
 0x9d4   : > { %3856 = vmatpush.bf16.msra.mxu2 %v5209_v62  ;;  %3875 = vmatpush.bf16.msra.mxu3 %v5217_v31  ;;  %v5397_v31 = vld [vmem:[#allocation4 + $0x410] sm:$0xff]  }
 0x9d7   : > { %4920 = vmatmul.msk.bf16.gmra.mxu2 %vm3109_vm5, %v5190_v4  ;;  %4930 = vmatmul.msk.bf16.gmra.mxu3 %vm3109_vm5, %v5192_v37 }
 0x9d8   : > { %3974 = vmatpush.msrb.mxu2 %v5360_v49  ;;  %3995 = vmatpush.msrb.mxu3 %v5360_v49  ;;  %v5363_v49 = vunpack.c.l.bf16 %v5403_v55 }
 0x9da   : > { %3975 = vmatpush.msrb.mxu2 %v5359_v56  ;;  %3996 = vmatpush.msrb.mxu3 %v5359_v56 }
 0x9dc   : > { %3976 = vmatpush.msrb.mxu2 %v5356_v45  ;;  %3997 = vmatpush.msrb.mxu3 %v5356_v45 }
 0x9de   : > { %3977 = vmatpush.msrb.mxu2 %v5355_v38  ;;  %3998 = vmatpush.msrb.mxu3 %v5355_v38 }
 0x9e0   : > { %3978 = vmatpush.msrb.mxu2 %v5352_v42  ;;  %3999 = vmatpush.msrb.mxu3 %v5352_v42 }
 0x9e2   : > { %3979 = vmatpush.msrb.mxu2 %v5351_v18  ;;  %4000 = vmatpush.msrb.mxu3 %v5351_v18 }
 0x9e4   : > { %3980 = vmatpush.msrb.mxu2 %v5348_v26  ;;  %4001 = vmatpush.msrb.mxu3 %v5348_v26  ;;  %v5393_v26 = vld [vmem:[#allocation4 + $0x3f0] sm:$0xff]  }
 0x9e6   : > { %3981 = vmatpush.msrb.mxu2 %v5347_v43  ;;  %4002 = vmatpush.msrb.mxu3 %v5347_v43 }
 0x9e8   : > { %3982 = vmatpush.msrb.mxu2 %v5344_v52  ;;  %4003 = vmatpush.msrb.mxu3 %v5344_v52 }
 0xa2a   : > { %v3419_v35 = vpop.f32.mrf.mxu2  ;;  %v3458_v14 = vpop.f32.mrf.mxu3 }
 0xa32   : > { %v3421_v19 = vpop.f32.mrf.mxu2  ;;  %v3460_v15 = vpop.f32.mrf.mxu3 }
 0xa33   : > { %v3546_v17 = vpack.c.bf16 %v3421_v19, %v3419_v35  ;;  %v3547_v2 = vpack.c.bf16 %v3460_v15, %v3458_v14 }
 0xa35   : > { %3819 = vmatmul.bf16.vlgmr.msra.gmra.mxu1 %v3546_v17  ;;  %3838 = vmatmul.bf16.vlgmr.msrb.gmra.mxu0 %v3547_v2  ;;  %v5343_v17 = vunpack.c.l.bf16 %v5398_v12  ;;  %v5323_v12 = vunpack.c.l.bf16 %v5393_v26 }
 0xa37   : > { %3983 = vmatpush.msrb.mxu2 %v5343_v17  ;;  %4004 = vmatpush.msrb.mxu3 %v5343_v17 }
 0xa3a   : > { %v3424_v29 = vpop.f32.mrf.mxu2  ;;  %v3463_v3 = vpop.f32.mrf.mxu3 }
 0xa42   : > { %v3426_v24 = vpop.f32.mrf.mxu2  ;;  %v3465_v40 = vpop.f32.mrf.mxu3 }
 0xa43   : > { %v3550_v8 = vpack.c.bf16 %v3426_v24, %v3424_v29  ;;  %v3551_v25 = vpack.c.bf16 %v3465_v40, %v3463_v3  ;;  %v5340_v24 = vunpack.c.h.bf16 %v5397_v31 }
 0xa45   : > { %3824 = vmatmul.bf16.gmra.mxu1 %v3550_v8  ;;  %3843 = vmatmul.bf16.gmra.mxu0 %v3551_v25  ;;  %v5396_v8 = vld [vmem:[#allocation4 + $0x408] sm:$0xff]  }
 0xa46   : > { %3984 = vmatpush.msrb.mxu2 %v5340_v24  ;;  %4005 = vmatpush.msrb.mxu3 %v5340_v24 }
 0xa4a   : > { %v3497_v27 = vpop.f32.mrf.mxu2  ;;  %v3536_v7 = vpop.f32.mrf.mxu3 }
 0xa52   : > { %v3499_v0 = vpop.f32.mrf.mxu2  ;;  %v3538_v22 = vpop.f32.mrf.mxu3 }
 0xa53   : > { %v3548_v32 = vpack.c.bf16 %v3499_v0, %v3497_v27  ;;  %v3549_v36 = vpack.c.bf16 %v3538_v22, %v3536_v7  ;;  %v5339_v0 = vunpack.c.l.bf16 %v5397_v31 }
 0xa55   : > { %3857 = vmatmul.bf16.vlgmr.msra.gmra.mxu2 %v3548_v32  ;;  %3876 = vmatmul.bf16.vlgmr.msra.gmra.mxu3 %v3549_v36  ;;  %v5336_v36 = vunpack.c.h.bf16 %v5396_v8 }
 0xa56   : > { %3985 = vmatpush.msrb.mxu2 %v5339_v0  ;;  %4006 = vmatpush.msrb.mxu3 %v5339_v0 }
 0xa58   : > { %3986 = vmatpush.msrb.mxu2 %v5336_v36  ;;  %4007 = vmatpush.msrb.mxu3 %v5336_v36 }
 0xa5a   : > { %v3502_v47 = vpop.f32.mrf.mxu2  ;;  %v3541_v1 = vpop.f32.mrf.mxu3 }
 0xa62   : > { %v3504_v34 = vpop.f32.mrf.mxu2  ;;  %v3543_v39 = vpop.f32.mrf.mxu3 }
 0xa63   : > { %v3552_v50 = vpack.c.bf16 %v3504_v34, %v3502_v47  ;;  %v3553_v11 = vpack.c.bf16 %v3543_v39, %v3541_v1  ;;  %v5395_v47 = vld [vmem:[#allocation4 + $0x400] sm:$0xff]   ;;  %v5335_v39 = vunpack.c.l.bf16 %v5396_v8 }
 0xa65   : > { %3862 = vmatmul.bf16.gmra.mxu2 %v3552_v50  ;;  %3881 = vmatmul.bf16.gmra.mxu3 %v3553_v11  ;;  %v3887_v11 = vld [vmem:[#allocation4 + $0x3ec] sm:$0xf] }
 0xa66   : > { %3987 = vmatpush.msrb.mxu2 %v5335_v39  ;;  %4008 = vmatpush.msrb.mxu3 %v5335_v39 }
 0xab2   : > { %v3820_v57 = vpop.f32.mrf.mxu1  ;;  %v3839_v5 = vpop.f32.mrf.mxu0 }
 0xab3   : > { %v3821_v48 = vadd.f32 %v5474_v61, %v3820_v57  ;;  %v5332_v57 = vunpack.c.h.bf16 %v5395_v47 }
 0xab5   : > { %v3840_v23 = vadd.f32 %v3839_v5, %v3821_v48  ;;  %3988 = vmatpush.msrb.mxu2 %v5332_v57  ;;  %4009 = vmatpush.msrb.mxu3 %v5332_v57  ;;  %v5331_v5 = vunpack.c.l.bf16 %v5395_v47 }
 0xab7   : > { %3989 = vmatpush.msrb.mxu2 %v5331_v5  ;;  %4010 = vmatpush.msrb.mxu3 %v5331_v5 }
 0xaba   : > { %v3822_v58 = vpop.f32.mrf.mxu1  ;;  %v3841_v30 = vpop.f32.mrf.mxu0 }
 0xabb   : > { %v3823_v41 = vadd.f32 %v5474_v61, %v3822_v58 }
 0xabd   : > { %v3842_v46 = vadd.f32 %v3841_v30, %v3823_v41 }
 0xac2   : > { %v3825_v4 = vpop.f32.mrf.mxu1  ;;  %v3844_v44 = vpop.f32.mrf.mxu0 }
 0xac3   : > { %v3826_v33 = vadd.f32 %v5474_v61, %v3825_v4  ;;  %v5404_v4 = vld [vmem:[#allocation4 + $0x448] sm:$0xff]  }
 0xac5   : > { %v3845_v9 = vadd.f32 %v3844_v44, %v3826_v33 }
 0xaca   : > { %v3827_v51 = vpop.f32.mrf.mxu1  ;;  %v3846_v10 = vpop.f32.mrf.mxu0 }
 0xacb   : > { %v3828_v21 = vadd.f32 %v5474_v61, %v3827_v51 }
 0xacd   : > { %v3847_v14 = vadd.f32 %v3846_v10, %v3828_v21 }
 0xad8   : > { %v3858_v13 = vpop.f32.mrf.mxu2  ;;  %v6737_v28 = vpop.f32.mrf.mxu3 }
 0xad9   : > { %v3859_v63 = vadd.f32 %v3858_v13, %v3840_v23  ;;  %v5394_v23 = vld [vmem:[#allocation4 + $0x3f8] sm:$0xff]  }
 0xada   : > { %v5327_v10 = vunpack.c.l.bf16 %v5394_v23 }
 0xadb   : > { %v6749_v40 = vadd.f32 %v6737_v28, %v3859_v63 }
 0xadd   : > { %v3955_v1 = vmul.f32 %v6749_v40, %v6749_v40 }
 0xae0   : > { %v3860_v37 = vpop.f32.mrf.mxu2  ;;  %v3879_v6 = vpop.f32.mrf.mxu3 }
 0xae1   : > { %v3861_v35 = vadd.f32 %v3860_v37, %v3842_v46  ;;  %v5368_v37 = vunpack.c.h.bf16 %v5404_v4 }
 0xae3   : > { %v6744_v29 = vadd.f32 %v3879_v6, %v3861_v35  ;;  %v5367_v6 = vunpack.c.l.bf16 %v5404_v4  ;;  %v5328_v35 = vunpack.c.h.bf16 %v5394_v23 }
 0xae5   : > { %v3956_v22 = vmul.f32 %v6744_v29, %v6744_v29  ;;  %v3936_v34 = vpack.c.bf16 %v6744_v29, %v6749_v40 }
 0xae7   : > { %v3959_v50 = vpack.c.bf16 %v3956_v22, %v3955_v1 }
 0xae8   : > { %v3863_v59 = vpop.f32.mrf.mxu2  ;;  %v3882_v60 = vpop.f32.mrf.mxu3 }
 0xae9   : > { %v3864_v54 = vadd.f32 %v3863_v59, %v3845_v9 }
 0xaeb   : > { %v6742_v19 = vadd.f32 %v3882_v60, %v3864_v54  ;;  %v5324_v54 = vunpack.c.h.bf16 %v5393_v26 }
 0xaed   : > { %v3957_v25 = vmul.f32 %v6742_v19, %v6742_v19 }
 0xaf0   : > { %v3865_v62 = vpop.f32.mrf.mxu2  ;;  %v3884_v2 = vpop.f32.mrf.mxu3 }
 0xaf1   : > { %v3866_v15 = vadd.f32 %v3865_v62, %v3847_v14 }
 0xaf3   : > { %v6746_v3 = vadd.f32 %v3884_v2, %v3866_v15 }
 0xaf5   : > { %v3937_v27 = vpack.c.bf16 %v6746_v3, %v6742_v19  ;;  %v3958_v7 = vmul.f32 %v6746_v3, %v6746_v3 }
 0xaf7   : > { %v3960_v32 = vpack.c.bf16 %v3958_v7, %v3957_v25  ;;  %3948 = vmatpush.bf16.msrb.mxu1 %v3937_v27 }
 0xaf9   : > { %3967 = vmatpush.bf16.msra.mxu0 %v3960_v32 }
 0xafb   : > { %3949 = vmatpush.bf16.msrb.mxu1 %v3936_v34 }
 0xafd   : > { %3968 = vmatpush.bf16.msra.mxu0 %v3959_v50 }
 0xafe   : > { %5059 = vmatmul.msk.bf16.vlgmr.msrb.gmra.mxu1 %vm3938_vm9, %v3887_v11 }
 0xaff   : > { %4045 = vmatpush.msra.mxu1 %v5368_v37 }
 0xb00   : > { %5060 = vmatmul.msk.bf16.vlgmr.msra.gmra.mxu0 %vm3938_vm9, %v3887_v11 }
 0xb01   : > { %4046 = vmatpush.msra.mxu1 %v5367_v6 }
 0xb03   : > { %4047 = vmatpush.msra.mxu1 %v5364_v53 }
 0xb05   : > { %4048 = vmatpush.msra.mxu1 %v5363_v49 }
 0xb07   : > { %4111 = vmatpush.msrb.mxu1 %v5368_v37 }
 0xb09   : > { %4112 = vmatpush.msrb.mxu1 %v5367_v6 }
 0xb0b   : > { %4113 = vmatpush.msrb.mxu1 %v5364_v53 }
 0xb0d   : > { %4114 = vmatpush.msrb.mxu1 %v5363_v49 }
 0xb7b   : > { %v3951_v58 = vpop.f32.mrf.mxu1 }
 0xb7c   : > { %3990 = vmatmul.f32.vlgmr.msrb.gmra.mxu2 %v3951_v58 }
 0xb7d   : > { %v3970_v13 = vpop.f32.mrf.mxu0 }
 0xb7e   : > { %4011 = vmatmul.f32.vlgmr.msrb.gmra.mxu3 %v3970_v13 }
 0xb83   : > { %v3953_v28 = vpop.f32.mrf.mxu1 }
 0xb85   : > { %v3972_v30 = vpop.f32.mrf.mxu0 }
 0xbff   : > { %v3991_v56 = vpop.f32.mrf.mxu2 }
 0xc00   : > { %v3994_v45 = vmul.f32 0.0625, %v3991_v56 }
 0xc01   : > { %v4012_v44 = vpop.f32.mrf.mxu3 }
 0xc02   : > { %v4016_v20 = vmul.f32 %v3994_v45, %v3994_v45  ;;  %v4015_v61 = vmul.f32 0.0625, %v4012_v44  ;;  %v4094_v9 = vsub.f32 0.0, %v3994_v45 }
 0xc04   : > { %v4017_v38 = vsub.f32 %v4015_v61, %v4016_v20 }
 0xc06   : > { %v4018_v33 = vmax.f32 %v4017_v38, 0.0 }
 0xc08   : > { %v4019_v51 = vadd.f32 1e-05, %v4018_v33 }
 0xc0a   : > { %5479 = vrsqrt.f32 %v4019_v51  ;;  %vm4026_vm11 = vweird.f32 %v4019_v51 }
 0xc10   : > { %v5480_v42 = vpop.eup %5479 }
 0xc11   : > { %v4021_v59 = vmul.f32 %v5480_v42, %v4019_v51  ;;  %vm4027_vm10 = vweird.f32 %v5480_v42 }
 0xc12   : > { %vm4028_vm12 = vmor %vm4026_vm11, %vm4027_vm10 }
 0xc13   : > { %v4022_v60 = vmul.f32 %v5480_v42, %v4021_v59 }
 0xc15   : > { %v4023_v16 = vmul.f32 0.5, %v4022_v60 }
 0xc17   : > { %v4024_v41 = vsub.f32 1.5, %v4023_v16 }
 0xc19   : > { %v4025_v18 = vmul.f32 %v5480_v42, %v4024_v41 }
 0xc1b   : > { %v4029_v48 = vsel %vm4028_vm12, %v5480_v42, %v4025_v18 }
 0xc1c   : > { %5061 = vmatmul.msk.f32.vlgmr.msra.gmra.mxu1 %vm3938_vm9, %v4029_v48  ;;  %v4095_v21 = vmul.f32 %v4094_v9, %v4029_v48 }
 0xc24   : > { %5066 = vmatmul.msk.f32.vlgmr.msrb.gmra.mxu1 %vm3938_vm9, %v4095_v21 }
 0xc99   : > { %v4050_v46 = vpop.f32.mrf.mxu1 }
 0xc9a   : > { %4080 = vmatpush.msrb.mxu0 %v4050_v46 }
 0xc9b   : > { %5062 = vmatmul.msk.f32.vlgmr.msrb.gmra.mxu0 %vm2127_vm3, %v5323_v12 }
 0xca1   : > { %v4116_v43 = vpop.f32.mrf.mxu1 }
 0xca2   : > { %4134 = vmatpush.msra.mxu2 %v4116_v43 }
 0xca3   : > { %5063 = vmatmul.msk.f32.gmra.mxu0 %vm2127_vm3, %v5324_v54  ;;  %5067 = vmatmul.msk.f32.vlgmr.msra.gmra.mxu2 %vm2127_vm3, %v5323_v12 }
 0xcab   : > { %5064 = vmatmul.msk.f32.gmra.mxu0 %vm2127_vm3, %v5327_v10  ;;  %5068 = vmatmul.msk.f32.gmra.mxu2 %vm2127_vm3, %v5324_v54 }
 0xcb3   : > { %5065 = vmatmul.msk.f32.gmra.mxu0 %vm2127_vm3, %v5328_v35  ;;  %5069 = vmatmul.msk.f32.gmra.mxu2 %vm2127_vm3, %v5327_v10 }
 0xcbb   : > { %5070 = vmatmul.msk.f32.gmra.mxu2 %vm2127_vm3, %v5328_v35 }
 0xd18   : > { %v4082_v14 = vpop.f32.mrf.mxu0 }
 0xd19   : > { %v4148_v52 = vmul.f32 %v4082_v14, %v6749_v40 }
 0xd20   : > { %v4085_v63 = vpop.f32.mrf.mxu0 }
 0xd21   : > { %v4149_v17 = vmul.f32 %v4085_v63, %v6744_v29 }
 0xd26   : > { %v4136_v62 = vpop.f32.mrf.mxu2 }
 0xd27   : > { %v4152_v31 = vadd.f32 %v4148_v52, %v4136_v62 }
 0xd28   : > { %v4088_v8 = vpop.f32.mrf.mxu0 }
 0xd29   : > { %v4156_v15 = vmax.f32 %v4152_v31, 0.0  ;;  %v4150_v27 = vmul.f32 %v4088_v8, %v6742_v19 }
 0xd2b   : > { %4160 = vst [vmem:[%s322_s30] sm:$0xff] %v4156_v15 }
 0xd2e   : > { %v4139_v2 = vpop.f32.mrf.mxu2 }
 0xd2f   : > { %v4153_v24 = vadd.f32 %v4149_v17, %v4139_v2 }
 0xd30   : > { %v4091_v22 = vpop.f32.mrf.mxu0 }
 0xd31   : > { %v4157_v25 = vmax.f32 %v4153_v24, 0.0  ;;  %v4151_v32 = vmul.f32 %v4091_v22, %v6746_v3 }
 0xd33   : > { %4161 = vst [vmem:[%s322_s30 + $0x8] sm:$0xff] %v4157_v25 }
 0xd36   : > { %v4142_v40 = vpop.f32.mrf.mxu2 }
 0xd37   : > { %v4154_v7 = vadd.f32 %v4150_v27, %v4142_v40 }
 0xd39   : > { %v4158_v0 = vmax.f32 %v4154_v7, 0.0 }
 0xd3b   : > { %4162 = vst [vmem:[%s322_s30 + $0x10] sm:$0xff] %v4158_v0 }
 0xd3e   : > { %v4145_v36 = vpop.f32.mrf.mxu2 }
 0xd3f   : > { %v4155_v47 = vadd.f32 %v4151_v32, %v4145_v36 }
 0xd41   : > { %v4159_v1 = vmax.f32 %v4155_v47, 0.0 }
 0xd43   : > { %4163 = vst [vmem:[%s322_s30 + $0x18] sm:$0xff] %v4159_v1 }
 0xd44 PF: > { %s6854_s25 = smov %s5709_s21  ;;  %p18_p11 = scmp.ge.s32.totalorder %s5700_s18, 4  }
 0xd45   : > { %s6855_s21 = smov %s5601_s22  ;;  %s6856_s22 = smov %s5605_s23 }
 0xd46   : > { %s6857_s23 = smov %s6854_s25  ;;  %s6858_s24 = smov %s5700_s18 }
 0xd47   :  { %20 = sbr.rel (!%p18_p11) target bundleno = 4 (0x4), region = 108 }
 0xd4c   :  { %4220 = vsyncpa [#allocation3], 1 }
 0xd4d   :  { %4222 = vsyncpa [#allocation3 + $0x1], 1 }
 0xd4e   :  { %4223 = vsyncpa [#allocation5], 1 }

</bundles_post_ra>
